<compile_context>
chip_gen: v5e
topology: v5e:2x2
jax: 0.10.0
libtpu: 0.0.40
codegen_flags: <defaults>
</compile_context>

<pallas_src>
import functools

import jax
import jax.numpy as jnp
from jax.experimental import pallas as pl
from jax.experimental.pallas import tpu as pltpu

EPS = 1e-6


def _neck_kernel(x_ref, w_ref, gb_ref, o_ref):
    # x_ref:  (tm, C_in)    tile of flattened pixels (native dtype)
    # w_ref:  (C_in, C_out) conv1x1 weight, pre-transposed once in the wrapper
    # gb_ref: (2, C_out)    f32: row 0 = gamma, row 1 = beta
    # o_ref:  (tm, C_out)
    #
    # 1x1 conv == per-pixel matmul over channels: native dtype on the MXU,
    # f32 accumulation.  NN-form contraction (no weight layout change).
    y = jax.lax.dot_general(
        x_ref[...],
        w_ref[...],
        dimension_numbers=(((1,), (0,)), ((), ())),
        preferred_element_type=jnp.float32,
    )  # (tm, C_out) f32

    # Channels-first LayerNorm over the channel dim, one-pass moments.
    mu = jnp.mean(y, axis=-1, keepdims=True)
    var = jnp.mean(y * y, axis=-1, keepdims=True) - mu * mu
    inv = jax.lax.rsqrt(jnp.maximum(var, 0.0) + EPS)

    gamma = gb_ref[0:1, :]  # (1, C_out) f32
    beta = gb_ref[1:2, :]   # (1, C_out) f32
    o_ref[...] = ((y - mu) * (inv * gamma) + beta).astype(o_ref.dtype)


def _vmem_capacity_bytes():
    try:
        return int(pltpu.get_tpu_info().vmem_capacity_bytes)
    except Exception:
        return 64 * 1024 * 1024  # conservative (v7x-sized) fallback


def _pick_tm(M, C_in, C_out, x_itemsize, w_itemsize, out_itemsize, vmem_cap):
    """Largest useful row tile that keeps the streaming tiles inside budget."""
    if vmem_cap >= 96 * 1024 * 1024:
        # 128 MiB parts (v5e / v6e): use most of it.
        budget, hard_cap = 72 * 1024 * 1024, 4096
    else:
        # 64 MiB parts (v7x): leave headroom under the 48 MiB vmem limit.
        budget, hard_cap = 24 * 1024 * 1024, 2048
    # Resident: (double-buffered) weight + packed gamma/beta.
    resident = 2 * C_in * C_out * w_itemsize + 2 * 2 * C_out * 4
    # Per row: double-buffered input + output tiles, plus ~4 full-width f32
    # temporaries (y and the LN epilogue working set).
    per_row = 2 * (C_in * x_itemsize + C_out * out_itemsize) + 4 * 4 * C_out
    tm_cap = max(8, (budget - resident) // per_row)
    tm = int(min(hard_cap, tm_cap))
    if tm >= M:
        return int(M)  # single full-extent block
    return max(8, (tm // 8) * 8)


@functools.partial(jax.jit, static_argnames=("tm",))
def short_sam_vision_neck(hidden_states, conv_weight, ln_weight, ln_bias, *, tm=None):
    """hidden_states: (B, H, W, C_in) channels-last.
    conv_weight:   (C_out, C_in) or (C_out, C_in, 1, 1) -- PyTorch nn.Conv2d weight.
    ln_weight/ln_bias: (C_out,)
    Returns (B, H, W, C_out) in the activation dtype.
    """
    B, H, W, C_in = hidden_states.shape
    C_out = conv_weight.shape[0]
    if conv_weight.ndim == 4:
        conv_weight = conv_weight.reshape(C_out, C_in)

    M = B * H * W
    out_dtype = hidden_states.dtype

    x2d = hidden_states.reshape(M, C_in)
    # One-time transpose to (C_in, C_out); paid once in the wrapper instead of
    # a per-iteration layout change of the reused weight block.
    w_t = jnp.transpose(conv_weight, (1, 0))
    # Pack gamma/beta as one f32 (2, C_out) block; avoids per-iteration astype.
    gb = jnp.stack(
        [ln_weight.astype(jnp.float32), ln_bias.astype(jnp.float32)], axis=0
    )

    x_isz = jnp.dtype(hidden_states.dtype).itemsize
    w_isz = jnp.dtype(conv_weight.dtype).itemsize
    o_isz = jnp.dtype(out_dtype).itemsize

    vmem_cap = _vmem_capacity_bytes()
    if tm is None:
        tm = _pick_tm(M, C_in, C_out, x_isz, w_isz, o_isz, vmem_cap)
    tm = int(min(tm, M))
    n_blocks = pl.cdiv(M, tm)  # boundary block handled by Pallas masking
    vmem_limit = (96 if vmem_cap >= 96 * 1024 * 1024 else 48) * 1024 * 1024

    cost = pl.CostEstimate(
        flops=2 * M * C_in * C_out,
        transcendentals=M,  # one rsqrt per pixel
        bytes_accessed=M * C_in * x_isz + M * C_out * o_isz + C_in * C_out * w_isz,
    )

    out2d = pl.pallas_call(
        _neck_kernel,
        out_shape=jax.ShapeDtypeStruct((M, C_out), out_dtype),
        grid_spec=pltpu.PrefetchScalarGridSpec(
            num_scalar_prefetch=0,
            grid=(n_blocks,),
            in_specs=[
                pl.BlockSpec((tm, C_in), lambda i: (i, 0)),
                pl.BlockSpec((C_in, C_out), lambda i: (0, 0)),
                pl.BlockSpec((2, C_out), lambda i: (0, 0)),
            ],
            out_specs=pl.BlockSpec((tm, C_out), lambda i: (i, 0)),
        ),
        compiler_params=pltpu.CompilerParams(
            dimension_semantics=("parallel",),
            vmem_limit_bytes=vmem_limit,
        ),
        cost_estimate=cost,
    )(x2d, w_t, gb)

    return out2d.reshape(B, H, W, C_out)


def _reference(hidden_states, conv_weight, ln_weight, ln_bias):
    # Pure-JAX reference mirroring the PyTorch forward (channels-first LN).
    x = jnp.transpose(hidden_states, (0, 3, 1, 2)).astype(jnp.float32)  # NCHW
    y = jnp.einsum("bchw,oc->bohw", x, conv_weight.astype(jnp.float32))
    u = jnp.mean(y, axis=1, keepdims=True)
    s = jnp.mean((y - u) ** 2, axis=1, keepdims=True)
    y = (y - u) / jnp.sqrt(s + EPS)
    y = ln_weight[None, :, None, None] * y + ln_bias[None, :, None, None]
    return jnp.transpose(y, (0, 2, 3, 1)).astype(hidden_states.dtype)


if __name__ == "__main__":
    # Shapes consistent with the module's forward: input (B, H, W, hidden_size),
    # conv 1x1: hidden_size -> output_channels.  Channels kept >= 128 so tiles
    # are lane-dense (real SAM neck is 768 -> 256).
    hidden_size = 256
    output_channels = 128

    key = jax.random.PRNGKey(0)
    k_x, k_w, k_g, k_b, k_x2 = jax.random.split(key, 5)

    conv_weight = jax.random.normal(
        k_w, (output_channels, hidden_size), dtype=jnp.float32) * 0.05
    ln_weight = 1.0 + 0.1 * jax.random.normal(k_g, (output_channels,), dtype=jnp.float32)
    ln_bias = 0.1 * jax.random.normal(k_b, (output_channels,), dtype=jnp.float32)

    # Test 1: divisible shapes, auto tile size (single full block here).
    B, H, W = 2, 16, 16
    hidden_states = jax.random.normal(k_x, (B, H, W, hidden_size), dtype=jnp.float32)
    out = short_sam_vision_neck(hidden_states, conv_weight, ln_weight, ln_bias)
    out = jax.block_until_ready(out)
    ref = _reference(hidden_states, conv_weight, ln_weight, ln_bias)
    assert out.shape == (B, H, W, output_channels)
    assert jnp.allclose(out, ref, atol=1e-3, rtol=1e-3), "mismatch vs reference (test 1)"

    # Test 2: awkward M (= 2*13*13 = 338) with a forced small tile, exercising
    # the no-pad boundary-block path (partial last block masked by Pallas).
    B2, H2, W2 = 2, 13, 13
    hidden_states2 = jax.random.normal(k_x2, (B2, H2, W2, hidden_size), dtype=jnp.float32)
    out2 = short_sam_vision_neck(hidden_states2, conv_weight, ln_weight, ln_bias, tm=128)
    out2 = jax.block_until_ready(out2)
    ref2 = _reference(hidden_states2, conv_weight, ln_weight, ln_bias)
    assert out2.shape == (B2, H2, W2, output_channels)
    assert jnp.allclose(out2, ref2, atol=1e-3, rtol=1e-3), "mismatch vs reference (test 2)"

    print("KERNEL_OK")
</pallas_src>

<mosaic_0001>
module attributes {stable_mosaic.version = 11 : i64} {
  func.func @_neck_kernel(%arg0: i32, %arg1: memref<512x256xf32, #tpu.memory_space<vmem>>, %arg2: memref<256x128xf32, #tpu.memory_space<vmem>>, %arg3: memref<2x128xf32, #tpu.memory_space<vmem>>, %arg4: memref<512x128xf32, #tpu.memory_space<vmem>>) attributes {dimension_semantics = [#tpu.dimension_semantics<parallel>], iteration_bounds = array<i64: 1>, scalar_prefetch = 0 : i64, scratch_operands = 0 : i64, tpu.core_type = #tpu.core_type<tc>, window_params = [{transform_indices = @transform_0, window_bounds = array<i64: 512, 256>}, {pipeline_mode = #tpu.pipeline_mode<synchronous>, transform_indices = @transform_1, window_bounds = array<i64: 256, 128>}, {pipeline_mode = #tpu.pipeline_mode<synchronous>, transform_indices = @transform_2, window_bounds = array<i64: 2, 128>}, {transform_indices = @transform_3, window_bounds = array<i64: 512, 128>}]} {
    %c0 = arith.constant 0 : index
    %c0_0 = arith.constant 0 : index
    %0 = vector.load %arg1[%c0, %c0_0] : memref<512x256xf32, #tpu.memory_space<vmem>>, vector<512x256xf32>
    %c0_1 = arith.constant 0 : index
    %c0_2 = arith.constant 0 : index
    %1 = vector.load %arg2[%c0_1, %c0_2] : memref<256x128xf32, #tpu.memory_space<vmem>>, vector<256x128xf32>
    %cst = arith.constant dense<0.000000e+00> : vector<512x128xf32>
    %2 = tpu.matmul %0, %1, %cst {dimension_numbers = #tpu.dot_dimension_numbers<[1], [0], [0], [1], [0, 0, 1, 1], [], []>} : vector<512x256xf32>, vector<256x128xf32>, vector<512x128xf32> -> vector<512x128xf32>
    %cst_3 = arith.constant dense<0.000000e+00> : vector<512xf32>
    %3 = vector.multi_reduction <add>, %2, %cst_3 [1] : vector<512x128xf32> to vector<512xf32>
    %4 = vector.shape_cast %3 : vector<512xf32> to vector<512x1xf32>
    %cst_4 = arith.constant 1.280000e+02 : f32
    %5 = vector.broadcast %cst_4 : f32 to vector<512x1xf32>
    %6 = arith.divf %4, %5 : vector<512x1xf32>
    %7 = arith.mulf %2, %2 : vector<512x128xf32>
    %cst_5 = arith.constant dense<0.000000e+00> : vector<512xf32>
    %8 = vector.multi_reduction <add>, %7, %cst_5 [1] : vector<512x128xf32> to vector<512xf32>
    %9 = vector.shape_cast %8 : vector<512xf32> to vector<512x1xf32>
    %cst_6 = arith.constant 1.280000e+02 : f32
    %10 = vector.broadcast %cst_6 : f32 to vector<512x1xf32>
    %11 = arith.divf %9, %10 : vector<512x1xf32>
    %12 = arith.mulf %6, %6 : vector<512x1xf32>
    %13 = arith.subf %11, %12 : vector<512x1xf32>
    %cst_7 = arith.constant 0.000000e+00 : f32
    %14 = vector.broadcast %cst_7 : f32 to vector<512x1xf32>
    %15 = arith.maximumf %13, %14 : vector<512x1xf32>
    %cst_8 = arith.constant 9.99999997E-7 : f32
    %16 = vector.broadcast %cst_8 : f32 to vector<512x1xf32>
    %17 = arith.addf %15, %16 : vector<512x1xf32>
    %18 = math.rsqrt %17 : vector<512x1xf32>
    %c0_9 = arith.constant 0 : index
    %c0_10 = arith.constant 0 : index
    %19 = vector.load %arg3[%c0_9, %c0_10] : memref<2x128xf32, #tpu.memory_space<vmem>>, vector<1x128xf32>
    %c1 = arith.constant 1 : index
    %c0_11 = arith.constant 0 : index
    %20 = vector.load %arg3[%c1, %c0_11] : memref<2x128xf32, #tpu.memory_space<vmem>>, vector<1x128xf32>
    %21 = vector.broadcast %6 : vector<512x1xf32> to vector<512x128xf32>
    %22 = arith.subf %2, %21 : vector<512x128xf32>
    %23 = vector.broadcast %18 : vector<512x1xf32> to vector<512x128xf32>
    %24 = vector.broadcast %19 : vector<1x128xf32> to vector<512x128xf32>
    %25 = arith.mulf %23, %24 : vector<512x128xf32>
    %26 = arith.mulf %22, %25 : vector<512x128xf32>
    %27 = vector.broadcast %20 : vector<1x128xf32> to vector<512x128xf32>
    %28 = arith.addf %26, %27 : vector<512x128xf32>
    %c0_12 = arith.constant 0 : index
    %c0_13 = arith.constant 0 : index
    %29 = vector.load %arg4[%c0_12, %c0_13] : memref<512x128xf32, #tpu.memory_space<vmem>>, vector<512x128xf32>
    tpu.vector_store %arg4[%c0_12, %c0_13], %28 {strides = array<i32>} : memref<512x128xf32, #tpu.memory_space<vmem>>, vector<512x128xf32>,
    return
  }
  func.func @transform_0(%arg0: i32) -> (i32, i32) {
    %c0_i32 = arith.constant 0 : i32
    %c0_i32_0 = arith.constant 0 : i32
    return %arg0, %c0_i32 : i32, i32
  }
  func.func @transform_1(%arg0: i32) -> (i32, i32) {
    %c0_i32 = arith.constant 0 : i32
    %c0_i32_0 = arith.constant 0 : i32
    %c0_i32_1 = arith.constant 0 : i32
    return %c0_i32, %c0_i32_0 : i32, i32
  }
  func.func @transform_2(%arg0: i32) -> (i32, i32) {
    %c0_i32 = arith.constant 0 : i32
    %c0_i32_0 = arith.constant 0 : i32
    %c0_i32_1 = arith.constant 0 : i32
    return %c0_i32, %c0_i32_0 : i32, i32
  }
  func.func @transform_3(%arg0: i32) -> (i32, i32) {
    %c0_i32 = arith.constant 0 : i32
    %c0_i32_0 = arith.constant 0 : i32
    return %arg0, %c0_i32 : i32, i32
  }
}

</mosaic_0001>

<bundles_post_ra>
// kernel: short_sam_vision_neck.1
= control target key start
LH: loop header
LB: loop body
LE: loop exit
PB: predicated region body
PF: predicated region fallthrough
CT: control target
= control target key end

     0   :  { %8 = vsyncpa [#allocation3], 0  ;;  %s4387_s0 = inlined_call_operand.hbm [shape: f32[512,256], index: 0, kind: input, shape index: {}]   ;;  %s4388_s1 = inlined_call_operand.vmem [shape: f32[256,128], index: 1, kind: input, shape index: {}]   ;;  %s4389_s2 = inlined_call_operand.vmem [shape: f32[2,128], index: 2, kind: input, shape index: {}]   ;;  %s4390_s3 = inlined_call_operand.hbm [shape: f32[512,128], index: 3, kind: output, shape index: {}]  }
   0x1   :  { %9 = vsyncpa [#allocation4], 0  ;;  %s14_s14 = sshll.u32 %s4387_s0, 4  ;;  %s2532_s15 = smov [#allocation2]   ;;  %s15_s14 = int_to_ptr.hbm [resolvable:$true] %s14_s14 }
   0x2   :  { %s16_s16 = sshll.u32 %s2532_s15, 4  ;;  %s2533_s17 = smov 256   ;;  %s17_s16 = int_to_ptr.vmem [resolvable:$true] %s16_s16 }
   0x3   :  { %s2534_s18 = smov 16  }
   0x4   :  { %22 = dma.hbm_to_vmem [thread:$0]  %s15_s14, 16384, %s17_s16, [#allocation3], %s2533_s17, %s2533_s17, %s2534_s18  }
   0x5   :  { %2528 = dma.done.wait [#allocation3], 16384  }
   0x6   :  { %2529 = vsyncadd [#allocation3], 4294950912  ;;  %v174_v0 = vld [vmem:[%s4388_s1 + $0x78] sm:$0xff]  ;;  %v173_v2 = vld [vmem:[%s4388_s1 + $0x70] sm:$0xff]  ;;  %s2290_s17 = sshll.u32 %s4390_s3, 4  ;;  %s2537_s18 = smov 128   ;;  %s2291_s17 = int_to_ptr.hbm [resolvable:$true] %s2290_s17 }
   0x7   :  { %v190_v1 = vld [vmem:[%s4388_s1 + $0xf8] sm:$0xff]  ;;  %191 = vmatpush.msra.mxu0 %v174_v0  ;;  %2303 = vmatpush.msra.mxu2 %v174_v0  ;;  %v189_v3 = vld [vmem:[%s4388_s1 + $0xf0] sm:$0xff]  ;;  %v172_v4 = vld [vmem:[%s4388_s1 + $0x68] sm:$0xff]  ;;  %s2538_s19 = smov 8  }
   0x8   :  { %400 = vmatpush.msra.mxu1 %v190_v1  ;;  %2319 = vmatpush.msra.mxu3 %v190_v1  ;;  %v188_v5 = vld [vmem:[%s4388_s1 + $0xe8] sm:$0xff]  ;;  %v171_v6 = vld [vmem:[%s4388_s1 + $0x60] sm:$0xff]  ;;  %v170_v8 = vld [vmem:[%s4388_s1 + $0x58] sm:$0xff] }
   0x9   :  { %192 = vmatpush.msra.mxu0 %v173_v2  ;;  %2304 = vmatpush.msra.mxu2 %v173_v2  ;;  %v187_v7 = vld [vmem:[%s4388_s1 + $0xe0] sm:$0xff]  ;;  %v186_v9 = vld [vmem:[%s4388_s1 + $0xd8] sm:$0xff]  ;;  %v169_v10 = vld [vmem:[%s4388_s1 + $0x50] sm:$0xff] }
   0xa   :  { %401 = vmatpush.msra.mxu1 %v189_v3  ;;  %2320 = vmatpush.msra.mxu3 %v189_v3  ;;  %v185_v11 = vld [vmem:[%s4388_s1 + $0xd0] sm:$0xff]  ;;  %v168_v12 = vld [vmem:[%s4388_s1 + $0x48] sm:$0xff]  ;;  %v167_v14 = vld [vmem:[%s4388_s1 + $0x40] sm:$0xff] }
   0xb   :  { %193 = vmatpush.msra.mxu0 %v172_v4  ;;  %2305 = vmatpush.msra.mxu2 %v172_v4  ;;  %v184_v13 = vld [vmem:[%s4388_s1 + $0xc8] sm:$0xff]  ;;  %v183_v15 = vld [vmem:[%s4388_s1 + $0xc0] sm:$0xff]  ;;  %v166_v16 = vld [vmem:[%s4388_s1 + $0x38] sm:$0xff] }
   0xc   :  { %402 = vmatpush.msra.mxu1 %v188_v5  ;;  %2321 = vmatpush.msra.mxu3 %v188_v5  ;;  %v182_v17 = vld [vmem:[%s4388_s1 + $0xb8] sm:$0xff]  ;;  %v165_v18 = vld [vmem:[%s4388_s1 + $0x30] sm:$0xff]  ;;  %v164_v20 = vld [vmem:[%s4388_s1 + $0x28] sm:$0xff] }
   0xd   :  { %194 = vmatpush.msra.mxu0 %v171_v6  ;;  %2306 = vmatpush.msra.mxu2 %v171_v6  ;;  %v181_v19 = vld [vmem:[%s4388_s1 + $0xb0] sm:$0xff]  ;;  %v180_v21 = vld [vmem:[%s4388_s1 + $0xa8] sm:$0xff]  ;;  %v163_v22 = vld [vmem:[%s4388_s1 + $0x20] sm:$0xff] }
   0xe   :  { %403 = vmatpush.msra.mxu1 %v187_v7  ;;  %2322 = vmatpush.msra.mxu3 %v187_v7  ;;  %v179_v23 = vld [vmem:[%s4388_s1 + $0xa0] sm:$0xff]  ;;  %v162_v24 = vld [vmem:[%s4388_s1 + $0x18] sm:$0xff]  ;;  %v161_v26 = vld [vmem:[%s4388_s1 + $0x10] sm:$0xff] }
   0xf   :  { %195 = vmatpush.msra.mxu0 %v170_v8  ;;  %2307 = vmatpush.msra.mxu2 %v170_v8  ;;  %v178_v25 = vld [vmem:[%s4388_s1 + $0x98] sm:$0xff]  ;;  %v177_v27 = vld [vmem:[%s4388_s1 + $0x90] sm:$0xff]  ;;  %v160_v28 = vld [vmem:[%s4388_s1 + $0x8] sm:$0xff] }
  0x10   :  { %404 = vmatpush.msra.mxu1 %v186_v9  ;;  %2323 = vmatpush.msra.mxu3 %v186_v9  ;;  %v176_v29 = vld [vmem:[%s4388_s1 + $0x88] sm:$0xff]  ;;  %v159_v30 = vld [vmem:[%s4388_s1] sm:$0xff]  ;;  %v33_v36 = vld [vmem:[#allocation2 + $0x10] sm:$0xff] }
  0x11   :  { %196 = vmatpush.msra.mxu0 %v169_v10  ;;  %2308 = vmatpush.msra.mxu2 %v169_v10  ;;  %v175_v31 = vld [vmem:[%s4388_s1 + $0x80] sm:$0xff]  ;;  %v32_v34 = vld [vmem:[#allocation2 + $0x8] sm:$0xff]  ;;  %v97_v37 = vld [vmem:[#allocation2 + $0x210] sm:$0xff] }
  0x12   :  { %405 = vmatpush.msra.mxu1 %v185_v11  ;;  %2324 = vmatpush.msra.mxu3 %v185_v11  ;;  %v31_v32 = vld [vmem:[#allocation2] sm:$0xff]  ;;  %v96_v35 = vld [vmem:[#allocation2 + $0x208] sm:$0xff]  ;;  %v34_v38 = vld [vmem:[#allocation2 + $0x18] sm:$0xff] }
  0x13   :  { %197 = vmatpush.msra.mxu0 %v168_v12  ;;  %2309 = vmatpush.msra.mxu2 %v168_v12  ;;  %v95_v33 = vld [vmem:[#allocation2 + $0x200] sm:$0xff]  ;;  %v98_v39 = vld [vmem:[#allocation2 + $0x218] sm:$0xff]  ;;  %v36_v42 = vld [vmem:[#allocation2 + $0x28] sm:$0xff] }
  0x14   :  { %406 = vmatpush.msra.mxu1 %v184_v13  ;;  %2325 = vmatpush.msra.mxu3 %v184_v13  ;;  %v35_v40 = vld [vmem:[#allocation2 + $0x20] sm:$0xff]  ;;  %v100_v43 = vld [vmem:[#allocation2 + $0x228] sm:$0xff]  ;;  %v101_v44 = vld [vmem:[#allocation2 + $0x230] sm:$0xff] }
  0x15   :  { %198 = vmatpush.msra.mxu0 %v167_v14  ;;  %2310 = vmatpush.msra.mxu2 %v167_v14  ;;  %v99_v41 = vld [vmem:[#allocation2 + $0x220] sm:$0xff]  ;;  %v37_v45 = vld [vmem:[#allocation2 + $0x30] sm:$0xff]  ;;  %v102_v46 = vld [vmem:[#allocation2 + $0x238] sm:$0xff] }
  0x16   :  { %407 = vmatpush.msra.mxu1 %v183_v15  ;;  %2326 = vmatpush.msra.mxu3 %v183_v15  ;;  %v38_v47 = vld [vmem:[#allocation2 + $0x38] sm:$0xff]  ;;  %v39_v48 = vld [vmem:[#allocation2 + $0x40] sm:$0xff]  ;;  %v40_v50 = vld [vmem:[#allocation2 + $0x48] sm:$0xff] }
  0x17   :  { %199 = vmatpush.msra.mxu0 %v166_v16  ;;  %2311 = vmatpush.msra.mxu2 %v166_v16  ;;  %v103_v49 = vld [vmem:[#allocation2 + $0x240] sm:$0xff]  ;;  %v104_v51 = vld [vmem:[#allocation2 + $0x248] sm:$0xff]  ;;  %v41_v52 = vld [vmem:[#allocation2 + $0x50] sm:$0xff] }
  0x18   :  { %408 = vmatpush.msra.mxu1 %v182_v17  ;;  %2327 = vmatpush.msra.mxu3 %v182_v17  ;;  %v105_v53 = vld [vmem:[#allocation2 + $0x250] sm:$0xff]  ;;  %v42_v54 = vld [vmem:[#allocation2 + $0x58] sm:$0xff]  ;;  %v43_v56 = vld [vmem:[#allocation2 + $0x60] sm:$0xff] }
  0x19   :  { %200 = vmatpush.msra.mxu0 %v165_v18  ;;  %2312 = vmatpush.msra.mxu2 %v165_v18  ;;  %v106_v55 = vld [vmem:[#allocation2 + $0x258] sm:$0xff]  ;;  %v107_v57 = vld [vmem:[#allocation2 + $0x260] sm:$0xff]  ;;  %v44_v58 = vld [vmem:[#allocation2 + $0x68] sm:$0xff] }
  0x1a   :  { %409 = vmatpush.msra.mxu1 %v181_v19  ;;  %2328 = vmatpush.msra.mxu3 %v181_v19  ;;  %v108_v59 = vld [vmem:[#allocation2 + $0x268] sm:$0xff]  ;;  %v109_v60 = vld [vmem:[#allocation2 + $0x270] sm:$0xff]  ;;  %v110_v62 = vld [vmem:[#allocation2 + $0x278] sm:$0xff] }
  0x1b   :  { %201 = vmatpush.msra.mxu0 %v164_v20  ;;  %2313 = vmatpush.msra.mxu2 %v164_v20  ;;  %v45_v61 = vld [vmem:[#allocation2 + $0x70] sm:$0xff]  ;;  %v46_v63 = vld [vmem:[#allocation2 + $0x78] sm:$0xff]  ;;  %v47_v0 = vld [vmem:[#allocation2 + $0x80] sm:$0xff] }
  0x1c   :  { %410 = vmatpush.msra.mxu1 %v180_v21  ;;  %2329 = vmatpush.msra.mxu3 %v180_v21  ;;  %v111_v1 = vld [vmem:[#allocation2 + $0x280] sm:$0xff]  ;;  %v48_v2 = vld [vmem:[#allocation2 + $0x88] sm:$0xff]  ;;  %v49_v4 = vld [vmem:[#allocation2 + $0x90] sm:$0xff] }
  0x1d   :  { %202 = vmatpush.msra.mxu0 %v163_v22  ;;  %2314 = vmatpush.msra.mxu2 %v163_v22  ;;  %v112_v3 = vld [vmem:[#allocation2 + $0x288] sm:$0xff]  ;;  %v113_v5 = vld [vmem:[#allocation2 + $0x290] sm:$0xff]  ;;  %v50_v6 = vld [vmem:[#allocation2 + $0x98] sm:$0xff] }
  0x1e   :  { %411 = vmatpush.msra.mxu1 %v179_v23  ;;  %2330 = vmatpush.msra.mxu3 %v179_v23  ;;  %v114_v7 = vld [vmem:[#allocation2 + $0x298] sm:$0xff]  ;;  %v115_v8 = vld [vmem:[#allocation2 + $0x2a0] sm:$0xff]  ;;  %v116_v10 = vld [vmem:[#allocation2 + $0x2a8] sm:$0xff] }
  0x1f   :  { %203 = vmatpush.msra.mxu0 %v162_v24  ;;  %2315 = vmatpush.msra.mxu2 %v162_v24  ;;  %v51_v9 = vld [vmem:[#allocation2 + $0xa0] sm:$0xff]  ;;  %v52_v11 = vld [vmem:[#allocation2 + $0xa8] sm:$0xff]  ;;  %v53_v12 = vld [vmem:[#allocation2 + $0xb0] sm:$0xff] }
  0x20   :  { %412 = vmatpush.msra.mxu1 %v178_v25  ;;  %2331 = vmatpush.msra.mxu3 %v178_v25  ;;  %v117_v13 = vld [vmem:[#allocation2 + $0x2b0] sm:$0xff]  ;;  %v54_v14 = vld [vmem:[#allocation2 + $0xb8] sm:$0xff]  ;;  %v55_v16 = vld [vmem:[#allocation2 + $0xc0] sm:$0xff] }
  0x21   :  { %204 = vmatpush.msra.mxu0 %v161_v26  ;;  %2316 = vmatpush.msra.mxu2 %v161_v26  ;;  %v118_v15 = vld [vmem:[#allocation2 + $0x2b8] sm:$0xff]  ;;  %v119_v17 = vld [vmem:[#allocation2 + $0x2c0] sm:$0xff]  ;;  %v56_v18 = vld [vmem:[#allocation2 + $0xc8] sm:$0xff] }
  0x22   :  { %413 = vmatpush.msra.mxu1 %v177_v27  ;;  %2332 = vmatpush.msra.mxu3 %v177_v27  ;;  %v120_v19 = vld [vmem:[#allocation2 + $0x2c8] sm:$0xff]  ;;  %v121_v20 = vld [vmem:[#allocation2 + $0x2d0] sm:$0xff]  ;;  %v122_v21 = vld [vmem:[#allocation2 + $0x2d8] sm:$0xff] }
  0x23   :  { %205 = vmatpush.msra.mxu0 %v160_v28  ;;  %2317 = vmatpush.msra.mxu2 %v160_v28  ;;  %v57_v22 = vld [vmem:[#allocation2 + $0xd0] sm:$0xff]  ;;  %v58_v23 = vld [vmem:[#allocation2 + $0xd8] sm:$0xff]  ;;  %v59_v24 = vld [vmem:[#allocation2 + $0xe0] sm:$0xff] }
  0x24   :  { %414 = vmatpush.msra.mxu1 %v176_v29  ;;  %2333 = vmatpush.msra.mxu3 %v176_v29  ;;  %v60_v25 = vld [vmem:[#allocation2 + $0xe8] sm:$0xff]  ;;  %v123_v26 = vld [vmem:[#allocation2 + $0x2e0] sm:$0xff]  ;;  %v61_v29 = vld [vmem:[#allocation2 + $0xf0] sm:$0xff] }
  0x25   :  { %206 = vmatpush.msra.mxu0 %v159_v30  ;;  %2318 = vmatpush.msra.mxu2 %v159_v30  ;;  %v124_v27 = vld [vmem:[#allocation2 + $0x2e8] sm:$0xff]  ;;  %v125_v30 = vld [vmem:[#allocation2 + $0x2f0] sm:$0xff] }
  0x26   :  { %415 = vmatpush.msra.mxu1 %v175_v31  ;;  %2334 = vmatpush.msra.mxu3 %v175_v31  ;;  %v62_v31 = vld [vmem:[#allocation2 + $0xf8] sm:$0xff] }
  0x27   :  { %207 = vmatmul.f32.vlgmr.msra.gmra.mxu0 %v31_v32  ;;  %303 = vmatmul.f32.vlgmr.msra.gmra.mxu2 %v95_v33  ;;  %v126_v33 = vld [vmem:[#allocation2 + $0x2f8] sm:$0xff] }
  0x28   :  { %416 = vmatmul.f32.vlgmr.msra.gmra.mxu1 %v32_v34  ;;  %512 = vmatmul.f32.vlgmr.msra.gmra.mxu3 %v96_v35 }
  0x2f   :  { %210 = vmatmul.f32.gmra.mxu0 %v33_v36  ;;  %306 = vmatmul.f32.gmra.mxu2 %v97_v37 }
  0x30   :  { %419 = vmatmul.f32.gmra.mxu1 %v34_v38  ;;  %515 = vmatmul.f32.gmra.mxu3 %v98_v39 }
  0x37   :  { %213 = vmatmul.f32.gmra.mxu0 %v35_v40  ;;  %309 = vmatmul.f32.gmra.mxu2 %v99_v41 }
  0x38   :  { %422 = vmatmul.f32.gmra.mxu1 %v36_v42  ;;  %518 = vmatmul.f32.gmra.mxu3 %v100_v43  ;;  %v127_v42 = vld [vmem:[#allocation2 + $0x300] sm:$0xff]  ;;  %v128_v43 = vld [vmem:[#allocation2 + $0x308] sm:$0xff] }
  0x3f   :  { %312 = vmatmul.f32.gmra.mxu2 %v101_v44  ;;  %216 = vmatmul.f32.gmra.mxu0 %v37_v45  ;;  %v63_v44 = vld [vmem:[#allocation2 + $0x100] sm:$0xff] }
  0x40   :  { %521 = vmatmul.f32.gmra.mxu3 %v102_v46  ;;  %425 = vmatmul.f32.gmra.mxu1 %v38_v47  ;;  %v64_v46 = vld [vmem:[#allocation2 + $0x108] sm:$0xff] }
  0x47   :  { %219 = vmatmul.f32.gmra.mxu0 %v39_v48  ;;  %315 = vmatmul.f32.gmra.mxu2 %v103_v49 }
  0x48   :  { %428 = vmatmul.f32.gmra.mxu1 %v40_v50  ;;  %524 = vmatmul.f32.gmra.mxu3 %v104_v51 }
  0x4f   :  { %222 = vmatmul.f32.gmra.mxu0 %v41_v52  ;;  %318 = vmatmul.f32.gmra.mxu2 %v105_v53 }
  0x50   :  { %431 = vmatmul.f32.gmra.mxu1 %v42_v54  ;;  %527 = vmatmul.f32.gmra.mxu3 %v106_v55  ;;  %v65_v54 = vld [vmem:[#allocation2 + $0x110] sm:$0xff]  ;;  %v66_v55 = vld [vmem:[#allocation2 + $0x118] sm:$0xff] }
  0x57   :  { %225 = vmatmul.f32.gmra.mxu0 %v43_v56  ;;  %321 = vmatmul.f32.gmra.mxu2 %v107_v57  ;;  %v129_v56 = vld [vmem:[#allocation2 + $0x310] sm:$0xff] }
  0x58   :  { %434 = vmatmul.f32.gmra.mxu1 %v44_v58  ;;  %530 = vmatmul.f32.gmra.mxu3 %v108_v59  ;;  %v130_v58 = vld [vmem:[#allocation2 + $0x318] sm:$0xff] }
  0x5f   :  { %324 = vmatmul.f32.gmra.mxu2 %v109_v60  ;;  %228 = vmatmul.f32.gmra.mxu0 %v45_v61 }
  0x60   :  { %533 = vmatmul.f32.gmra.mxu3 %v110_v62  ;;  %437 = vmatmul.f32.gmra.mxu1 %v46_v63 }
  0x67   :  { %231 = vmatmul.f32.gmra.mxu0 %v47_v0  ;;  %327 = vmatmul.f32.gmra.mxu2 %v111_v1  ;;  %v67_v1 = vld [vmem:[#allocation2 + $0x120] sm:$0xff] }
  0x68   :  { %440 = vmatmul.f32.gmra.mxu1 %v48_v2  ;;  %536 = vmatmul.f32.gmra.mxu3 %v112_v3  ;;  %v131_v2 = vld [vmem:[#allocation2 + $0x320] sm:$0xff]  ;;  %v68_v3 = vld [vmem:[#allocation2 + $0x128] sm:$0xff] }
  0x6f   :  { %234 = vmatmul.f32.gmra.mxu0 %v49_v4  ;;  %330 = vmatmul.f32.gmra.mxu2 %v113_v5  ;;  %v132_v5 = vld [vmem:[#allocation2 + $0x328] sm:$0xff] }
  0x70   :  { %443 = vmatmul.f32.gmra.mxu1 %v50_v6  ;;  %539 = vmatmul.f32.gmra.mxu3 %v114_v7 }
  0x77   :  { %333 = vmatmul.f32.gmra.mxu2 %v115_v8  ;;  %237 = vmatmul.f32.gmra.mxu0 %v51_v9 }
  0x78   :  { %542 = vmatmul.f32.gmra.mxu3 %v116_v10  ;;  %446 = vmatmul.f32.gmra.mxu1 %v52_v11 }
  0x7f   :  { %240 = vmatmul.f32.gmra.mxu0 %v53_v12  ;;  %336 = vmatmul.f32.gmra.mxu2 %v117_v13 }
  0x80   :  { %449 = vmatmul.f32.gmra.mxu1 %v54_v14  ;;  %545 = vmatmul.f32.gmra.mxu3 %v118_v15 }
  0x87   :  { %243 = vmatmul.f32.gmra.mxu0 %v55_v16  ;;  %339 = vmatmul.f32.gmra.mxu2 %v119_v17  ;;  %v133_v16 = vld [vmem:[#allocation2 + $0x330] sm:$0xff]  ;;  %v134_v17 = vld [vmem:[#allocation2 + $0x338] sm:$0xff] }
  0x88   :  { %452 = vmatmul.f32.gmra.mxu1 %v56_v18  ;;  %548 = vmatmul.f32.gmra.mxu3 %v120_v19  ;;  %v69_v18 = vld [vmem:[#allocation2 + $0x130] sm:$0xff]  ;;  %v70_v19 = vld [vmem:[#allocation2 + $0x138] sm:$0xff] }
  0x8f   :  { %342 = vmatmul.f32.gmra.mxu2 %v121_v20  ;;  %246 = vmatmul.f32.gmra.mxu0 %v57_v22 }
  0x90   :  { %551 = vmatmul.f32.gmra.mxu3 %v122_v21  ;;  %455 = vmatmul.f32.gmra.mxu1 %v58_v23 }
  0x97   :  { %345 = vmatmul.f32.gmra.mxu2 %v123_v26  ;;  %249 = vmatmul.f32.gmra.mxu0 %v59_v24  ;;  %v71_v26 = vld [vmem:[#allocation2 + $0x140] sm:$0xff] }
  0x98   :  { %458 = vmatmul.f32.gmra.mxu1 %v60_v25  ;;  %554 = vmatmul.f32.gmra.mxu3 %v124_v27  ;;  %v72_v27 = vld [vmem:[#allocation2 + $0x148] sm:$0xff] }
  0x9f   :  { %348 = vmatmul.f32.gmra.mxu2 %v125_v30  ;;  %252 = vmatmul.f32.gmra.mxu0 %v61_v29  ;;  %v136_v29 = vld [vmem:[#allocation2 + $0x348] sm:$0xff] }
  0xa0   :  { %461 = vmatmul.f32.gmra.mxu1 %v62_v31  ;;  %557 = vmatmul.f32.gmra.mxu3 %v126_v33 }
  0xa4   :  { %v208_v28 = vpop.f32.mrf.mxu0 }
  0xa5   :  { %v417_v32 = vpop.f32.mrf.mxu1 }
  0xa6   :  { %v2658_v34 = vadd.f32 %v417_v32, %v208_v28  ;;  %v135_v28 = vld [vmem:[#allocation2 + $0x340] sm:$0xff] }
  0xa7   :  { %351 = vmatmul.f32.gmra.mxu2 %v127_v42  ;;  %255 = vmatmul.f32.gmra.mxu0 %v63_v44  ;;  %v74_v42 = vld [vmem:[#allocation2 + $0x158] sm:$0xff] }
  0xa8   :  { %609 = vadd.xlane.f32.xlu0 %v2658_v34  ;;  %v808_v35 = vmul.f32 %v2658_v34, %v2658_v34  ;;  %560 = vmatmul.f32.gmra.mxu3 %v128_v43  ;;  %v138_v43 = vld [vmem:[#allocation2 + $0x358] sm:$0xff] }
  0xa9   :  { %464 = vmatmul.f32.gmra.mxu1 %v64_v46 }
  0xaa   :  { %872 = vadd.xlane.f32.xlu1 %v808_v35  ;;  %v304_v36 = vpop.f32.mrf.mxu2 }
  0xab   :  { %v513_v37 = vpop.f32.mrf.mxu3 }
  0xac   :  { %v2663_v38 = vadd.f32 %v513_v37, %v304_v36  ;;  %v211_v39 = vpop.f32.mrf.mxu0 }
  0xad   :  { %v420_v40 = vpop.f32.mrf.mxu1 }
  0xae   :  { %v2665_v41 = vadd.f32 %v420_v40, %v211_v39  ;;  %673 = vadd.xlane.f32.xlu2 %v2663_v38  ;;  %v840_v50 = vmul.f32 %v2663_v38, %v2663_v38  ;;  %v73_v39 = vld [vmem:[#allocation2 + $0x150] sm:$0xff] }
  0xaf   :  { %354 = vmatmul.f32.gmra.mxu2 %v129_v56  ;;  %258 = vmatmul.f32.gmra.mxu0 %v65_v54  ;;  %v137_v40 = vld [vmem:[#allocation2 + $0x350] sm:$0xff] }
  0xb0   :  { %611 = vadd.xlane.f32.xlu0 %v2665_v41  ;;  %v809_v49 = vmul.f32 %v2665_v41, %v2665_v41  ;;  %563 = vmatmul.f32.gmra.mxu3 %v130_v58  ;;  %v139_v58 = vld [vmem:[#allocation2 + $0x360] sm:$0xff] }
  0xb1   :  { %467 = vmatmul.f32.gmra.mxu1 %v66_v55 }
  0xb2   :  { %v307_v45 = vpop.f32.mrf.mxu2 }
  0xb3   :  { %v516_v47 = vpop.f32.mrf.mxu3 }
  0xb4   :  { %v214_v48 = vpop.f32.mrf.mxu0  ;;  %v2676_v53 = vadd.f32 %v516_v47, %v307_v45 }
  0xb5   :  { %v423_v51 = vpop.f32.mrf.mxu1 }
  0xb6   :  { %v2673_v52 = vadd.f32 %v423_v51, %v214_v48  ;;  %874 = vadd.xlane.f32.xlu2 %v809_v49  ;;  %v841_v61 = vmul.f32 %v2676_v53, %v2676_v53 }
  0xb7   :  { %357 = vmatmul.f32.gmra.mxu2 %v131_v2  ;;  %261 = vmatmul.f32.gmra.mxu0 %v67_v1 }
  0xb8   :  { %936 = vadd.xlane.f32.xlu0 %v840_v50  ;;  %613 = vadd.xlane.f32.xlu1 %v2673_v52  ;;  %v810_v8 = vmul.f32 %v2673_v52, %v2673_v52 }
  0xb9   :  { %470 = vmatmul.f32.gmra.mxu1 %v68_v3  ;;  %566 = vmatmul.f32.gmra.mxu3 %v132_v5 }
  0xba   :  { %v310_v57 = vpop.f32.mrf.mxu2 }
  0xbb   :  { %v519_v59 = vpop.f32.mrf.mxu3 }
  0xbc   :  { %v2678_v60 = vadd.f32 %v519_v59, %v310_v57  ;;  %v217_v63 = vpop.f32.mrf.mxu0  ;;  %v140_v59 = vld [vmem:[#allocation2 + $0x368] sm:$0xff] }
  0xbd   :  { %v426_v0 = vpop.f32.mrf.mxu1 }
  0xbe   :  { %v842_v62 = vmul.f32 %v2678_v60, %v2678_v60  ;;  %v2695_v13 = vadd.f32 %v426_v0, %v217_v63 }
  0xbf   :  { %360 = vmatmul.f32.gmra.mxu2 %v133_v16  ;;  %264 = vmatmul.f32.gmra.mxu0 %v69_v18  ;;  %v142_v16 = vld [vmem:[#allocation2 + $0x378] sm:$0xff] }
  0xc0   :  { %675 = vadd.xlane.f32.xlu0 %v2676_v53  ;;  %940 = vadd.xlane.f32.xlu2 %v842_v62  ;;  %v811_v24 = vmul.f32 %v2695_v13, %v2695_v13  ;;  %v76_v62 = vld [vmem:[#allocation2 + $0x168] sm:$0xff] }
  0xc1   :  { %938 = vadd.xlane.f32.xlu1 %v841_v61  ;;  %569 = vmatmul.f32.gmra.mxu3 %v134_v17  ;;  %v75_v61 = vld [vmem:[#allocation2 + $0x160] sm:$0xff] }
  0xc2   :  { %v313_v4 = vpop.f32.mrf.mxu2  ;;  %473 = vmatmul.f32.gmra.mxu1 %v70_v19 }
  0xc3   :  { %v522_v6 = vpop.f32.mrf.mxu3 }
  0xc4   :  { %v2685_v7 = vadd.f32 %v522_v6, %v313_v4  ;;  %v220_v9 = vpop.f32.mrf.mxu0 }
  0xc5   :  { %v429_v10 = vpop.f32.mrf.mxu1 }
  0xc6   :  { %v2691_v11 = vadd.f32 %v429_v10, %v220_v9  ;;  %v843_v12 = vmul.f32 %v2685_v7, %v2685_v7  ;;  %v77_v9 = vld [vmem:[#allocation2 + $0x170] sm:$0xff]  ;;  %v78_v10 = vld [vmem:[#allocation2 + $0x178] sm:$0xff] }
  0xc7   :  { %363 = vmatmul.f32.gmra.mxu2 %v135_v28  ;;  %267 = vmatmul.f32.gmra.mxu0 %v71_v26  ;;  %v143_v28 = vld [vmem:[#allocation2 + $0x380] sm:$0xff] }
  0xc8   :  { %679 = vadd.xlane.f32.xlu2 %v2685_v7  ;;  %876 = vadd.xlane.f32.xlu0 %v810_v8  ;;  %v812_v21 = vmul.f32 %v2691_v11, %v2691_v11 }
  0xc9   :  { %677 = vadd.xlane.f32.xlu1 %v2678_v60  ;;  %572 = vmatmul.f32.gmra.mxu3 %v136_v29  ;;  %v80_v29 = vld [vmem:[#allocation2 + $0x188] sm:$0xff] }
  0xca   :  { %v316_v14 = vpop.f32.mrf.mxu2  ;;  %476 = vmatmul.f32.gmra.mxu1 %v72_v27  ;;  %v79_v27 = vld [vmem:[#allocation2 + $0x180] sm:$0xff] }
  0xcb   :  { %v525_v15 = vpop.f32.mrf.mxu3 }
  0xcc   :  { %v2699_v20 = vadd.f32 %v525_v15, %v316_v14  ;;  %v223_v22 = vpop.f32.mrf.mxu0  ;;  %v2535_v14 = vmov 128.0   ;;  %v141_v15 = vld [vmem:[#allocation2 + $0x370] sm:$0xff] }
  0xcd   :  { %v432_v23 = vpop.f32.mrf.mxu1  ;;  %2344 = vrcp.f32 %v2535_v14  ;;  %v84_v14 = vld [vmem:[#allocation2 + $0x1a8] sm:$0xff] }
  0xce   :  { %v2706_v25 = vadd.f32 %v432_v23, %v223_v22  ;;  %v844_v33 = vmul.f32 %v2699_v20, %v2699_v20 }
  0xcf   :  { %366 = vmatmul.f32.gmra.mxu2 %v137_v40  ;;  %270 = vmatmul.f32.gmra.mxu0 %v73_v39 }
  0xd0   :  { %942 = vadd.xlane.f32.xlu0 %v843_v12  ;;  %617 = vadd.xlane.f32.xlu2 %v2691_v11  ;;  %v813_v32 = vmul.f32 %v2706_v25, %v2706_v25 }
  0xd1   :  { %615 = vadd.xlane.f32.xlu1 %v2695_v13  ;;  %575 = vmatmul.f32.gmra.mxu3 %v138_v43 }
  0xd2   :  { %v319_v30 = vpop.f32.mrf.mxu2  ;;  %479 = vmatmul.f32.gmra.mxu1 %v74_v42 }
  0xd3   :  { %v528_v31 = vpop.f32.mrf.mxu3 }
  0xd4   :  { %v2713_v35 = vadd.f32 %v528_v31, %v319_v30  ;;  %v226_v36 = vpop.f32.mrf.mxu0  ;;  %v144_v31 = vld [vmem:[#allocation2 + $0x388] sm:$0xff] }
  0xd5   :  { %v435_v37 = vpop.f32.mrf.mxu1 }
  0xd6   :  { %v2715_v44 = vadd.f32 %v435_v37, %v226_v36  ;;  %v845_v45 = vmul.f32 %v2713_v35, %v2713_v35 }
  0xd7   :  { %369 = vmatmul.f32.gmra.mxu2 %v139_v58  ;;  %273 = vmatmul.f32.gmra.mxu0 %v75_v61  ;;  %v82_v58 = vld [vmem:[#allocation2 + $0x198] sm:$0xff] }
  0xd8   :  { %681 = vadd.xlane.f32.xlu0 %v2699_v20  ;;  %880 = vadd.xlane.f32.xlu2 %v812_v21  ;;  %v814_v54 = vmul.f32 %v2715_v44, %v2715_v44 }
  0xd9   :  { %878 = vadd.xlane.f32.xlu1 %v811_v24  ;;  %578 = vmatmul.f32.gmra.mxu3 %v140_v59  ;;  %v2345_v24 = vpop.eup %2344 }
  0xda   :  { %v322_v46 = vpop.f32.mrf.mxu2  ;;  %482 = vmatmul.f32.gmra.mxu1 %v76_v62  ;;  %v738_v30 = vmul.f32 128.0, %v2345_v24  ;;  %vm742_vm0 = vweird.f32 %v2345_v24 }
  0xdb   :  { %v531_v47 = vpop.f32.mrf.mxu3 }
  0xdc   :  { %v2720_v48 = vadd.f32 %v531_v47, %v322_v46  ;;  %v229_v49 = vpop.f32.mrf.mxu0  ;;  %v739_v39 = vsub.f32 1.0, %v738_v30  ;;  %v145_v46 = vld [vmem:[#allocation2 + $0x390] sm:$0xff]  ;;  %v146_v47 = vld [vmem:[#allocation2 + $0x398] sm:$0xff] }
  0xdd   :  { %v438_v50 = vpop.f32.mrf.mxu1 }
  0xde   :  { %v846_v51 = vmul.f32 %v2720_v48, %v2720_v48  ;;  %v2728_v55 = vadd.f32 %v438_v50, %v229_v49 }
  0xdf   :  { %276 = vmatmul.f32.gmra.mxu0 %v77_v9  ;;  %372 = vmatmul.f32.gmra.mxu2 %v141_v15 }
  0xe0   :  { %619 = vadd.xlane.f32.xlu2 %v2706_v25  ;;  %882 = vadd.xlane.f32.xlu0 %v813_v32  ;;  %v815_v0 = vmul.f32 %v2728_v55, %v2728_v55 }
  0xe1   :  { %944 = vadd.xlane.f32.xlu1 %v844_v33  ;;  %581 = vmatmul.f32.gmra.mxu3 %v142_v16 }
  0xe2   :  { %v325_v56 = vpop.f32.mrf.mxu2  ;;  %485 = vmatmul.f32.gmra.mxu1 %v78_v10  ;;  %v83_v10 = vld [vmem:[#allocation2 + $0x1a0] sm:$0xff] }
  0xe3   :  { %v534_v57 = vpop.f32.mrf.mxu3 }
  0xe4   :  { %v2730_v63 = vadd.f32 %v534_v57, %v325_v56  ;;  %v232_v1 = vpop.f32.mrf.mxu0  ;;  %v81_v57 = vld [vmem:[#allocation2 + $0x190] sm:$0xff] }
  0xe5   :  { %v441_v2 = vpop.f32.mrf.mxu1 }
  0xe6   :  { %v2735_v3 = vadd.f32 %v441_v2, %v232_v1  ;;  %v847_v8 = vmul.f32 %v2730_v63, %v2730_v63 }
  0xe7   :  { %279 = vmatmul.f32.gmra.mxu0 %v79_v27  ;;  %375 = vmatmul.f32.gmra.mxu2 %v143_v28 }
  0xe8   :  { %946 = vadd.xlane.f32.xlu2 %v845_v45  ;;  %621 = vadd.xlane.f32.xlu0 %v2715_v44  ;;  %v816_v6 = vmul.f32 %v2735_v3, %v2735_v3  ;;  %v740_v45 = vmul.f32 %v2345_v24, %v739_v39 }
  0xe9   :  { %683 = vadd.xlane.f32.xlu1 %v2713_v35  ;;  %584 = vmatmul.f32.gmra.mxu3 %v144_v31 }
  0xea   :  { %v328_v4 = vpop.f32.mrf.mxu2  ;;  %488 = vmatmul.f32.gmra.mxu1 %v80_v29 }
  0xeb   :  { %v537_v5 = vpop.f32.mrf.mxu3 }
  0xec   :  { %v2743_v12 = vadd.f32 %v537_v5, %v328_v4  ;;  %v235_v17 = vpop.f32.mrf.mxu0 }
  0xed   :  { %v444_v18 = vpop.f32.mrf.mxu1 }
  0xee   :  { %v2745_v19 = vadd.f32 %v444_v18, %v235_v17  ;;  %v848_v21 = vmul.f32 %v2743_v12, %v2743_v12 }
  0xef   :  { %378 = vmatmul.f32.gmra.mxu2 %v145_v46  ;;  %282 = vmatmul.f32.gmra.mxu0 %v81_v57  ;;  %v86_v57 = vld [vmem:[#allocation2 + $0x1b8] sm:$0xff] }
  0xf0   :  { %685 = vadd.xlane.f32.xlu2 %v2720_v48  ;;  %948 = vadd.xlane.f32.xlu0 %v846_v51  ;;  %v817_v37 = vmul.f32 %v2745_v19, %v2745_v19 }
  0xf1   :  { %884 = vadd.xlane.f32.xlu1 %v814_v54  ;;  %587 = vmatmul.f32.gmra.mxu3 %v146_v47  ;;  %v741_v54 = vadd.f32 %v2345_v24, %v740_v45 }
  0xf2   :  { %v331_v22 = vpop.f32.mrf.mxu2  ;;  %491 = vmatmul.f32.gmra.mxu1 %v82_v58 }
  0xf3   :  { %v540_v23 = vpop.f32.mrf.mxu3  ;;  %v2768_v61 = vsel %vm742_vm0, %v2345_v24, %v741_v54  ;;  %v85_v54 = vld [vmem:[#allocation2 + $0x1b0] sm:$0xff] }
  0xf4   :  { %v2750_v26 = vadd.f32 %v540_v23, %v331_v22  ;;  %v238_v32 = vpop.f32.mrf.mxu0  ;;  %v147_v22 = vld [vmem:[#allocation2 + $0x3a0] sm:$0xff]  ;;  %v148_v23 = vld [vmem:[#allocation2 + $0x3a8] sm:$0xff] }
  0xf5   :  { %v447_v33 = vpop.f32.mrf.mxu1 }
  0xf6   :  { %v849_v36 = vmul.f32 %v2750_v26, %v2750_v26  ;;  %v2758_v40 = vadd.f32 %v447_v33, %v238_v32 }
  0xf7   :  { %285 = vmatmul.f32.gmra.mxu0 %v83_v10  ;;  %381 = vmatmul.f32.gmra.mxu2 %v147_v22 }
  0xf8   :  { %687 = vadd.xlane.f32.xlu0 %v2730_v63  ;;  %886 = vadd.xlane.f32.xlu2 %v815_v0  ;;  %v818_v50 = vmul.f32 %v2758_v40, %v2758_v40 }
  0xf9   :  { %623 = vadd.xlane.f32.xlu1 %v2728_v55  ;;  %590 = vmatmul.f32.gmra.mxu3 %v148_v23 }
  0xfa   :  { %v334_v42 = vpop.f32.mrf.mxu2  ;;  %494 = vmatmul.f32.gmra.mxu1 %v84_v14 }
  0xfb   :  { %v543_v43 = vpop.f32.mrf.mxu3 }
  0xfc   :  { %v2760_v49 = vadd.f32 %v543_v43, %v334_v42  ;;  %v241_v56 = vpop.f32.mrf.mxu0 }
  0xfd   :  { %v450_v51 = vpop.f32.mrf.mxu1 }
  0xfe   :  { %v2765_v59 = vadd.f32 %v450_v51, %v241_v56  ;;  %v149_v56 = vld [vmem:[#allocation2 + $0x3b0] sm:$0xff] }
  0xff   :  { %288 = vmatmul.f32.gmra.mxu0 %v85_v54  ;;  %384 = vmatmul.f32.gmra.mxu2 %v149_v56  ;;  %v152_v54 = vld [vmem:[#allocation2 + $0x3c8] sm:$0xff] }
 0x100   :  { %625 = vadd.xlane.f32.xlu2 %v2735_v3  ;;  %888 = vadd.xlane.f32.xlu0 %v816_v6  ;;  %v819_v4 = vmul.f32 %v2765_v59, %v2765_v59  ;;  %v850_v6 = vmul.f32 %v2760_v49, %v2760_v49 }
 0x101   :  { %950 = vadd.xlane.f32.xlu1 %v847_v8 }
 0x102   :  { %v337_v62 = vpop.f32.mrf.mxu2  ;;  %497 = vmatmul.f32.gmra.mxu1 %v86_v57 }
 0x103   :  { %v546_v1 = vpop.f32.mrf.mxu3 }
 0x104   :  { %v2781_v16 = vadd.f32 %v546_v1, %v337_v62 }
 0x105   :  { %v453_v17 = vpop.f32.mrf.mxu1 }
 0x106   :  { %v851_v30 = vmul.f32 %v2781_v16, %v2781_v16 }
 0x108   :  { %952 = vadd.xlane.f32.xlu2 %v848_v21  ;;  %627 = vadd.xlane.f32.xlu0 %v2745_v19  ;;  %v244_v21 = vpop.f32.mrf.mxu0 }
 0x109   :  { %689 = vadd.xlane.f32.xlu1 %v2743_v12  ;;  %v2785_v29 = vadd.f32 %v453_v17, %v244_v21 }
 0x10a   :  { %v340_v31 = vpop.f32.mrf.mxu2 }
 0x10b   :  { %v549_v32 = vpop.f32.mrf.mxu3 }
 0x10d   :  { %v456_v39 = vpop.f32.mrf.mxu1 }
 0x110   :  { %691 = vadd.xlane.f32.xlu2 %v2750_v26  ;;  %954 = vadd.xlane.f32.xlu0 %v849_v36  ;;  %v247_v47 = vpop.f32.mrf.mxu0 }
 0x111   :  { %890 = vadd.xlane.f32.xlu1 %v817_v37  ;;  %v2797_v37 = vadd.f32 %v549_v32, %v340_v31  ;;  %v2824_v32 = vld [vmem:[%s4389_s2] ss:$0 sm:$0xff] }
 0x112   :  { %v343_v10 = vpop.f32.mrf.mxu2 }
 0x113   :  { %v852_v1 = vmul.f32 %v2797_v37, %v2797_v37  ;;  %v552_v21 = vpop.f32.mrf.mxu3 }
 0x118   :  { %693 = vadd.xlane.f32.xlu0 %v2760_v49  ;;  %892 = vadd.xlane.f32.xlu2 %v818_v50 }
 0x119   :  { %629 = vadd.xlane.f32.xlu1 %v2758_v40 }
 0x11b   :  { %v610_v0 = vpop.xlane.xlu0 %609 }
 0x11c   :  { %v2771_v2 = vmul.f32 %v2768_v61, %v610_v0 }
 0x11d   :  { %v873_v5 = vpop.xlane.xlu1 %872 }
 0x11e   :  { %v1064_v8 = vmul.f32 %v2771_v2, %v2771_v2  ;;  %v1000_v9 = vmul.f32 %v873_v5, %v2768_v61 }
 0x120   :  { %v1128_v15 = vsub.f32 %v1000_v9, %v1064_v8  ;;  %631 = vadd.xlane.f32.xlu2 %v2765_v59  ;;  %894 = vadd.xlane.f32.xlu0 %v819_v4  ;;  %v150_v4 = vld [vmem:[#allocation2 + $0x3b8] sm:$0xff] }
 0x121   :  { %956 = vadd.xlane.f32.xlu1 %v850_v6  ;;  %v674_v18 = vpop.xlane.xlu2 %673  ;;  %v820_v6 = vmul.f32 %v2785_v29, %v2785_v29  ;;  %593 = vmatmul.f32.gmra.mxu3 %v150_v4 }
 0x122   :  { %v1192_v24 = vmax.f32 %v1128_v15, 0.0  ;;  %v2794_v36 = vmul.f32 %v2768_v61, %v674_v18  ;;  %v2816_v18 = vadd.f32 %v456_v39, %v247_v47 }
 0x123   :  { %v612_v27 = vpop.xlane.xlu0 %611 }
 0x124   :  { %v2783_v28 = vadd.f32 1e-06, %v1192_v24  ;;  %v2791_v33 = vmul.f32 %v2768_v61, %v612_v27  ;;  %v1096_v43 = vmul.f32 %v2794_v36, %v2794_v36  ;;  %4401 = vst [vmem:[#allocation8_spill] sm:$0xff] %v2816_v18  ;;  %v459_v24 = vpop.f32.mrf.mxu1 }
 0x126   :  { %2346 = vrsqrt.f32 %v2783_v28  ;;  %v1065_v45 = vmul.f32 %v2791_v33, %v2791_v33  ;;  %vm1326_vm2 = vweird.f32 %v2783_v28 }
 0x128   :  { %958 = vadd.xlane.f32.xlu2 %v851_v30  ;;  %633 = vadd.xlane.f32.xlu0 %v2785_v29 }
 0x129   :  { %695 = vadd.xlane.f32.xlu1 %v2781_v16  ;;  %v875_v42 = vpop.xlane.xlu2 %874  ;;  %596 = vmatmul.f32.gmra.mxu3 %v152_v54 }
 0x12a   :  { %v1001_v46 = vmul.f32 %v875_v42, %v2768_v61 }
 0x12b   :  { %v937_v50 = vpop.xlane.xlu0 %936  ;;  %v2805_v51 = vpop.xlane.xlu1 %613 }
 0x12c   :  { %v2347_v58 = vpop.eup %2346  ;;  %v1129_v62 = vsub.f32 %v1001_v46, %v1065_v45  ;;  %v1032_v0 = vmul.f32 %v937_v50, %v2768_v61  ;;  %v821_v45 = vmul.f32 %v2816_v18, %v2816_v18  ;;  %v250_v46 = vpop.f32.mrf.mxu0  ;;  %v151_v50 = vld [vmem:[#allocation2 + $0x3c0] sm:$0xff] }
 0x12d   :  { %v1321_v5 = vmul.f32 %v2347_v58, %v2783_v28  ;;  %vm1327_vm1 = vweird.f32 %v2347_v58  ;;  %387 = vmatmul.f32.gmra.mxu2 %v151_v50  ;;  %v2845_v28 = vld [vmem:[%s4389_s2 + $0x1] ss:$0 sm:$0xff] }
 0x12e   :  { %v1193_v8 = vmax.f32 %v1129_v62, 0.0  ;;  %v1160_v9 = vsub.f32 %v1032_v0, %v1096_v43  ;;  %v2830_v43 = vadd.f32 %v552_v21, %v343_v10  ;;  %vm1328_vm3 = vmor %vm1326_vm2, %vm1327_vm1  ;;  %v346_v62 = vpop.f32.mrf.mxu2  ;;  %v1962_v0 = vsub.f32 %v2658_v34, %v2771_v2  ;;  %v87_v2 = vld [vmem:[#allocation2 + $0x1c0] sm:$0xff] }
 0x12f   :  { %v1322_v14 = vmul.f32 %v2347_v58, %v1321_v5  ;;  %291 = vmatmul.f32.gmra.mxu0 %v87_v2 }
 0x130   :  { %v2813_v15 = vadd.f32 1e-06, %v1193_v8  ;;  %v1224_v17 = vmax.f32 %v1160_v9, 0.0  ;;  %697 = vadd.xlane.f32.xlu2 %v2797_v37  ;;  %960 = vadd.xlane.f32.xlu0 %v852_v1  ;;  %v2849_v8 = vadd.f32 %v459_v24, %v250_v46  ;;  %v555_v9 = vpop.f32.mrf.mxu3 }
 0x131   :  { %v1323_v22 = vmul.f32 0.5, %v1322_v14  ;;  %896 = vadd.xlane.f32.xlu1 %v820_v6 }
 0x132   :  { %2348 = vrsqrt.f32 %v2813_v15  ;;  %v2819_v23 = vadd.f32 1e-06, %v1224_v17  ;;  %4402 = vst [vmem:[#allocation9_spill] sm:$0xff] %v2849_v8  ;;  %v2858_v17 = vmul.f32 %v2768_v61, %v2805_v51  ;;  %v822_v50 = vmul.f32 %v2849_v8, %v2849_v8 }
 0x133   :  { %v1324_v27 = vsub.f32 1.5, %v1323_v22  ;;  %v676_v30 = vpop.xlane.xlu0 %675  ;;  %v941_v31 = vpop.xlane.xlu2 %940  ;;  %vm1336_vm5 = vweird.f32 %v2813_v15 }
 0x134   :  { %2350 = vrsqrt.f32 %v2819_v23  ;;  %v2828_v39 = vmul.f32 %v2768_v61, %v676_v30  ;;  %v939_v42 = vpop.xlane.xlu1 %938  ;;  %v2860_v22 = vpop.f32.mrf.mxu1  ;;  %v1034_v2 = vmul.f32 %v941_v31, %v2768_v61  ;;  %v2887_v31 = vadd.f32 %v555_v9, %v346_v62 }
 0x135   :  { %v1325_v47 = vmul.f32 %v2347_v58, %v1324_v27  ;;  %v1033_v57 = vmul.f32 %v939_v42, %v2768_v61  ;;  %v253_v54 = vpop.f32.mrf.mxu0  ;;  %vm1646_vm8 = vweird.f32 %v2819_v23 }
 0x136   :  { %v1097_v56 = vmul.f32 %v2828_v39, %v2828_v39  ;;  %4403 = vst [vmem:[#allocation10_spill] sm:$0xff] %v2887_v31 }
 0x137   :  { %v1329_v1 = vsel %vm1328_vm3, %v2347_v58, %v1325_v47  ;;  %v88_v58 = vld [vmem:[#allocation2 + $0x1c8] sm:$0xff] }
 0x138   :  { %v2840_v4 = vpop.eup %2348  ;;  %v2027_v5 = vmul.f32 %v2824_v32, %v1329_v1  ;;  %v1161_v6 = vsub.f32 %v1033_v57, %v1097_v56  ;;  %699 = vadd.xlane.f32.xlu0 %v2830_v43  ;;  %898 = vadd.xlane.f32.xlu2 %v821_v45  ;;  %v853_v1 = vmul.f32 %v2830_v43, %v2830_v43  ;;  %v558_v9 = vpop.f32.mrf.mxu3 }
 0x139   :  { %v1331_v34 = vmul.f32 %v2840_v4, %v2813_v15  ;;  %635 = vadd.xlane.f32.xlu1 %v2816_v18  ;;  %500 = vmatmul.f32.gmra.mxu1 %v88_v58  ;;  %vm1337_vm4 = vweird.f32 %v2840_v4 }
 0x13a   :  { %v2854_v10 = vpop.eup %2350  ;;  %v2091_v14 = vmul.f32 %v2027_v5, %v1962_v0  ;;  %v1225_v21 = vmax.f32 %v1161_v6, 0.0  ;;  %v153_v5 = vld [vmem:[#allocation2 + $0x3d0] sm:$0xff]  ;;  %v154_v6 = vld [vmem:[#allocation2 + $0x3d8] sm:$0xff]  ;;  %vm1338_vm7 = vmor %vm1336_vm5, %vm1337_vm4 }
 0x13b   :  { %v1332_v24 = vmul.f32 %v2840_v4, %v1331_v34  ;;  %v1641_v27 = vmul.f32 %v2854_v10, %v2819_v23  ;;  %v680_v30 = vpop.xlane.xlu2 %679  ;;  %v877_v42 = vpop.xlane.xlu0 %876  ;;  %v1066_v34 = vmul.f32 %v2858_v17, %v2858_v17  ;;  %390 = vmatmul.f32.gmra.mxu2 %v153_v5  ;;  %599 = vmatmul.f32.gmra.mxu3 %v154_v6  ;;  %vm1647_vm6 = vweird.f32 %v2854_v10  ;;  %v90_v5 = vld [vmem:[#allocation2 + $0x1d8] sm:$0xff] }
 0x13c   :  { %v2156_v45 = vadd.f32 %v2845_v28, %v2091_v14  ;;  %v2866_v46 = vadd.f32 1e-06, %v1225_v21  ;;  %v678_v47 = vpop.xlane.xlu1 %677  ;;  %v1002_v51 = vmul.f32 %v877_v42, %v2768_v61  ;;  %v1994_v6 = vsub.f32 %v2663_v38, %v2794_v36  ;;  %vm1648_vm9 = vmor %vm1646_vm8, %vm1647_vm6 }
 0x13d   :  { %v1333_v56 = vmul.f32 0.5, %v1332_v24  ;;  %v1642_v57 = vmul.f32 %v2854_v10, %v1641_v27  ;;  %v2873_v0 = vmul.f32 %v2768_v61, %v678_v47  ;;  %v349_v27 = vpop.f32.mrf.mxu2  ;;  %v2891_v47 = vmul.f32 %v2768_v61, %v680_v30  ;;  %v465_v30 = vpop.f32.mrf.mxu1 }
 0x13e   :  { %2220 = vst [vmem:[#allocation5] sm:$0xff] %v2156_v45  ;;  %2352 = vrsqrt.f32 %v2866_v46  ;;  %v1130_v24 = vsub.f32 %v1002_v51, %v1066_v34  ;;  %v1963_v51 = vsub.f32 %v2665_v41, %v2791_v33  ;;  %vm1656_vm11 = vweird.f32 %v2866_v46 }
 0x13f   :  { %v1334_v58 = vsub.f32 1.5, %v1333_v56  ;;  %v1643_v14 = vmul.f32 0.5, %v1642_v57  ;;  %v1098_v21 = vmul.f32 %v2873_v0, %v2873_v0  ;;  %v89_v57 = vld [vmem:[#allocation2 + $0x1d0] sm:$0xff]  ;;  %v1099_v38 = vmul.f32 %v2891_v47, %v2891_v47 }
 0x140   :  { %637 = vadd.xlane.f32.xlu2 %v2849_v8  ;;  %900 = vadd.xlane.f32.xlu0 %v822_v50  ;;  %v1194_v62 = vmax.f32 %v1130_v24, 0.0 }
 0x141   :  { %v1335_v42 = vmul.f32 %v2840_v4, %v1334_v58  ;;  %v1644_v45 = vsub.f32 1.5, %v1643_v14  ;;  %v1162_v56 = vsub.f32 %v1034_v2, %v1098_v21  ;;  %962 = vadd.xlane.f32.xlu1 %v853_v1  ;;  %294 = vmatmul.f32.gmra.mxu0 %v89_v57  ;;  %v854_v58 = vmul.f32 %v2887_v31, %v2887_v31  ;;  %v256_v14 = vpop.f32.mrf.mxu0  ;;  %v156_v57 = vld [vmem:[#allocation2 + $0x3e8] sm:$0xff] }
 0x142   :  { %503 = vmatmul.f32.gmra.mxu1 %v90_v5  ;;  %v2911_v23 = vadd.f32 1e-06, %v1194_v62 }
 0x143   :  { %v1339_v50 = vsel %vm1338_vm7, %v2840_v4, %v1335_v42  ;;  %v1645_v1 = vmul.f32 %v2854_v10, %v1644_v45  ;;  %v1226_v41 = vmax.f32 %v1162_v56, 0.0  ;;  %v943_v33 = vpop.xlane.xlu0 %942  ;;  %v618_v36 = vpop.xlane.xlu2 %617  ;;  %v2922_v45 = vadd.f32 %v2860_v22, %v253_v54  ;;  %v155_v56 = vld [vmem:[#allocation2 + $0x3e0] sm:$0xff]  ;;  %602 = vmatmul.f32.gmra.mxu3 %v156_v57 }
 0x144   :  { %v2906_v34 = vpop.eup %2352  ;;  %v2028_v15 = vmul.f32 %v2824_v32, %v1339_v50  ;;  %v1035_v2 = vmul.f32 %v943_v33, %v2768_v61  ;;  %v616_v4 = vpop.xlane.xlu1 %615  ;;  %2354 = vrsqrt.f32 %v2911_v23  ;;  %v2926_v50 = vadd.f32 %v558_v9, %v349_v27  ;;  %393 = vmatmul.f32.gmra.mxu2 %v155_v56  ;;  %v91_v27 = vld [vmem:[#allocation2 + $0x1e0] sm:$0xff]  ;;  %v92_v9 = vld [vmem:[#allocation2 + $0x1e8] sm:$0xff] }
 0x145   :  { %v1649_v21 = vsel %vm1648_vm9, %v2854_v10, %v1645_v1  ;;  %v1651_v24 = vmul.f32 %v2906_v34, %v2866_v46  ;;  %v2919_v42 = vadd.f32 1e-06, %v1226_v41  ;;  %4404 = vst [vmem:[#allocation11_spill] sm:$0xff] %v2922_v45  ;;  %v352_v54 = vpop.f32.mrf.mxu2  ;;  %vm1657_vm10 = vweird.f32 %v2906_v34 }
 0x146   :  { %v2092_v5 = vmul.f32 %v2028_v15, %v1963_v51  ;;  %v2059_v62 = vmul.f32 %v2824_v32, %v1649_v21  ;;  %v1163_v1 = vsub.f32 %v1035_v2, %v1099_v38  ;;  %v2937_v38 = vmul.f32 %v2768_v61, %v618_v36  ;;  %vm1658_vm12 = vmor %vm1656_vm11, %vm1657_vm10 }
 0x147   :  { %v1652_v10 = vmul.f32 %v2906_v34, %v1651_v24  ;;  %2356 = vrsqrt.f32 %v2919_v42  ;;  %v2941_v2 = vadd.f32 %v465_v30, %v256_v14  ;;  %v2947_v57 = vmul.f32 %v2768_v61, %v616_v4 }
 0x148   :  { %v2157_v41 = vadd.f32 %v2845_v28, %v2092_v5  ;;  %v2123_v22 = vmul.f32 %v2059_v62, %v1994_v6  ;;  %964 = vadd.xlane.f32.xlu2 %v854_v58  ;;  %v1227_v15 = vmax.f32 %v1163_v1, 0.0  ;;  %639 = vadd.xlane.f32.xlu0 %v2922_v45  ;;  %v855_v6 = vmul.f32 %v2926_v50, %v2926_v50  ;;  %v561_v58 = vpop.f32.mrf.mxu3 }
 0x149   :  { %v1653_v33 = vmul.f32 0.5, %v1652_v10  ;;  %701 = vadd.xlane.f32.xlu1 %v2887_v31  ;;  %297 = vmatmul.f32.gmra.mxu0 %v91_v27  ;;  %v1995_v30 = vsub.f32 %v2676_v53, %v2828_v39  ;;  %v1068_v14 = vmul.f32 %v2937_v38, %v2937_v38  ;;  %v823_v4 = vmul.f32 %v2922_v45, %v2922_v45  ;;  %v157_v53 = vld [vmem:[#allocation2 + $0x3f0] sm:$0xff]  ;;  %v158_v39 = vld [vmem:[#allocation2 + $0x3f8] sm:$0xff]  ;;  %v259_v46 = vpop.f32.mrf.mxu0 }
 0x14a   :  { %2221 = vst [vmem:[#allocation5 + $0x8] sm:$0xff] %v2157_v41  ;;  %v2188_v21 = vadd.f32 %v2845_v28, %v2123_v22  ;;  %v2944_v56 = vadd.f32 1e-06, %v1227_v15  ;;  %506 = vmatmul.f32.gmra.mxu1 %v92_v9  ;;  %v2949_v36 = vpop.eup %2354  ;;  %v2969_v27 = vadd.f32 %v561_v58, %v352_v54  ;;  %v824_v9 = vmul.f32 %v2941_v2, %v2941_v2 }
 0x14b   :  { %v1654_v24 = vsub.f32 1.5, %v1653_v33  ;;  %v682_v5 = vpop.xlane.xlu0 %681  ;;  %v881_v62 = vpop.xlane.xlu2 %880  ;;  %v1341_v33 = vmul.f32 %v2949_v36, %v2911_v23  ;;  %605 = vmatmul.f32.gmra.mxu3 %v158_v39  ;;  %v1067_v51 = vmul.f32 %v2947_v57, %v2947_v57  ;;  %vm1346_vm13 = vweird.f32 %v2911_v23  ;;  %v94_v39 = vld [vmem:[#allocation2 + $0x1f8] sm:$0xff] }
 0x14c   :  { %2252 = vst [vmem:[#allocation5 + $0x100] sm:$0xff] %v2188_v21  ;;  %v879_v10 = vpop.xlane.xlu1 %878  ;;  %v1004_v1 = vmul.f32 %v881_v62, %v2768_v61  ;;  %2358 = vrsqrt.f32 %v2944_v56  ;;  %v468_v21 = vpop.f32.mrf.mxu1  ;;  %396 = vmatmul.f32.gmra.mxu2 %v157_v53  ;;  %v2989_v54 = vmul.f32 %v2768_v61, %v682_v5  ;;  %vm1347_vm15 = vweird.f32 %v2949_v36 }
 0x14d   :  { %v2958_v41 = vpop.eup %2356  ;;  %v1655_v22 = vmul.f32 %v2906_v34, %v1654_v24  ;;  %v1342_v62 = vmul.f32 %v2949_v36, %v1341_v33  ;;  %v1003_v45 = vmul.f32 %v879_v10, %v2768_v61  ;;  %v2983_v53 = vpop.f32.mrf.mxu2  ;;  %v2986_v33 = vadd.f32 %v468_v21, %v259_v46  ;;  %v93_v10 = vld [vmem:[#allocation2 + $0x1f0] sm:$0xff]  ;;  %vm1348_vm1 = vmor %vm1346_vm13, %vm1347_vm15 }
 0x14e   :  { %v1661_v15 = vmul.f32 %v2958_v41, %v2919_v42  ;;  %v1132_v8 = vsub.f32 %v1004_v1, %v1068_v14  ;;  %vm1667_vm14 = vweird.f32 %v2958_v41  ;;  %vm1666_vm0 = vweird.f32 %v2919_v42 }
 0x14f   :  { %v1659_v24 = vsel %vm1658_vm12, %v2906_v34, %v1655_v22  ;;  %v1343_v34 = vmul.f32 0.5, %v1342_v62  ;;  %v1131_v22 = vsub.f32 %v1003_v45, %v1067_v51  ;;  %vm1668_vm2 = vmor %vm1666_vm0, %vm1667_vm14  ;;  %vm1676_vm4 = vweird.f32 %v2944_v56 }
 0x150   :  { %v2060_v31 = vmul.f32 %v2824_v32, %v1659_v24  ;;  %v1662_v58 = vmul.f32 %v2958_v41, %v1661_v15  ;;  %703 = vadd.xlane.f32.xlu2 %v2926_v50  ;;  %966 = vadd.xlane.f32.xlu0 %v855_v6  ;;  %v1196_v14 = vmax.f32 %v1132_v8, 0.0  ;;  %v564_v1 = vpop.f32.mrf.mxu3  ;;  %v1100_v8 = vmul.f32 %v2989_v54, %v2989_v54 }
 0x151   :  { %902 = vadd.xlane.f32.xlu1 %v823_v4  ;;  %v1344_v62 = vsub.f32 1.5, %v1343_v34  ;;  %v1195_v45 = vmax.f32 %v1131_v22, 0.0  ;;  %300 = vmatmul.f32.gmra.mxu0 %v93_v10 }
 0x152   :  { %v2124_v24 = vmul.f32 %v2060_v31, %v1995_v30  ;;  %v1663_v18 = vmul.f32 0.5, %v1662_v58  ;;  %v2991_v15 = vpop.eup %2358  ;;  %509 = vmatmul.f32.gmra.mxu1 %v94_v39  ;;  %v3003_v58 = vadd.f32 1e-06, %v1196_v14  ;;  %v1996_v39 = vsub.f32 %v2678_v60, %v2873_v0 }
 0x153   :  { %v620_v51 = vpop.xlane.xlu2 %619  ;;  %v883_v6 = vpop.xlane.xlu0 %882  ;;  %v1671_v5 = vmul.f32 %v2991_v15, %v2944_v56  ;;  %v1345_v21 = vmul.f32 %v2949_v36, %v1344_v62  ;;  %v3001_v46 = vadd.f32 1e-06, %v1195_v45  ;;  %v856_v0 = vmul.f32 %v2969_v27, %v2969_v27 }
 0x154   :  { %v2189_v31 = vadd.f32 %v2845_v28, %v2124_v24  ;;  %v1664_v30 = vsub.f32 1.5, %v1663_v18  ;;  %v945_v4 = vpop.xlane.xlu1 %944  ;;  %v3014_v10 = vmul.f32 %v2768_v61, %v620_v51  ;;  %v1005_v42 = vmul.f32 %v883_v6, %v2768_v61  ;;  %v471_v56 = vpop.f32.mrf.mxu1 }
 0x155   :  { %v1036_v34 = vmul.f32 %v945_v4, %v2768_v61  ;;  %v1672_v18 = vmul.f32 %v2991_v15, %v1671_v5  ;;  %v1349_v24 = vsel %vm1348_vm1, %v2949_v36, %v1345_v21  ;;  %2360 = vrsqrt.f32 %v3001_v46 }
 0x156   :  { %2253 = vst [vmem:[#allocation5 + $0x108] sm:$0xff] %v2189_v31  ;;  %v1665_v22 = vmul.f32 %v2958_v41, %v1664_v30  ;;  %v2029_v14 = vmul.f32 %v2824_v32, %v1349_v24  ;;  %2362 = vrsqrt.f32 %v3003_v58  ;;  %v1069_v60 = vmul.f32 %v3014_v10, %v3014_v10  ;;  %v358_v31 = vpop.f32.mrf.mxu2 }
 0x157   :  { %v1673_v62 = vmul.f32 0.5, %v1672_v18  ;;  %v1164_v51 = vsub.f32 %v1036_v34, %v1100_v8  ;;  %v4405_v36 = vsub.f32 %v2673_v52, %v2858_v17  ;;  %vm1677_vm3 = vweird.f32 %v2991_v15 }
 0x158   :  { %v1669_v23 = vsel %vm1668_vm2, %v2958_v41, %v1665_v22  ;;  %904 = vadd.xlane.f32.xlu2 %v824_v9  ;;  %705 = vadd.xlane.f32.xlu0 %v2969_v27  ;;  %v825_v9 = vmul.f32 %v2986_v33, %v2986_v33  ;;  %v1966_v5 = vsub.f32 %v2691_v11, %v2937_v38  ;;  %v567_v24 = vpop.f32.mrf.mxu3  ;;  %vm1678_vm5 = vmor %vm1676_vm4, %vm1677_vm3  ;;  %vm1356_vm7 = vweird.f32 %v3001_v46 }
 0x159   :  { %v2061_v45 = vmul.f32 %v2824_v32, %v1669_v23  ;;  %v2093_v41 = vmul.f32 %v2029_v14, %v4405_v36  ;;  %v1674_v6 = vsub.f32 1.5, %v1673_v62  ;;  %641 = vadd.xlane.f32.xlu1 %v2941_v2  ;;  %v1228_v8 = vmax.f32 %v1164_v51, 0.0 }
 0x15a   :  { %v1133_v4 = vsub.f32 %v1005_v42, %v1069_v60  ;;  %v3045_v18 = vadd.f32 %v564_v1, %v2983_v53  ;;  %v1965_v1 = vsub.f32 %v2695_v13, %v2947_v57  ;;  %vm1366_vm10 = vweird.f32 %v3003_v58 }
 0x15b   :  { %v2125_v30 = vmul.f32 %v2061_v45, %v1996_v39  ;;  %v947_v21 = vpop.xlane.xlu2 %946  ;;  %v622_v34 = vpop.xlane.xlu0 %621  ;;  %v2158_v52 = vadd.f32 %v2845_v28, %v2093_v41  ;;  %v1675_v17 = vmul.f32 %v2991_v15, %v1674_v6  ;;  %v3052_v42 = vadd.f32 1e-06, %v1228_v8 }
 0x15c   :  { %v684_v22 = vpop.xlane.xlu1 %683  ;;  %v3047_v23 = vpop.eup %2360  ;;  %v1197_v14 = vmax.f32 %v1133_v4, 0.0  ;;  %v1037_v36 = vmul.f32 %v947_v21, %v2768_v61 }
 0x15d   :  { %v2190_v39 = vadd.f32 %v2845_v28, %v2125_v30  ;;  %v3055_v62 = vmul.f32 %v2768_v61, %v684_v22  ;;  %v262_v45 = vpop.f32.mrf.mxu0  ;;  %v3057_v51 = vpop.eup %2362  ;;  %2222 = vst [vmem:[#allocation5 + $0x10] sm:$0xff] %v2158_v52  ;;  %v1679_v53 = vsel %vm1678_vm5, %v2991_v15, %v1675_v17  ;;  %v1351_v60 = vmul.f32 %v3047_v23, %v3001_v46 }
 0x15e   :  { %v2062_v41 = vmul.f32 %v2824_v32, %v1679_v53  ;;  %v1361_v6 = vmul.f32 %v3057_v51, %v3003_v58  ;;  %2364 = vrsqrt.f32 %v3052_v42  ;;  %v3069_v30 = vadd.f32 %v567_v24, %v358_v31 }
 0x15f   :  { %2254 = vst [vmem:[#allocation5 + $0x110] sm:$0xff] %v2190_v39  ;;  %v1352_v15 = vmul.f32 %v3047_v23, %v1351_v60  ;;  %v3072_v8 = vadd.f32 1e-06, %v1197_v14  ;;  %v1101_v4 = vmul.f32 %v3055_v62, %v3055_v62  ;;  %v3077_v21 = vadd.f32 %v471_v56, %v262_v45 }
 0x160   :  { %643 = vadd.xlane.f32.xlu2 %v2986_v33  ;;  %v4406_v52 = vsub.f32 %v2685_v7, %v2891_v47  ;;  %v1362_v22 = vmul.f32 %v3057_v51, %v1361_v6  ;;  %v3084_v31 = vmul.f32 %v2768_v61, %v622_v34  ;;  %906 = vadd.xlane.f32.xlu0 %v825_v9  ;;  %vm1357_vm6 = vweird.f32 %v3047_v23 }
 0x161   :  { %v857_v24 = vmul.f32 %v3045_v18, %v3045_v18  ;;  %v1353_v14 = vmul.f32 0.5, %v1352_v15  ;;  %2366 = vrsqrt.f32 %v3072_v8  ;;  %v1165_v45 = vsub.f32 %v1037_v36, %v1101_v4  ;;  %968 = vadd.xlane.f32.xlu1 %v856_v0  ;;  %vm1358_vm9 = vmor %vm1356_vm7, %vm1357_vm6 }
 0x162   :  { %v2126_v17 = vmul.f32 %v2062_v41, %v4406_v52  ;;  %v1363_v47 = vmul.f32 0.5, %v1362_v22  ;;  %v1070_v56 = vmul.f32 %v3084_v31, %v3084_v31  ;;  %v3096_v9 = vmul.f32 %v3069_v30, %v3069_v30  ;;  %v474_v52 = vpop.f32.mrf.mxu1 }
 0x163   :  { %v686_v34 = vpop.xlane.xlu2 %685  ;;  %v949_v53 = vpop.xlane.xlu0 %948  ;;  %v1354_v60 = vsub.f32 1.5, %v1353_v14  ;;  %v1229_v41 = vmax.f32 %v1165_v45, 0.0  ;;  %vm1367_vm8 = vweird.f32 %v3057_v51  ;;  %vm1686_vm13 = vweird.f32 %v3052_v42 }
 0x164   :  { %v2191_v7 = vadd.f32 %v2845_v28, %v2126_v17  ;;  %v3100_v6 = vmul.f32 %v2768_v61, %v686_v34  ;;  %v885_v0 = vpop.xlane.xlu1 %884  ;;  %v3102_v36 = vpop.eup %2364  ;;  %v1364_v15 = vsub.f32 1.5, %v1363_v47  ;;  %v1038_v34 = vmul.f32 %v949_v53, %v2768_v61  ;;  %vm1368_vm11 = vmor %vm1366_vm10, %vm1367_vm8 }
 0x165   :  { %v1006_v4 = vmul.f32 %v885_v0, %v2768_v61  ;;  %v265_v17 = vpop.f32.mrf.mxu0  ;;  %v1355_v22 = vmul.f32 %v3047_v23, %v1354_v60  ;;  %v1681_v14 = vmul.f32 %v3102_v36, %v3052_v42  ;;  %v3110_v45 = vadd.f32 1e-06, %v1229_v41 }
 0x166   :  { %2255 = vst [vmem:[#allocation5 + $0x118] sm:$0xff] %v2191_v7  ;;  %v1365_v46 = vmul.f32 %v3057_v51, %v1364_v15  ;;  %v1102_v7 = vmul.f32 %v3100_v6, %v3100_v6  ;;  %v826_v41 = vmul.f32 %v3077_v21, %v3077_v21  ;;  %vm1687_vm12 = vweird.f32 %v3102_v36 }
 0x167   :  { %v1134_v47 = vsub.f32 %v1006_v4, %v1070_v56  ;;  %v3119_v0 = vpop.eup %2366  ;;  %v1359_v60 = vsel %vm1358_vm9, %v3047_v23, %v1355_v22  ;;  %v1682_v53 = vmul.f32 %v3102_v36, %v1681_v14  ;;  %2368 = vrsqrt.f32 %v3110_v45  ;;  %vm1688_vm14 = vmor %vm1686_vm13, %vm1687_vm12 }
 0x168   :  { %970 = vadd.xlane.f32.xlu2 %v857_v24  ;;  %v2030_v58 = vmul.f32 %v2824_v32, %v1359_v60  ;;  %v1369_v15 = vsel %vm1368_vm11, %v3057_v51, %v1365_v46  ;;  %v1371_v23 = vmul.f32 %v3119_v0, %v3072_v8  ;;  %645 = vadd.xlane.f32.xlu0 %v3077_v21  ;;  %vm1376_vm15 = vweird.f32 %v3072_v8 }
 0x169   :  { %v2031_v4 = vmul.f32 %v2824_v32, %v1369_v15  ;;  %v1683_v22 = vmul.f32 0.5, %v1682_v53  ;;  %v1166_v14 = vsub.f32 %v1038_v34, %v1102_v7  ;;  %v1198_v24 = vmax.f32 %v1134_v47, 0.0  ;;  %707 = vadd.xlane.f32.xlu1 %v3045_v18 }
 0x16a   :  { %v2094_v60 = vmul.f32 %v2030_v58, %v1965_v1  ;;  %v1372_v51 = vmul.f32 %v3119_v0, %v1371_v23  ;;  %v3142_v39 = vadd.f32 %v474_v52, %v265_v17  ;;  %v361_v58 = vpop.f32.mrf.mxu2  ;;  %v570_v52 = vpop.f32.mrf.mxu3  ;;  %vm1377_vm0 = vweird.f32 %v3119_v0 }
 0x16b   :  { %v688_v46 = vpop.xlane.xlu0 %687  ;;  %v887_v56 = vpop.xlane.xlu2 %886  ;;  %v2095_v53 = vmul.f32 %v2031_v4, %v1966_v5  ;;  %v1684_v34 = vsub.f32 1.5, %v1683_v22  ;;  %v1230_v7 = vmax.f32 %v1166_v14, 0.0  ;;  %v3147_v47 = vadd.f32 1e-06, %v1198_v24  ;;  %vm1378_vm1 = vmor %vm1376_vm15, %vm1377_vm0 }
 0x16c   :  { %v624_v15 = vpop.xlane.xlu1 %623  ;;  %v2159_v13 = vadd.f32 %v2845_v28, %v2094_v60  ;;  %v1373_v57 = vmul.f32 0.5, %v1372_v51  ;;  %v477_v4 = vpop.f32.mrf.mxu1  ;;  %v1999_v24 = vsub.f32 %v2713_v35, %v3055_v62  ;;  %v3172_v60 = vadd.f32 %v570_v52, %v361_v58 }
 0x16d   :  { %v3152_v1 = vmul.f32 %v2768_v61, %v624_v15  ;;  %v3154_v17 = vpop.eup %2368  ;;  %v2160_v11 = vadd.f32 %v2845_v28, %v2095_v53  ;;  %v1685_v38 = vmul.f32 %v3102_v36, %v1684_v34  ;;  %v3158_v5 = vadd.f32 1e-06, %v1230_v7  ;;  %v268_v22 = vpop.f32.mrf.mxu0 }
 0x16e   :  { %2370 = vrsqrt.f32 %v3147_v47  ;;  %2223 = vst [vmem:[#allocation5 + $0x18] sm:$0xff] %v2159_v13  ;;  %v1374_v42 = vsub.f32 1.5, %v1373_v57  ;;  %v1691_v23 = vmul.f32 %v3154_v17, %v3110_v45  ;;  %v3185_v7 = vmul.f32 %v2768_v61, %v688_v46 }
 0x16f   :  { %2224 = vst [vmem:[#allocation5 + $0x20] sm:$0xff] %v2160_v11  ;;  %v1689_v14 = vsel %vm1688_vm14, %v3102_v36, %v1685_v38  ;;  %2372 = vrsqrt.f32 %v3158_v5  ;;  %v827_v36 = vmul.f32 %v3142_v39, %v3142_v39  ;;  %v1071_v15 = vmul.f32 %v3152_v1, %v3152_v1 }
 0x170   :  { %709 = vadd.xlane.f32.xlu2 %v3069_v30  ;;  %v2063_v51 = vmul.f32 %v2824_v32, %v1689_v14  ;;  %v1375_v53 = vmul.f32 %v3119_v0, %v1374_v42  ;;  %v1692_v34 = vmul.f32 %v3154_v17, %v1691_v23  ;;  %972 = vadd.xlane.f32.xlu0 %v3096_v9  ;;  %vm1697_vm2 = vweird.f32 %v3154_v17 }
 0x171   :  { %v1007_v13 = vmul.f32 %v887_v56, %v2768_v61  ;;  %908 = vadd.xlane.f32.xlu1 %v826_v41  ;;  %v3190_v57 = vadd.f32 %v477_v4, %v268_v22  ;;  %v4407_v9 = vsub.f32 %v2699_v20, %v2989_v54  ;;  %v1103_v41 = vmul.f32 %v3185_v7, %v3185_v7 }
 0x172   :  { %v1379_v52 = vsel %vm1378_vm1, %v3119_v0, %v1375_v53  ;;  %v1693_v11 = vmul.f32 0.5, %v1692_v34  ;;  %vm1696_vm3 = vweird.f32 %v3110_v45  ;;  %vm1386_vm5 = vweird.f32 %v3147_v47 }
 0x173   :  { %v2127_v58 = vmul.f32 %v2063_v51, %v4407_v9  ;;  %v626_v8 = vpop.xlane.xlu2 %625  ;;  %v889_v46 = vpop.xlane.xlu0 %888  ;;  %v2032_v42 = vmul.f32 %v2824_v32, %v1379_v52  ;;  %v1135_v56 = vsub.f32 %v1007_v13, %v1071_v15  ;;  %v4408_v51 = vsub.f32 %v2706_v25, %v3014_v10  ;;  %vm1698_vm4 = vmor %vm1696_vm3, %vm1697_vm2 }
 0x174   :  { %v3197_v38 = vpop.eup %2370  ;;  %v951_v23 = vpop.xlane.xlu1 %950  ;;  %v3203_v4 = vmul.f32 %v2768_v61, %v626_v8  ;;  %v1694_v54 = vsub.f32 1.5, %v1693_v11  ;;  %v1008_v22 = vmul.f32 %v889_v46, %v2768_v61  ;;  %v828_v8 = vmul.f32 %v3190_v57, %v3190_v57 }
 0x175   :  { %v2192_v20 = vadd.f32 %v2845_v28, %v2127_v58  ;;  %v1381_v0 = vmul.f32 %v3197_v38, %v3147_v47  ;;  %v3209_v14 = vpop.eup %2372  ;;  %v2096_v53 = vmul.f32 %v2032_v42, %v4408_v51  ;;  %v1199_v34 = vmax.f32 %v1135_v56, 0.0  ;;  %v364_v46 = vpop.f32.mrf.mxu2 }
 0x176   :  { %v1039_v15 = vmul.f32 %v951_v23, %v2768_v61  ;;  %v1072_v13 = vmul.f32 %v3203_v4, %v3203_v4  ;;  %v1695_v9 = vmul.f32 %v3154_v17, %v1694_v54  ;;  %v1701_v58 = vmul.f32 %v3209_v14, %v3158_v5  ;;  %v573_v42 = vpop.f32.mrf.mxu3 }
 0x177   :  { %2256 = vst [vmem:[#allocation5 + $0x120] sm:$0xff] %v2192_v20  ;;  %v1382_v52 = vmul.f32 %v3197_v38, %v1381_v0  ;;  %v2161_v11 = vadd.f32 %v2845_v28, %v2096_v53  ;;  %v3225_v25 = vadd.f32 1e-06, %v1199_v34  ;;  %vm1387_vm6 = vweird.f32 %v3197_v38 }
 0x178   :  { %v1167_v10 = vsub.f32 %v1039_v15, %v1103_v41  ;;  %910 = vadd.xlane.f32.xlu2 %v827_v36  ;;  %v1699_v45 = vsel %vm1698_vm4, %v3154_v17, %v1695_v9  ;;  %v1702_v56 = vmul.f32 %v3209_v14, %v1701_v58  ;;  %v1136_v20 = vsub.f32 %v1008_v22, %v1072_v13  ;;  %vm1388_vm9 = vmor %vm1386_vm5, %vm1387_vm6 }
 0x179   :  { %v1383_v23 = vmul.f32 0.5, %v1382_v52  ;;  %711 = vadd.xlane.f32.xlu0 %v3172_v60  ;;  %2225 = vst [vmem:[#allocation5 + $0x28] sm:$0xff] %v2161_v11  ;;  %v2064_v54 = vmul.f32 %v2824_v32, %v1699_v45  ;;  %2374 = vrsqrt.f32 %v3225_v25  ;;  %647 = vadd.xlane.f32.xlu1 %v3142_v39  ;;  %vm1706_vm7 = vweird.f32 %v3158_v5  ;;  %v271_v11 = vpop.f32.mrf.mxu0 }
 0x17a   :  { %v1231_v36 = vmax.f32 %v1167_v10, 0.0  ;;  %v1703_v41 = vmul.f32 0.5, %v1702_v56  ;;  %v1200_v17 = vmax.f32 %v1136_v20, 0.0  ;;  %vm1707_vm8 = vweird.f32 %v3209_v14  ;;  %v480_v10 = vpop.f32.mrf.mxu1 }
 0x17b   :  { %v1384_v0 = vsub.f32 1.5, %v1383_v23  ;;  %v953_v51 = vpop.xlane.xlu2 %952  ;;  %v628_v53 = vpop.xlane.xlu0 %627  ;;  %v2128_v22 = vmul.f32 %v2064_v54, %v1999_v24  ;;  %v859_v24 = vmul.f32 %v3172_v60, %v3172_v60  ;;  %v3262_v23 = vadd.f32 %v573_v42, %v364_v46  ;;  %vm1708_vm10 = vmor %vm1706_vm7, %vm1707_vm8 }
 0x17c   :  { %v3242_v34 = vadd.f32 1e-06, %v1231_v36  ;;  %v690_v15 = vpop.xlane.xlu1 %689  ;;  %v1704_v13 = vsub.f32 1.5, %v1703_v41  ;;  %v3245_v58 = vadd.f32 1e-06, %v1200_v17  ;;  %v1040_v62 = vmul.f32 %v953_v51, %v2768_v61 }
 0x17d   :  { %v1385_v9 = vmul.f32 %v3197_v38, %v1384_v0  ;;  %v3248_v52 = vmul.f32 %v2768_v61, %v690_v15  ;;  %v2193_v35 = vadd.f32 %v2845_v28, %v2128_v22  ;;  %v1968_v47 = vsub.f32 %v2715_v44, %v3084_v31  ;;  %v367_v41 = vpop.f32.mrf.mxu2 }
 0x17e   :  { %2376 = vrsqrt.f32 %v3242_v34  ;;  %v1705_v45 = vmul.f32 %v3209_v14, %v1704_v13  ;;  %v2000_v54 = vsub.f32 %v2720_v48, %v3100_v6  ;;  %v3281_v44 = vadd.f32 %v480_v10, %v271_v11  ;;  %v576_v0 = vpop.f32.mrf.mxu3 }
 0x17f   :  { %v1389_v56 = vsel %vm1388_vm9, %v3197_v38, %v1385_v9  ;;  %2378 = vrsqrt.f32 %v3245_v58  ;;  %v3264_v20 = vpop.eup %2374  ;;  %2257 = vst [vmem:[#allocation5 + $0x128] sm:$0xff] %v2193_v35  ;;  %v1104_v46 = vmul.f32 %v3248_v52, %v3248_v52  ;;  %v2001_v6 = vsub.f32 %v2730_v63, %v3185_v7 }
 0x180   :  { %v2033_v38 = vmul.f32 %v2824_v32, %v1389_v56  ;;  %v1709_v42 = vsel %vm1708_vm10, %v3209_v14, %v1705_v45  ;;  %v1391_v36 = vmul.f32 %v3264_v20, %v3225_v25  ;;  %649 = vadd.xlane.f32.xlu2 %v3190_v57  ;;  %v1969_v14 = vsub.f32 %v2728_v55, %v3152_v1 }
 0x181   :  { %912 = vadd.xlane.f32.xlu0 %v828_v8  ;;  %v2065_v48 = vmul.f32 %v2824_v32, %v1709_v42  ;;  %v1168_v5 = vsub.f32 %v1040_v62, %v1104_v46  ;;  %974 = vadd.xlane.f32.xlu1 %v859_v24  ;;  %v3290_v51 = vmul.f32 %v2768_v61, %v628_v53  ;;  %vm1397_vm11 = vweird.f32 %v3264_v20 }
 0x182   :  { %v2097_v31 = vmul.f32 %v2033_v38, %v1968_v47  ;;  %v1392_v17 = vmul.f32 %v3264_v20, %v1391_v36  ;;  %v860_v15 = vmul.f32 %v3262_v23, %v3262_v23  ;;  %v3305_v45 = vadd.f32 %v576_v0, %v367_v41  ;;  %v483_v56 = vpop.f32.mrf.mxu1  ;;  %v274_v47 = vpop.f32.mrf.mxu0 }
 0x183   :  { %v692_v8 = vpop.xlane.xlu2 %691  ;;  %v955_v22 = vpop.xlane.xlu0 %954  ;;  %v2129_v9 = vmul.f32 %v2065_v48, %v2000_v54  ;;  %v1232_v10 = vmax.f32 %v1168_v5, 0.0  ;;  %v1073_v42 = vmul.f32 %v3290_v51, %v3290_v51  ;;  %vm1396_vm12 = vweird.f32 %v3225_v25 }
 0x184   :  { %v3294_v13 = vpop.eup %2376  ;;  %v2162_v11 = vadd.f32 %v2845_v28, %v2097_v31  ;;  %v3298_v35 = vmul.f32 %v2768_v61, %v692_v8  ;;  %v891_v55 = vpop.xlane.xlu1 %890  ;;  %v1393_v62 = vmul.f32 0.5, %v1392_v17  ;;  %v1041_v24 = vmul.f32 %v955_v22, %v2768_v61  ;;  %vm1398_vm13 = vmor %vm1396_vm12, %vm1397_vm11 }
 0x185   :  { %v3300_v1 = vpop.eup %2378  ;;  %v1711_v53 = vmul.f32 %v3294_v13, %v3242_v34  ;;  %v2194_v54 = vadd.f32 %v2845_v28, %v2129_v9  ;;  %v3310_v46 = vadd.f32 1e-06, %v1232_v10  ;;  %v1970_v28 = vsub.f32 %v2735_v3, %v3203_v4 }
 0x186   :  { %2226 = vst [vmem:[#allocation5 + $0x30] sm:$0xff] %v2162_v11  ;;  %v1401_v38 = vmul.f32 %v3300_v1, %v3245_v58  ;;  %v1394_v36 = vsub.f32 1.5, %v1393_v62  ;;  %v1105_v31 = vmul.f32 %v3298_v35, %v3298_v35  ;;  %v1009_v41 = vmul.f32 %v891_v55, %v2768_v61 }
 0x187   :  { %v1712_v48 = vmul.f32 %v3294_v13, %v1711_v53  ;;  %2258 = vst [vmem:[#allocation5 + $0x130] sm:$0xff] %v2194_v54  ;;  %2380 = vrsqrt.f32 %v3310_v46  ;;  %vm1406_vm14 = vweird.f32 %v3245_v58  ;;  %v861_v11 = vmul.f32 %v3305_v45, %v3305_v45  ;;  %v3375_v58 = vld [vmem:[%s4389_s2] ss:$0 sm:$0xff] }
 0x188   :  { %v1402_v5 = vmul.f32 %v3300_v1, %v1401_v38  ;;  %v1395_v0 = vmul.f32 %v3264_v20, %v1394_v36  ;;  %v1169_v8 = vsub.f32 %v1041_v24, %v1105_v31  ;;  %976 = vadd.xlane.f32.xlu2 %v860_v15  ;;  %v1137_v9 = vsub.f32 %v1009_v41, %v1073_v42 }
 0x189   :  { %v1713_v17 = vmul.f32 0.5, %v1712_v48  ;;  %651 = vadd.xlane.f32.xlu0 %v3281_v44  ;;  %713 = vadd.xlane.f32.xlu1 %v3262_v23  ;;  %vm1717_vm15 = vweird.f32 %v3294_v13  ;;  %vm1407_vm0 = vweird.f32 %v3300_v1  ;;  %vm1716_vm1 = vweird.f32 %v3242_v34 }
 0x18a   :  { %v1403_v22 = vmul.f32 0.5, %v1402_v5  ;;  %v1399_v10 = vsel %vm1398_vm13, %v3264_v20, %v1395_v0  ;;  %v1233_v25 = vmax.f32 %v1169_v8, 0.0  ;;  %v1201_v54 = vmax.f32 %v1137_v9, 0.0  ;;  %vm3344_vm2 = vmor %vm1716_vm1, %vm1717_vm15  ;;  %v370_v0 = vpop.f32.mrf.mxu2  ;;  %v486_v9 = vpop.f32.mrf.mxu1 }
 0x18b   :  { %v1714_v55 = vsub.f32 1.5, %v1713_v17  ;;  %v694_v62 = vpop.xlane.xlu0 %693  ;;  %v893_v15 = vpop.xlane.xlu2 %892  ;;  %v2034_v53 = vmul.f32 %v2824_v32, %v1399_v10  ;;  %v829_v20 = vmul.f32 %v3281_v44, %v3281_v44  ;;  %vm1408_vm3 = vmor %vm1406_vm14, %vm1407_vm0  ;;  %vm1726_vm5 = vweird.f32 %v3310_v46 }
 0x18c   :  { %v1404_v24 = vsub.f32 1.5, %v1403_v22  ;;  %v630_v38 = vpop.xlane.xlu1 %629  ;;  %v3336_v36 = vadd.f32 1e-06, %v1233_v25  ;;  %v3349_v41 = vadd.f32 1e-06, %v1201_v54  ;;  %v579_v17 = vpop.f32.mrf.mxu3  ;;  %v3364_v22 = vadd.f32 %v483_v56, %v274_v47 }
 0x18d   :  { %v1715_v42 = vmul.f32 %v3294_v13, %v1714_v55  ;;  %v3340_v48 = vpop.eup %2380  ;;  %v2098_v31 = vmul.f32 %v2034_v53, %v1969_v14  ;;  %v3352_v34 = vmul.f32 %v2768_v61, %v630_v38  ;;  %v277_v10 = vpop.f32.mrf.mxu0  ;;  %v3369_v55 = vld [vmem:[%s4389_s2 + $0x1] ss:$0 sm:$0xff]  ;;  %v1010_v56 = vmul.f32 %v893_v15, %v2768_v61 }
 0x18e   :  { %v1405_v5 = vmul.f32 %v3300_v1, %v1404_v24  ;;  %v1721_v14 = vmul.f32 %v3340_v48, %v3310_v46  ;;  %2382 = vrsqrt.f32 %v3336_v36  ;;  %v3384_v54 = vmul.f32 %v2768_v61, %v694_v62 }
 0x18f   :  { %v1719_v8 = vsel %vm3344_vm2, %v3294_v13, %v1715_v42  ;;  %v2163_v13 = vadd.f32 %v3369_v55, %v2098_v31  ;;  %2384 = vrsqrt.f32 %v3349_v41  ;;  %v3392_v15 = vadd.f32 %v579_v17, %v370_v0 }
 0x190   :  { %v2066_v25 = vmul.f32 %v3375_v58, %v1719_v8  ;;  %v1409_v53 = vsel %vm1408_vm3, %v3300_v1, %v1405_v5  ;;  %v1722_v24 = vmul.f32 %v3340_v48, %v1721_v14  ;;  %715 = vadd.xlane.f32.xlu2 %v3305_v45  ;;  %v1074_v1 = vmul.f32 %v3352_v34, %v3352_v34 }
 0x191   :  { %v2035_v47 = vmul.f32 %v3375_v58, %v1409_v53  ;;  %978 = vadd.xlane.f32.xlu0 %v861_v11  ;;  %2227 = vst [vmem:[#allocation5 + $0x38] sm:$0xff] %v2163_v13  ;;  %v3394_v42 = vadd.f32 %v486_v9, %v277_v10  ;;  %v1106_v11 = vmul.f32 %v3384_v54, %v3384_v54  ;;  %vm1727_vm4 = vweird.f32 %v3340_v48 }
 0x192   :  { %v2130_v38 = vmul.f32 %v2066_v25, %v2001_v6  ;;  %v1723_v31 = vmul.f32 0.5, %v1722_v24  ;;  %914 = vadd.xlane.f32.xlu1 %v829_v20  ;;  %v830_v63 = vmul.f32 %v3364_v22, %v3364_v22  ;;  %v1138_v6 = vsub.f32 %v1010_v56, %v1074_v1  ;;  %vm1728_vm6 = vmor %vm1726_vm5, %vm1727_vm4 }
 0x193   :  { %v2099_v62 = vmul.f32 %v2035_v47, %v1970_v28  ;;  %v632_v32 = vpop.xlane.xlu2 %631  ;;  %v895_v5 = vpop.xlane.xlu0 %894  ;;  %v2002_v25 = vsub.f32 %v2743_v12, %v3248_v52  ;;  %v1971_v47 = vsub.f32 %v2745_v19, %v3290_v51  ;;  %vm1736_vm7 = vweird.f32 %v3336_v36 }
 0x194   :  { %v2195_v7 = vadd.f32 %v3369_v55, %v2130_v38  ;;  %v957_v0 = vpop.xlane.xlu1 %956  ;;  %v3406_v17 = vmul.f32 %v2768_v61, %v632_v32  ;;  %v3408_v3 = vpop.eup %2382  ;;  %v1724_v28 = vsub.f32 1.5, %v1723_v31  ;;  %v1011_v8 = vmul.f32 %v895_v5, %v2768_v61 }
 0x195   :  { %v2164_v4 = vadd.f32 %v3369_v55, %v2099_v62  ;;  %v1042_v20 = vmul.f32 %v957_v0, %v2768_v61  ;;  %v1731_v14 = vmul.f32 %v3408_v3, %v3336_v36  ;;  %v1202_v9 = vmax.f32 %v1138_v6, 0.0  ;;  %v3417_v13 = vpop.eup %2384  ;;  %v373_v62 = vpop.f32.mrf.mxu2 }
 0x196   :  { %2259 = vst [vmem:[#allocation5 + $0x138] sm:$0xff] %v2195_v7  ;;  %v1075_v10 = vmul.f32 %v3406_v17, %v3406_v17  ;;  %v1725_v53 = vmul.f32 %v3340_v48, %v1724_v28  ;;  %v1411_v38 = vmul.f32 %v3417_v13, %v3349_v41  ;;  %v582_v12 = vpop.f32.mrf.mxu3  ;;  %vm1737_vm8 = vweird.f32 %v3408_v3 }
 0x197   :  { %2228 = vst [vmem:[#allocation5 + $0x40] sm:$0xff] %v2164_v4  ;;  %v1170_v56 = vsub.f32 %v1042_v20, %v1106_v11  ;;  %v1732_v24 = vmul.f32 %v3408_v3, %v1731_v14  ;;  %v3430_v1 = vadd.f32 1e-06, %v1202_v9  ;;  %v831_v11 = vmul.f32 %v3394_v42, %v3394_v42  ;;  %vm1738_vm10 = vmor %vm1736_vm7, %vm1737_vm8 }
 0x198   :  { %v1729_v52 = vsel %vm1728_vm6, %v3340_v48, %v1725_v53  ;;  %v1139_v46 = vsub.f32 %v1011_v8, %v1075_v10  ;;  %916 = vadd.xlane.f32.xlu2 %v830_v63  ;;  %v1412_v7 = vmul.f32 %v3417_v13, %v1411_v38  ;;  %v3443_v63 = vadd.f32 %v582_v12, %v373_v62 }
 0x199   :  { %v1234_v31 = vmax.f32 %v1170_v56, 0.0  ;;  %717 = vadd.xlane.f32.xlu0 %v3392_v15  ;;  %v2067_v32 = vmul.f32 %v3375_v58, %v1729_v52  ;;  %v1733_v5 = vmul.f32 0.5, %v1732_v24  ;;  %2386 = vrsqrt.f32 %v3430_v1  ;;  %v280_v52 = vpop.f32.mrf.mxu0 }
 0x19a   :  { %v1203_v48 = vmax.f32 %v1139_v46, 0.0  ;;  %653 = vadd.xlane.f32.xlu1 %v3364_v22  ;;  %v1413_v8 = vmul.f32 0.5, %v1412_v7  ;;  %vm1417_vm9 = vweird.f32 %v3417_v13  ;;  %v862_v12 = vmul.f32 %v3392_v15, %v3392_v15 }
 0x19b   :  { %v3440_v6 = vadd.f32 1e-06, %v1234_v31  ;;  %v959_v0 = vpop.xlane.xlu2 %958  ;;  %v634_v4 = vpop.xlane.xlu0 %633  ;;  %v2131_v28 = vmul.f32 %v2067_v32, %v2002_v25  ;;  %v1734_v20 = vsub.f32 1.5, %v1733_v5  ;;  %v2003_v25 = vsub.f32 %v2750_v26, %v3298_v35 }
 0x19c   :  { %v696_v14 = vpop.xlane.xlu1 %695  ;;  %v3447_v9 = vadd.f32 1e-06, %v1203_v48  ;;  %v1043_v53 = vmul.f32 %v959_v0, %v2768_v61  ;;  %v1414_v38 = vsub.f32 1.5, %v1413_v8  ;;  %v489_v31 = vpop.f32.mrf.mxu1  ;;  %vm1416_vm11 = vweird.f32 %v3349_v41 }
 0x19d   :  { %2388 = vrsqrt.f32 %v3440_v6  ;;  %v3450_v10 = vmul.f32 %v2768_v61, %v696_v14  ;;  %v2196_v56 = vadd.f32 %v3369_v55, %v2131_v28  ;;  %v1735_v24 = vmul.f32 %v3408_v3, %v1734_v20  ;;  %vm1418_vm12 = vmor %vm1416_vm11, %vm1417_vm9 }
 0x19e   :  { %2390 = vrsqrt.f32 %v3447_v9  ;;  %v1415_v26 = vmul.f32 %v3417_v13, %v1414_v38  ;;  %v2004_v35 = vsub.f32 %v2760_v49, %v3384_v54  ;;  %v1972_v41 = vsub.f32 %v2758_v40, %v3352_v34 }
 0x19f   :  { %v1107_v62 = vmul.f32 %v3450_v10, %v3450_v10  ;;  %v3465_v46 = vpop.eup %2386  ;;  %2260 = vst [vmem:[#allocation5 + $0x140] sm:$0xff] %v2196_v56  ;;  %v1739_v32 = vsel %vm1738_vm10, %v3408_v3, %v1735_v24  ;;  %v3481_v48 = vadd.f32 %v489_v31, %v280_v52  ;;  %v863_v0 = vmul.f32 %v3443_v63, %v3443_v63 }
 0x1a0   :  { %v2068_v36 = vmul.f32 %v3375_v58, %v1739_v32  ;;  %v1421_v5 = vmul.f32 %v3465_v46, %v3430_v1  ;;  %655 = vadd.xlane.f32.xlu2 %v3394_v42  ;;  %v1419_v3 = vsel %vm1418_vm12, %v3417_v13, %v1415_v26  ;;  %v3492_v24 = vmul.f32 %v2768_v61, %v634_v4  ;;  %v585_v4 = vpop.f32.mrf.mxu3 }
 0x1a1   :  { %v1171_v7 = vsub.f32 %v1043_v53, %v1107_v62  ;;  %918 = vadd.xlane.f32.xlu0 %v831_v11  ;;  %v2036_v8 = vmul.f32 %v3375_v58, %v1419_v3  ;;  %vm1427_vm13 = vweird.f32 %v3465_v46  ;;  %vm1426_vm14 = vweird.f32 %v3430_v1 }
 0x1a2   :  { %v2132_v20 = vmul.f32 %v2068_v36, %v2003_v25  ;;  %v1422_v14 = vmul.f32 %v3465_v46, %v1421_v5  ;;  %980 = vadd.xlane.f32.xlu1 %v862_v12  ;;  %v376_v36 = vpop.f32.mrf.mxu2  ;;  %v1076_v3 = vmul.f32 %v3492_v24, %v3492_v24  ;;  %vm1746_vm15 = vweird.f32 %v3440_v6  ;;  %vm1428_vm0 = vmor %vm1426_vm14, %vm1427_vm13 }
 0x1a3   :  { %v3485_v28 = vpop.eup %2388  ;;  %v1235_v53 = vmax.f32 %v1171_v7, 0.0  ;;  %v698_v11 = vpop.xlane.xlu2 %697  ;;  %v2100_v12 = vmul.f32 %v2036_v8, %v1971_v47  ;;  %vm1436_vm2 = vweird.f32 %v3447_v9  ;;  %v832_v34 = vmul.f32 %v3481_v48, %v3481_v48 }
 0x1a4   :  { %v961_v56 = vpop.xlane.xlu0 %960  ;;  %v1741_v13 = vmul.f32 %v3485_v28, %v3440_v6  ;;  %v3495_v38 = vmul.f32 %v2768_v61, %v698_v11  ;;  %v897_v25 = vpop.xlane.xlu1 %896  ;;  %v2197_v31 = vadd.f32 %v3369_v55, %v2132_v20  ;;  %v1423_v32 = vmul.f32 0.5, %v1422_v14 }
 0x1a5   :  { %v1044_v62 = vmul.f32 %v961_v56, %v2768_v61  ;;  %v3498_v52 = vpop.eup %2390  ;;  %v3504_v26 = vadd.f32 1e-06, %v1235_v53  ;;  %v2165_v19 = vadd.f32 %v3369_v55, %v2100_v12  ;;  %v3517_v53 = vadd.f32 %v585_v4, %v376_v36  ;;  %v492_v11 = vpop.f32.mrf.mxu1 }
 0x1a6   :  { %v1742_v5 = vmul.f32 %v3485_v28, %v1741_v13  ;;  %v1431_v7 = vmul.f32 %v3498_v52, %v3447_v9  ;;  %v1108_v20 = vmul.f32 %v3495_v38, %v3495_v38  ;;  %2261 = vst [vmem:[#allocation5 + $0x148] sm:$0xff] %v2197_v31  ;;  %v1424_v51 = vsub.f32 1.5, %v1423_v32  ;;  %v283_v56 = vpop.f32.mrf.mxu0 }
 0x1a7   :  { %2392 = vrsqrt.f32 %v3504_v26  ;;  %2229 = vst [vmem:[#allocation5 + $0x48] sm:$0xff] %v2165_v19  ;;  %v1012_v31 = vmul.f32 %v897_v25, %v2768_v61  ;;  %vm1747_vm1 = vweird.f32 %v3485_v28  ;;  %vm1437_vm3 = vweird.f32 %v3498_v52 }
 0x1a8   :  { %v1743_v47 = vmul.f32 0.5, %v1742_v5  ;;  %v1432_v8 = vmul.f32 %v3498_v52, %v1431_v7  ;;  %v1172_v14 = vsub.f32 %v1044_v62, %v1108_v20  ;;  %v1425_v13 = vmul.f32 %v3465_v46, %v1424_v51  ;;  %982 = vadd.xlane.f32.xlu2 %v863_v0  ;;  %vm1748_vm4 = vmor %vm1746_vm15, %vm1747_vm1 }
 0x1a9   :  { %657 = vadd.xlane.f32.xlu0 %v3481_v48  ;;  %v1140_v1 = vsub.f32 %v1012_v31, %v1076_v3  ;;  %vm1438_vm5 = vmor %vm1436_vm2, %vm1437_vm3  ;;  %vm1756_vm7 = vweird.f32 %v3504_v26 }
 0x1aa   :  { %v1744_v62 = vsub.f32 1.5, %v1743_v47  ;;  %v1433_v12 = vmul.f32 0.5, %v1432_v8  ;;  %v1236_v32 = vmax.f32 %v1172_v14, 0.0  ;;  %v1429_v36 = vsel %vm1428_vm0, %v3465_v46, %v1425_v13  ;;  %719 = vadd.xlane.f32.xlu1 %v3443_v63 }
 0x1ab   :  { %v899_v25 = vpop.xlane.xlu2 %898  ;;  %v2037_v4 = vmul.f32 %v3375_v58, %v1429_v36  ;;  %v1973_v46 = vsub.f32 %v2765_v59, %v3406_v17  ;;  %v1204_v3 = vmax.f32 %v1140_v1, 0.0  ;;  %v864_v8 = vmul.f32 %v3517_v53, %v3517_v53  ;;  %v588_v59 = vpop.f32.mrf.mxu3 }
 0x1ac   :  { %v700_v0 = vpop.xlane.xlu0 %699  ;;  %v1745_v5 = vmul.f32 %v3485_v28, %v1744_v62  ;;  %v1434_v7 = vsub.f32 1.5, %v1433_v12  ;;  %v3533_v20 = vadd.f32 1e-06, %v1236_v32  ;;  %v636_v19 = vpop.xlane.xlu1 %635  ;;  %v1013_v40 = vmul.f32 %v899_v25, %v2768_v61 }
 0x1ad   :  { %v3535_v51 = vpop.eup %2392  ;;  %v3544_v47 = vmul.f32 %v2768_v61, %v636_v19  ;;  %v2101_v14 = vmul.f32 %v2037_v4, %v1972_v41  ;;  %v379_v62 = vpop.f32.mrf.mxu2  ;;  %v3567_v32 = vadd.f32 1e-06, %v1204_v3  ;;  %v3574_v1 = vmul.f32 %v2768_v61, %v700_v0 }
 0x1ae   :  { %v1749_v13 = vsel %vm1748_vm4, %v3485_v28, %v1745_v5  ;;  %v1435_v31 = vmul.f32 %v3498_v52, %v1434_v7  ;;  %v1751_v6 = vmul.f32 %v3535_v51, %v3504_v26  ;;  %2394 = vrsqrt.f32 %v3533_v20  ;;  %v495_v5 = vpop.f32.mrf.mxu1  ;;  %v286_v49 = vpop.f32.mrf.mxu0 }
 0x1af   :  { %v2069_v17 = vmul.f32 %v3375_v58, %v1749_v13  ;;  %v2166_v41 = vadd.f32 %v3369_v55, %v2101_v14  ;;  %v3577_v25 = vadd.f32 %v492_v11, %v283_v56  ;;  %2396 = vrsqrt.f32 %v3567_v32 }
 0x1b0   :  { %v1439_v28 = vsel %vm1438_vm5, %v3498_v52, %v1435_v31  ;;  %v1752_v12 = vmul.f32 %v3535_v51, %v1751_v6  ;;  %721 = vadd.xlane.f32.xlu2 %v3517_v53  ;;  %v1077_v52 = vmul.f32 %v3544_v47, %v3544_v47  ;;  %v1109_v0 = vmul.f32 %v3574_v1, %v3574_v1 }
 0x1b1   :  { %v2133_v9 = vmul.f32 %v2069_v17, %v2004_v35  ;;  %v2038_v36 = vmul.f32 %v3375_v58, %v1439_v28  ;;  %2230 = vst [vmem:[#allocation5 + $0x50] sm:$0xff] %v2166_v41  ;;  %984 = vadd.xlane.f32.xlu0 %v864_v8  ;;  %v3585_v56 = vadd.f32 %v588_v59, %v379_v62  ;;  %vm1757_vm6 = vweird.f32 %v3535_v51 }
 0x1b2   :  { %v1753_v4 = vmul.f32 0.5, %v1752_v12  ;;  %920 = vadd.xlane.f32.xlu1 %v832_v34  ;;  %v1141_v3 = vsub.f32 %v1013_v40, %v1077_v52  ;;  %v833_v6 = vmul.f32 %v3577_v25, %v3577_v25  ;;  %vm1758_vm8 = vmor %vm1756_vm7, %vm1757_vm6  ;;  %v3606_v12 = vadd.f32 %v495_v5, %v286_v49 }
 0x1b3   :  { %v2198_v54 = vadd.f32 %v3369_v55, %v2133_v9  ;;  %v2102_v35 = vmul.f32 %v2038_v36, %v1973_v46  ;;  %v638_v7 = vpop.xlane.xlu2 %637  ;;  %v591_v41 = vpop.f32.mrf.mxu3  ;;  %vm1766_vm9 = vweird.f32 %v3533_v20  ;;  %vm1446_vm13 = vweird.f32 %v3567_v32 }
 0x1b4   :  { %v901_v11 = vpop.xlane.xlu0 %900  ;;  %v1754_v19 = vsub.f32 1.5, %v1753_v4  ;;  %v963_v14 = vpop.xlane.xlu1 %962  ;;  %v3589_v8 = vmul.f32 %v2768_v61, %v638_v7  ;;  %v1205_v17 = vmax.f32 %v1141_v3, 0.0 }
 0x1b5   :  { %v3591_v13 = vpop.eup %2394  ;;  %2262 = vst [vmem:[#allocation5 + $0x150] sm:$0xff] %v2198_v54  ;;  %v2167_v46 = vadd.f32 %v3369_v55, %v2102_v35  ;;  %v1045_v31 = vmul.f32 %v963_v14, %v2768_v61  ;;  %v1014_v40 = vmul.f32 %v901_v11, %v2768_v61  ;;  %v382_v34 = vpop.f32.mrf.mxu2  ;;  %v2005_v54 = vsub.f32 %v2781_v16, %v3450_v10 }
 0x1b6   :  { %v1755_v62 = vmul.f32 %v3535_v51, %v1754_v19  ;;  %v1761_v59 = vmul.f32 %v3591_v13, %v3533_v20  ;;  %v1078_v28 = vmul.f32 %v3589_v8, %v3589_v8  ;;  %v3608_v9 = vpop.eup %2396  ;;  %v3612_v52 = vadd.f32 1e-06, %v1205_v17  ;;  %v289_v14 = vpop.f32.mrf.mxu0 }
 0x1b7   :  { %2231 = vst [vmem:[#allocation5 + $0x58] sm:$0xff] %v2167_v46  ;;  %v1173_v26 = vsub.f32 %v1045_v31, %v1109_v0  ;;  %v1441_v0 = vmul.f32 %v3608_v9, %v3567_v32  ;;  %v834_v10 = vmul.f32 %v3606_v12, %v3606_v12  ;;  %vm1767_vm10 = vweird.f32 %v3591_v13 }
 0x1b8   :  { %v1759_v36 = vsel %vm1758_vm8, %v3535_v51, %v1755_v62  ;;  %v1762_v4 = vmul.f32 %v3591_v13, %v1761_v59  ;;  %922 = vadd.xlane.f32.xlu2 %v833_v6  ;;  %2398 = vrsqrt.f32 %v3612_v52  ;;  %v1142_v49 = vsub.f32 %v1014_v40, %v1078_v28  ;;  %v498_v51 = vpop.f32.mrf.mxu1  ;;  %vm1768_vm11 = vmor %vm1766_vm9, %vm1767_vm10 }
 0x1b9   :  { %v2070_v35 = vmul.f32 %v3375_v58, %v1759_v36  ;;  %v1237_v7 = vmax.f32 %v1173_v26, 0.0  ;;  %723 = vadd.xlane.f32.xlu0 %v3585_v56  ;;  %v1442_v19 = vmul.f32 %v3608_v9, %v1441_v0  ;;  %v3631_v40 = vadd.f32 %v591_v41, %v382_v34 }
 0x1ba   :  { %v1763_v5 = vmul.f32 0.5, %v1762_v4  ;;  %659 = vadd.xlane.f32.xlu1 %v3577_v25  ;;  %v1206_v31 = vmax.f32 %v1142_v49, 0.0  ;;  %vm1447_vm12 = vweird.f32 %v3608_v9  ;;  %v865_v34 = vmul.f32 %v3585_v56, %v3585_v56 }
 0x1bb   :  { %v2134_v11 = vmul.f32 %v2070_v35, %v2005_v54  ;;  %v3622_v3 = vadd.f32 1e-06, %v1237_v7  ;;  %v965_v16 = vpop.xlane.xlu2 %964  ;;  %v1443_v17 = vmul.f32 0.5, %v1442_v19  ;;  %v1974_v54 = vsub.f32 %v2785_v29, %v3492_v24  ;;  %v594_v20 = vpop.f32.mrf.mxu3  ;;  %vm1448_vm14 = vmor %vm1446_vm13, %vm1447_vm12 }
 0x1bc   :  { %v1764_v46 = vsub.f32 1.5, %v1763_v5  ;;  %v702_v6 = vpop.xlane.xlu1 %701  ;;  %v640_v62 = vpop.xlane.xlu0 %639  ;;  %v3634_v28 = vadd.f32 1e-06, %v1206_v31  ;;  %v1046_v4 = vmul.f32 %v965_v16, %v2768_v61  ;;  %v2006_v0 = vsub.f32 %v2797_v37, %v3495_v38 }
 0x1bd   :  { %v2199_v59 = vadd.f32 %v3369_v55, %v2134_v11  ;;  %2400 = vrsqrt.f32 %v3622_v3  ;;  %v3637_v36 = vmul.f32 %v2768_v61, %v702_v6  ;;  %v1444_v35 = vsub.f32 1.5, %v1443_v17  ;;  %v385_v24 = vpop.f32.mrf.mxu2 }
 0x1be   :  { %v1765_v26 = vmul.f32 %v3591_v13, %v1764_v46  ;;  %v3647_v41 = vpop.eup %2398  ;;  %2402 = vrsqrt.f32 %v3634_v28  ;;  %v3662_v38 = vmul.f32 %v2768_v61, %v640_v62  ;;  %v866_v19 = vmul.f32 %v3631_v40, %v3631_v40  ;;  %v3676_v62 = vpop.f32.mrf.mxu0 }
 0x1bf   :  { %2263 = vst [vmem:[#allocation5 + $0x158] sm:$0xff] %v2199_v59  ;;  %v1110_v29 = vmul.f32 %v3637_v36, %v3637_v36  ;;  %v1445_v49 = vmul.f32 %v3608_v9, %v1444_v35  ;;  %v1451_v11 = vmul.f32 %v3647_v41, %v3612_v52  ;;  %v3674_v17 = vadd.f32 %v594_v20, %v385_v24 }
 0x1c0   :  { %v1769_v7 = vsel %vm1768_vm11, %v3591_v13, %v1765_v26  ;;  %661 = vadd.xlane.f32.xlu2 %v3606_v12  ;;  %v3664_v13 = vadd.f32 %v498_v51, %v289_v14  ;;  %v3668_v16 = vpop.f32.mrf.mxu1  ;;  %v1079_v26 = vmul.f32 %v3662_v38, %v3662_v38  ;;  %vm1457_vm15 = vweird.f32 %v3647_v41 }
 0x1c1   :  { %v2071_v5 = vmul.f32 %v3375_v58, %v1769_v7  ;;  %v1174_v37 = vsub.f32 %v1046_v4, %v1110_v29  ;;  %924 = vadd.xlane.f32.xlu0 %v834_v10  ;;  %v1449_v31 = vsel %vm1448_vm14, %v3608_v9, %v1445_v49  ;;  %v1452_v6 = vmul.f32 %v3647_v41, %v1451_v11 }
 0x1c2   :  { %4411 = vst [vmem:[#allocation12_spill] sm:$0xff] %v3664_v13  ;;  %986 = vadd.xlane.f32.xlu1 %v865_v34  ;;  %v2039_v51 = vmul.f32 %v3375_v58, %v1449_v31  ;;  %vm1456_vm0 = vweird.f32 %v3612_v52  ;;  %vm1776_vm3 = vweird.f32 %v3622_v3  ;;  %vm1466_vm5 = vweird.f32 %v3634_v28 }
 0x1c3   :  { %v3670_v46 = vpop.eup %2400  ;;  %v2135_v32 = vmul.f32 %v2071_v5, %v2006_v0  ;;  %v704_v59 = vpop.xlane.xlu2 %703  ;;  %4412 = vst [vmem:[#allocation13_spill] sm:$0xff] %v3674_v17  ;;  %v1238_v14 = vmax.f32 %v1174_v37, 0.0  ;;  %v1453_v0 = vmul.f32 0.5, %v1452_v6  ;;  %vm1458_vm1 = vmor %vm1456_vm0, %vm1457_vm15 }
 0x1c4   :  { %v1771_v10 = vmul.f32 %v3670_v46, %v3622_v3  ;;  %v967_v4 = vpop.xlane.xlu0 %966  ;;  %v903_v35 = vpop.xlane.xlu1 %902  ;;  %v3685_v34 = vmul.f32 %v2768_v61, %v704_v59  ;;  %v2103_v24 = vmul.f32 %v2039_v51, %v1974_v54  ;;  %v2007_v54 = vsub.f32 %v2830_v43, %v3574_v1 }
 0x1c5   :  { %v2200_v9 = vadd.f32 %v3369_v55, %v2135_v32  ;;  %v1047_v7 = vmul.f32 %v967_v4, %v2768_v61  ;;  %v3688_v29 = vpop.eup %2402  ;;  %v3691_v5 = vadd.f32 1e-06, %v1238_v14  ;;  %v1015_v49 = vmul.f32 %v903_v35, %v2768_v61  ;;  %v3703_v59 = vpop.f32.mrf.mxu2  ;;  %v4413_v35 = vld [vmem:[#allocation8_spill] sm:$0xff] }
 0x1c6   :  { %v1772_v20 = vmul.f32 %v3670_v46, %v1771_v10  ;;  %v1454_v11 = vsub.f32 1.5, %v1453_v0  ;;  %v1461_v37 = vmul.f32 %v3688_v29, %v3634_v28  ;;  %v1111_v32 = vmul.f32 %v3685_v34, %v3685_v34  ;;  %v3708_v4 = vpop.f32.mrf.mxu3  ;;  %v4415_v28 = vld [vmem:[#allocation9_spill] sm:$0xff] }
 0x1c7   :  { %2264 = vst [vmem:[#allocation5 + $0x160] sm:$0xff] %v2200_v9  ;;  %v2168_v31 = vadd.f32 %v3369_v55, %v2103_v24  ;;  %2404 = vrsqrt.f32 %v3691_v5  ;;  %v1975_v9 = vsub.f32 %v4413_v35, %v3544_v47  ;;  %vm1777_vm2 = vweird.f32 %v3670_v46 }
 0x1c8   :  { %v1773_v6 = vmul.f32 0.5, %v1772_v20  ;;  %v1455_v51 = vmul.f32 %v3647_v41, %v1454_v11  ;;  %v1462_v10 = vmul.f32 %v3688_v29, %v1461_v37  ;;  %v1175_v14 = vsub.f32 %v1047_v7, %v1111_v32  ;;  %988 = vadd.xlane.f32.xlu2 %v866_v19  ;;  %vm1778_vm4 = vmor %vm1776_vm3, %vm1777_vm2 }
 0x1c9   :  { %2232 = vst [vmem:[#allocation5 + $0x60] sm:$0xff] %v2168_v31  ;;  %v1143_v1 = vsub.f32 %v1015_v49, %v1079_v26  ;;  %663 = vadd.xlane.f32.xlu0 %v3664_v13  ;;  %v867_v24 = vmul.f32 %v3674_v17, %v3674_v17  ;;  %v3723_v49 = vpop.f32.mrf.mxu1  ;;  %vm1467_vm6 = vweird.f32 %v3688_v29  ;;  %v3731_v31 = vpop.f32.mrf.mxu0  ;;  %vm1786_vm9 = vweird.f32 %v3691_v5 }
 0x1ca   :  { %v1774_v43 = vsub.f32 1.5, %v1773_v6  ;;  %v1459_v52 = vsel %vm1458_vm1, %v3647_v41, %v1455_v51  ;;  %v1463_v0 = vmul.f32 0.5, %v1462_v10  ;;  %v1239_v7 = vmax.f32 %v1175_v14, 0.0  ;;  %725 = vadd.xlane.f32.xlu1 %v3631_v40  ;;  %vm1468_vm7 = vmor %vm1466_vm5, %vm1467_vm6 }
 0x1cb   :  { %v905_v19 = vpop.xlane.xlu2 %904  ;;  %v2040_v47 = vmul.f32 %v3375_v58, %v1459_v52  ;;  %v1207_v11 = vmax.f32 %v1143_v1, 0.0  ;;  %v835_v52 = vmul.f32 %v3664_v13, %v3664_v13 }
 0x1cc   :  { %v1775_v20 = vmul.f32 %v3670_v46, %v1774_v43  ;;  %v706_v26 = vpop.xlane.xlu0 %705  ;;  %v1464_v41 = vsub.f32 1.5, %v1463_v0  ;;  %v3729_v37 = vadd.f32 1e-06, %v1239_v7  ;;  %v642_v32 = vpop.xlane.xlu1 %641 }
 0x1cd   :  { %v3733_v6 = vpop.eup %2404  ;;  %v2104_v3 = vmul.f32 %v2040_v47, %v1975_v9  ;;  %v3736_v10 = vadd.f32 1e-06, %v1207_v11  ;;  %v3739_v14 = vmul.f32 %v2768_v61, %v642_v32  ;;  %v3754_v9 = vadd.f32 %v3668_v16, %v3676_v62  ;;  %v3768_v62 = vpop.f32.mrf.mxu2 }
 0x1ce   :  { %v1779_v51 = vsel %vm1778_vm4, %v3670_v46, %v1775_v20  ;;  %v1465_v43 = vmul.f32 %v3688_v29, %v1464_v41  ;;  %v1781_v1 = vmul.f32 %v3733_v6, %v3691_v5  ;;  %2406 = vrsqrt.f32 %v3729_v37 }
 0x1cf   :  { %v2072_v35 = vmul.f32 %v3375_v58, %v1779_v51  ;;  %v2169_v0 = vadd.f32 %v3369_v55, %v2104_v3  ;;  %v1016_v46 = vmul.f32 %v905_v19, %v2768_v61  ;;  %4414 = vst [vmem:[#allocation8_spill] sm:$0xff] %v3754_v9  ;;  %2408 = vrsqrt.f32 %v3736_v10  ;;  %v3771_v3 = vpop.f32.mrf.mxu3 }
 0x1d0   :  { %v1469_v47 = vsel %vm1468_vm7, %v3688_v29, %v1465_v43  ;;  %v1782_v20 = vmul.f32 %v3733_v6, %v1781_v1  ;;  %727 = vadd.xlane.f32.xlu2 %v3674_v17  ;;  %v1976_v11 = vsub.f32 %v4415_v28, %v3589_v8  ;;  %v3764_v19 = vmul.f32 %v2768_v61, %v706_v26 }
 0x1d1   :  { %v2136_v7 = vmul.f32 %v2072_v35, %v2007_v54  ;;  %2233 = vst [vmem:[#allocation5 + $0x68] sm:$0xff] %v2169_v0  ;;  %v2041_v41 = vmul.f32 %v3375_v58, %v1469_v47  ;;  %v1080_v16 = vmul.f32 %v3739_v14, %v3739_v14  ;;  %990 = vadd.xlane.f32.xlu0 %v867_v24  ;;  %vm1787_vm8 = vweird.f32 %v3733_v6 }
 0x1d2   :  { %v1783_v54 = vmul.f32 0.5, %v1782_v20  ;;  %926 = vadd.xlane.f32.xlu1 %v835_v52  ;;  %v1112_v8 = vmul.f32 %v3764_v19, %v3764_v19  ;;  %v836_v52 = vmul.f32 %v3754_v9, %v3754_v9  ;;  %vm1788_vm10 = vmor %vm1786_vm9, %vm1787_vm8  ;;  %vm1796_vm11 = vweird.f32 %v3729_v37 }
 0x1d3   :  { %v2201_v29 = vadd.f32 %v3369_v55, %v2136_v7  ;;  %v644_v32 = vpop.xlane.xlu2 %643  ;;  %v2105_v51 = vmul.f32 %v2041_v41, %v1976_v11  ;;  %v1144_v35 = vsub.f32 %v1016_v46, %v1080_v16  ;;  %vm1476_vm15 = vweird.f32 %v3736_v10 }
 0x1d4   :  { %v3776_v26 = vmul.f32 %v2768_v61, %v644_v32  ;;  %v907_v43 = vpop.xlane.xlu0 %906  ;;  %v1784_v1 = vsub.f32 1.5, %v1783_v54  ;;  %v969_v0 = vpop.xlane.xlu1 %968 }
 0x1d5   :  { %2265 = vst [vmem:[#allocation5 + $0x168] sm:$0xff] %v2201_v29  ;;  %v1017_v24 = vmul.f32 %v907_v43, %v2768_v61  ;;  %v3782_v7 = vpop.eup %2406  ;;  %v2170_v47 = vadd.f32 %v3369_v55, %v2105_v51  ;;  %v1208_v20 = vmax.f32 %v1144_v35, 0.0  ;;  %v1048_v46 = vmul.f32 %v969_v0, %v2768_v61  ;;  %v507_v54 = vpop.f32.mrf.mxu1  ;;  %v4417_v51 = vld [vmem:[#allocation10_spill] sm:$0xff] }
 0x1d6   :  { %v1081_v28 = vmul.f32 %v3776_v26, %v3776_v26  ;;  %v3788_v11 = vpop.eup %2408  ;;  %v1785_v41 = vmul.f32 %v3733_v6, %v1784_v1  ;;  %v1791_v16 = vmul.f32 %v3782_v7, %v3729_v37  ;;  %v3796_v29 = vadd.f32 %v3708_v4, %v3703_v59  ;;  %v298_v32 = vpop.f32.mrf.mxu0  ;;  %v4418_v59 = vld [vmem:[#allocation11_spill] sm:$0xff] }
 0x1d7   :  { %2234 = vst [vmem:[#allocation5 + $0x70] sm:$0xff] %v2170_v47  ;;  %v2008_v35 = vsub.f32 %v4417_v51, %v3637_v36  ;;  %v1471_v43 = vmul.f32 %v3788_v11, %v3736_v10  ;;  %v3804_v5 = vadd.f32 1e-06, %v1208_v20  ;;  %v1176_v1 = vsub.f32 %v1048_v46, %v1112_v8 }
 0x1d8   :  { %4416 = vst [vmem:[#allocation9_spill] sm:$0xff] %v3796_v29  ;;  %v1789_v0 = vsel %vm1788_vm10, %v3733_v6, %v1785_v41  ;;  %v1792_v13 = vmul.f32 %v3782_v7, %v1791_v16  ;;  %v1145_v47 = vsub.f32 %v1017_v24, %v1081_v28  ;;  %928 = vadd.xlane.f32.xlu2 %v836_v52  ;;  %vm1797_vm12 = vweird.f32 %v3782_v7 }
 0x1d9   :  { %v2073_v36 = vmul.f32 %v3375_v58, %v1789_v0  ;;  %v1472_v51 = vmul.f32 %v3788_v11, %v1471_v43  ;;  %2410 = vrsqrt.f32 %v3804_v5  ;;  %v3815_v20 = vadd.f32 %v3723_v49, %v3731_v31  ;;  %729 = vadd.xlane.f32.xlu0 %v3796_v29  ;;  %v394_v49 = vpop.f32.mrf.mxu2  ;;  %v603_v43 = vpop.f32.mrf.mxu3  ;;  %vm1798_vm14 = vmor %vm1796_vm11, %vm1797_vm12 }
 0x1da   :  { %v2009_v6 = vsub.f32 %v2926_v50, %v3685_v34  ;;  %v1793_v8 = vmul.f32 0.5, %v1792_v13  ;;  %v1240_v46 = vmax.f32 %v1176_v1, 0.0  ;;  %v1209_v41 = vmax.f32 %v1145_v47, 0.0  ;;  %665 = vadd.xlane.f32.xlu1 %v3754_v9 }
 0x1db   :  { %4419 = vst [vmem:[#allocation10_spill] sm:$0xff] %v3815_v20  ;;  %v971_v24 = vpop.xlane.xlu2 %970  ;;  %v2137_v52 = vmul.f32 %v2073_v36, %v2008_v35  ;;  %v1473_v28 = vmul.f32 0.5, %v1472_v51  ;;  %vm1477_vm13 = vweird.f32 %v3788_v11  ;;  %v868_v51 = vmul.f32 %v3796_v29, %v3796_v29 }
 0x1dc   :  { %v646_v16 = vpop.xlane.xlu0 %645  ;;  %v1794_v31 = vsub.f32 1.5, %v1793_v8  ;;  %v3824_v50 = vadd.f32 1e-06, %v1240_v46  ;;  %v3826_v13 = vadd.f32 1e-06, %v1209_v41  ;;  %v708_v34 = vpop.xlane.xlu1 %707  ;;  %v1049_v47 = vmul.f32 %v971_v24, %v2768_v61  ;;  %vm1478_vm0 = vmor %vm1476_vm15, %vm1477_vm13 }
 0x1dd   :  { %v2202_v1 = vadd.f32 %v3369_v55, %v2137_v52  ;;  %v1474_v0 = vsub.f32 1.5, %v1473_v28  ;;  %v3830_v35 = vmul.f32 %v2768_v61, %v708_v34  ;;  %v837_v8 = vmul.f32 %v3815_v20, %v3815_v20  ;;  %v510_v10 = vpop.f32.mrf.mxu1 }
 0x1de   :  { %v1795_v36 = vmul.f32 %v3782_v7, %v1794_v31  ;;  %2412 = vrsqrt.f32 %v3824_v50  ;;  %v3859_v31 = vadd.f32 %v3771_v3, %v3768_v62  ;;  %v301_v34 = vpop.f32.mrf.mxu0  ;;  %v3868_v62 = vadd.f32 %v603_v43, %v394_v49 }
 0x1df   :  { %v3839_v46 = vpop.eup %2410  ;;  %2266 = vst [vmem:[#allocation5 + $0x170] sm:$0xff] %v2202_v1  ;;  %v1475_v41 = vmul.f32 %v3788_v11, %v1474_v0  ;;  %2414 = vrsqrt.f32 %v3826_v13  ;;  %v1113_v24 = vmul.f32 %v3830_v35, %v3830_v35  ;;  %v3873_v17 = vadd.f32 %v510_v10, %v301_v34 }
 0x1e0   :  { %v1799_v52 = vsel %vm1798_vm14, %v3782_v7, %v1795_v36  ;;  %v1481_v37 = vmul.f32 %v3839_v46, %v3804_v5  ;;  %667 = vadd.xlane.f32.xlu2 %v3815_v20  ;;  %v3864_v36 = vadd.f32 %v507_v54, %v298_v32  ;;  %vm1487_vm1 = vweird.f32 %v3839_v46 }
 0x1e1   :  { %v2074_v1 = vmul.f32 %v3375_v58, %v1799_v52  ;;  %v1479_v7 = vsel %vm1478_vm0, %v3788_v11, %v1475_v41  ;;  %v1177_v0 = vsub.f32 %v1049_v47, %v1113_v24  ;;  %930 = vadd.xlane.f32.xlu0 %v837_v8  ;;  %v3882_v49 = vmul.f32 %v2768_v61, %v646_v16  ;;  %v397_v41 = vpop.f32.mrf.mxu2  ;;  %v606_v24 = vpop.f32.mrf.mxu3 }
 0x1e2   :  { %v2042_v28 = vmul.f32 %v3375_v58, %v1479_v7  ;;  %v1482_v4 = vmul.f32 %v3839_v46, %v1481_v37  ;;  %992 = vadd.xlane.f32.xlu1 %v868_v51  ;;  %v4420_v58 = vsub.f32 %v4418_v59, %v3662_v38  ;;  %vm1486_vm2 = vweird.f32 %v3804_v5 }
 0x1e3   :  { %v710_v9 = vpop.xlane.xlu2 %709  ;;  %v2138_v3 = vmul.f32 %v2074_v1, %v2009_v6  ;;  %v1241_v20 = vmax.f32 %v1177_v0, 0.0  ;;  %v1082_v16 = vmul.f32 %v3882_v49, %v3882_v49  ;;  %vm1488_vm3 = vmor %vm1486_vm2, %vm1487_vm1  ;;  %v3910_v1 = vadd.f32 %v606_v24, %v397_v41 }
 0x1e4   :  { %v3871_v29 = vmul.f32 %v2768_v61, %v710_v9  ;;  %v973_v52 = vpop.xlane.xlu0 %972  ;;  %v3875_v11 = vpop.eup %2412  ;;  %v2106_v54 = vmul.f32 %v2042_v28, %v4420_v58  ;;  %v1483_v32 = vmul.f32 0.5, %v1482_v4  ;;  %v1978_v28 = vsub.f32 %v2941_v2, %v3739_v14 }
 0x1e5   :  { %v909_v6 = vpop.xlane.xlu1 %908  ;;  %v3884_v43 = vpop.eup %2414  ;;  %v2203_v9 = vadd.f32 %v3369_v55, %v2138_v3  ;;  %v1801_v47 = vmul.f32 %v3875_v11, %v3824_v50  ;;  %v3889_v51 = vadd.f32 1e-06, %v1241_v20  ;;  %v1050_v8 = vmul.f32 %v973_v52, %v2768_v61 }
 0x1e6   :  { %v2171_v38 = vadd.f32 %v3369_v55, %v2106_v54  ;;  %v1484_v59 = vsub.f32 1.5, %v1483_v32  ;;  %v1491_v4 = vmul.f32 %v3884_v43, %v3826_v13  ;;  %v1114_v55 = vmul.f32 %v3871_v29, %v3871_v29  ;;  %v3922_v54 = vld [vmem:[%s4389_s2] ss:$0 sm:$0xff] }
 0x1e7   :  { %2267 = vst [vmem:[#allocation5 + $0x178] sm:$0xff] %v2203_v9  ;;  %v1802_v20 = vmul.f32 %v3875_v11, %v1801_v47  ;;  %2416 = vrsqrt.f32 %v3889_v51  ;;  %v1018_v34 = vmul.f32 %v909_v6, %v2768_v61  ;;  %v838_v7 = vmul.f32 %v3864_v36, %v3864_v36 }
 0x1e8   :  { %2235 = vst [vmem:[#allocation5 + $0x78] sm:$0xff] %v2171_v38  ;;  %v1485_v37 = vmul.f32 %v3839_v46, %v1484_v59  ;;  %v1492_v10 = vmul.f32 %v3884_v43, %v1491_v4  ;;  %v1178_v14 = vsub.f32 %v1050_v8, %v1114_v55  ;;  %733 = vadd.xlane.f32.xlu2 %v3868_v62  ;;  %vm1807_vm4 = vweird.f32 %v3875_v11 }
 0x1e9   :  { %v1803_v2 = vmul.f32 0.5, %v1802_v20  ;;  %v1146_v5 = vsub.f32 %v1018_v34, %v1082_v16  ;;  %669 = vadd.xlane.f32.xlu0 %v3864_v36  ;;  %v839_v58 = vmul.f32 %v3873_v17, %v3873_v17  ;;  %vm1496_vm5 = vweird.f32 %v3826_v13 }
 0x1ea   :  { %v1489_v0 = vsel %vm1488_vm3, %v3839_v46, %v1485_v37  ;;  %v1493_v3 = vmul.f32 0.5, %v1492_v10  ;;  %731 = vadd.xlane.f32.xlu1 %v3859_v31  ;;  %v1242_v46 = vmax.f32 %v1178_v14, 0.0  ;;  %vm1497_vm6 = vweird.f32 %v3884_v43 }
 0x1eb   :  { %v911_v52 = vpop.xlane.xlu2 %910  ;;  %v2043_v32 = vmul.f32 %v3922_v54, %v1489_v0  ;;  %v1804_v6 = vsub.f32 1.5, %v1803_v2  ;;  %v1210_v8 = vmax.f32 %v1146_v5, 0.0  ;;  %vm1806_vm7 = vweird.f32 %v3824_v50  ;;  %vm1498_vm9 = vmor %vm1496_vm5, %vm1497_vm6 }
 0x1ec   :  { %v712_v9 = vpop.xlane.xlu0 %711  ;;  %v1494_v47 = vsub.f32 1.5, %v1493_v3  ;;  %v3930_v41 = vadd.f32 1e-06, %v1242_v46  ;;  %vm1808_vm8 = vmor %vm1806_vm7, %vm1807_vm4  ;;  %v1019_v34 = vmul.f32 %v911_v52, %v2768_v61  ;;  %v4421_v5 = vsub.f32 %v2969_v27, %v3764_v19 }
 0x1ed   :  { %v648_v38 = vpop.xlane.xlu1 %647  ;;  %v2417_v59 = vpop.eup %2416  ;;  %v2107_v4 = vmul.f32 %v2043_v32, %v1978_v28  ;;  %v1805_v16 = vmul.f32 %v3875_v11, %v1804_v6  ;;  %v3934_v55 = vadd.f32 1e-06, %v1210_v8  ;;  %v3942_v28 = vld [vmem:[%s4389_s2 + $0x1] ss:$0 sm:$0xff]  ;;  %v3959_v13 = vmul.f32 %v2768_v61, %v712_v9 }
 0x1ee   :  { %v1495_v24 = vmul.f32 %v3884_v43, %v1494_v47  ;;  %v1811_v20 = vmul.f32 %v2417_v59, %v3889_v51  ;;  %v3937_v37 = vmul.f32 %v2768_v61, %v648_v38  ;;  %2418 = vrsqrt.f32 %v3930_v41 }
 0x1ef   :  { %v2172_v10 = vadd.f32 %v3942_v28, %v2107_v4  ;;  %v1809_v50 = vsel %vm1808_vm8, %v3875_v11, %v1805_v16  ;;  %2420 = vrsqrt.f32 %v3934_v55  ;;  %v1979_v11 = vsub.f32 %v2986_v33, %v3776_v26 }
 0x1f0   :  { %v2075_v2 = vmul.f32 %v3922_v54, %v1809_v50  ;;  %v1499_v14 = vsel %vm1498_vm9, %v3884_v43, %v1495_v24  ;;  %v1812_v0 = vmul.f32 %v2417_v59, %v1811_v20  ;;  %934 = vadd.xlane.f32.xlu2 %v839_v58  ;;  %v1083_v43 = vmul.f32 %v3937_v37, %v3937_v37 }
 0x1f1   :  { %2236 = vst [vmem:[#allocation5 + $0x80] sm:$0xff] %v2172_v10  ;;  %v2044_v3 = vmul.f32 %v3922_v54, %v1499_v14  ;;  %735 = vadd.xlane.f32.xlu0 %v3910_v1  ;;  %vm1817_vm10 = vweird.f32 %v2417_v59  ;;  %v1115_v33 = vmul.f32 %v3959_v13, %v3959_v13  ;;  %v870_v16 = vmul.f32 %v3868_v62, %v3868_v62 }
 0x1f2   :  { %v2139_v52 = vmul.f32 %v2075_v2, %v4421_v5  ;;  %v1813_v32 = vmul.f32 0.5, %v1812_v0  ;;  %932 = vadd.xlane.f32.xlu1 %v838_v7  ;;  %v1147_v47 = vsub.f32 %v1019_v34, %v1083_v43  ;;  %vm1816_vm11 = vweird.f32 %v3889_v51 }
 0x1f3   :  { %v2108_v6 = vmul.f32 %v2044_v3, %v1979_v11  ;;  %v650_v26 = vpop.xlane.xlu2 %649  ;;  %vm1818_vm12 = vmor %vm1816_vm11, %vm1817_vm10  ;;  %v869_v0 = vmul.f32 %v3859_v31, %v3859_v31  ;;  %v2011_v11 = vsub.f32 %v3045_v18, %v3830_v35  ;;  %vm1826_vm13 = vweird.f32 %v3930_v41 }
 0x1f4   :  { %v913_v46 = vpop.xlane.xlu0 %912  ;;  %v2204_v58 = vadd.f32 %v3942_v28, %v2139_v52  ;;  %v1814_v9 = vsub.f32 1.5, %v1813_v32  ;;  %v3971_v19 = vmul.f32 %v2768_v61, %v650_v26  ;;  %v2419_v8 = vpop.eup %2418  ;;  %v1211_v50 = vmax.f32 %v1147_v47, 0.0 }
 0x1f5   :  { %v975_v27 = vpop.xlane.xlu1 %974  ;;  %v2173_v38 = vadd.f32 %v3942_v28, %v2108_v6  ;;  %v1020_v4 = vmul.f32 %v913_v46, %v2768_v61  ;;  %v2421_v24 = vpop.eup %2420  ;;  %v1821_v10 = vmul.f32 %v2419_v8, %v3930_v41  ;;  %vm1827_vm14 = vweird.f32 %v2419_v8 }
 0x1f6   :  { %v1051_v7 = vmul.f32 %v975_v27, %v2768_v61  ;;  %2268 = vst [vmem:[#allocation5 + $0x180] sm:$0xff] %v2204_v58  ;;  %v1815_v20 = vmul.f32 %v2417_v59, %v1814_v9  ;;  %v1501_v34 = vmul.f32 %v2421_v24, %v3934_v55  ;;  %v1084_v14 = vmul.f32 %v3971_v19, %v3971_v19  ;;  %vm1828_vm0 = vmor %vm1826_vm13, %vm1827_vm14 }
 0x1f7   :  { %2237 = vst [vmem:[#allocation5 + $0x88] sm:$0xff] %v2173_v38  ;;  %v1822_v51 = vmul.f32 %v2419_v8, %v1821_v10  ;;  %v3988_v5 = vadd.f32 1e-06, %v1211_v50  ;;  %vm1507_vm15 = vweird.f32 %v2421_v24  ;;  %vm1506_vm1 = vweird.f32 %v3934_v55 }
 0x1f8   :  { %v1179_v2 = vsub.f32 %v1051_v7, %v1115_v33  ;;  %v1819_v3 = vsel %vm1818_vm12, %v2417_v59, %v1815_v20  ;;  %v1502_v32 = vmul.f32 %v2421_v24, %v1501_v34  ;;  %v1148_v6 = vsub.f32 %v1020_v4, %v1084_v14  ;;  %994 = vadd.xlane.f32.xlu2 %v869_v0  ;;  %vm1508_vm2 = vmor %vm1506_vm1, %vm1507_vm15 }
 0x1f9   :  { %v2076_v52 = vmul.f32 %v3922_v54, %v1819_v3  ;;  %v1823_v33 = vmul.f32 0.5, %v1822_v51  ;;  %2422 = vrsqrt.f32 %v3988_v5  ;;  %996 = vadd.xlane.f32.xlu0 %v870_v16  ;;  %v2012_v14 = vsub.f32 %v3069_v30, %v3871_v29 }
 0x1fa   :  { %v1243_v43 = vmax.f32 %v1179_v2, 0.0  ;;  %671 = vadd.xlane.f32.xlu1 %v3873_v17  ;;  %v1503_v46 = vmul.f32 0.5, %v1502_v32  ;;  %v1212_v18 = vmax.f32 %v1148_v6, 0.0  ;;  %v871_v2 = vmul.f32 %v3910_v1, %v3910_v1 }
 0x1fb   :  { %v2140_v26 = vmul.f32 %v2076_v52, %v2011_v11  ;;  %v977_v35 = vpop.xlane.xlu2 %976  ;;  %v1824_v9 = vsub.f32 1.5, %v1823_v33  ;;  %v1980_v55 = vsub.f32 %v3077_v21, %v3882_v49  ;;  %vm1516_vm4 = vweird.f32 %v3988_v5 }
 0x1fc   :  { %v3993_v58 = vadd.f32 1e-06, %v1243_v43  ;;  %v652_v59 = vpop.xlane.xlu0 %651  ;;  %v1504_v38 = vsub.f32 1.5, %v1503_v46  ;;  %v3998_v4 = vadd.f32 1e-06, %v1212_v18  ;;  %v1052_v20 = vmul.f32 %v977_v35, %v2768_v61 }
 0x1fd   :  { %v714_v47 = vpop.xlane.xlu1 %713  ;;  %v2205_v27 = vadd.f32 %v3942_v28, %v2140_v26  ;;  %v1825_v7 = vmul.f32 %v2419_v8, %v1824_v9  ;;  %v4018_v52 = vmul.f32 %v2768_v61, %v652_v59 }
 0x1fe   :  { %2424 = vrsqrt.f32 %v3993_v58  ;;  %v4001_v16 = vmul.f32 %v2768_v61, %v714_v47  ;;  %v1505_v10 = vmul.f32 %v2421_v24, %v1504_v38  ;;  %vm1836_vm7 = vweird.f32 %v3993_v58 }
 0x1ff   :  { %2269 = vst [vmem:[#allocation5 + $0x188] sm:$0xff] %v2205_v27  ;;  %v2423_v41 = vpop.eup %2422  ;;  %v1829_v50 = vsel %vm1828_vm0, %v2419_v8, %v1825_v7  ;;  %2426 = vrsqrt.f32 %v3998_v4  ;;  %v1085_v46 = vmul.f32 %v4018_v52, %v4018_v52  ;;  %vm1526_vm8 = vweird.f32 %v3998_v4 }
 0x200   :  { %v1116_v34 = vmul.f32 %v4001_v16, %v4001_v16  ;;  %v2077_v0 = vmul.f32 %v3922_v54, %v1829_v50  ;;  %v1509_v11 = vsel %vm1508_vm2, %v2421_v24, %v1505_v10  ;;  %v1511_v3 = vmul.f32 %v2423_v41, %v3988_v5 }
 0x201   :  { %v2045_v8 = vmul.f32 %v3922_v54, %v1509_v11  ;;  %vm1517_vm3 = vweird.f32 %v2423_v41 }
 0x202   :  { %v1180_v51 = vsub.f32 %v1052_v20, %v1116_v34  ;;  %998 = vadd.xlane.f32.xlu1 %v871_v2  ;;  %v2141_v43 = vmul.f32 %v2077_v0, %v2012_v14  ;;  %v1512_v6 = vmul.f32 %v2423_v41, %v1511_v3  ;;  %v1981_v3 = vsub.f32 %v3142_v39, %v3937_v37  ;;  %vm1518_vm5 = vmor %vm1516_vm4, %vm1517_vm3 }
 0x203   :  { %v716_v33 = vpop.xlane.xlu2 %715  ;;  %v2109_v29 = vmul.f32 %v2045_v8, %v1980_v55 }
 0x204   :  { %v2425_v32 = vpop.eup %2424  ;;  %v979_v30 = vpop.xlane.xlu0 %978  ;;  %v1244_v26 = vmax.f32 %v1180_v51, 0.0  ;;  %v2206_v21 = vadd.f32 %v3942_v28, %v2141_v43  ;;  %v1513_v49 = vmul.f32 0.5, %v1512_v6  ;;  %v4025_v18 = vmul.f32 %v2768_v61, %v716_v33 }
 0x205   :  { %v1831_v24 = vmul.f32 %v2425_v32, %v3993_v58  ;;  %v1053_v35 = vmul.f32 %v979_v30, %v2768_v61  ;;  %v915_v59 = vpop.xlane.xlu1 %914  ;;  %v2427_v9 = vpop.eup %2426  ;;  %v2174_v47 = vadd.f32 %v3942_v28, %v2109_v29  ;;  %vm1837_vm6 = vweird.f32 %v2425_v32 }
 0x206   :  { %v4029_v38 = vadd.f32 1e-06, %v1244_v26  ;;  %v1021_v7 = vmul.f32 %v915_v59, %v2768_v61  ;;  %2270 = vst [vmem:[#allocation5 + $0x190] sm:$0xff] %v2206_v21  ;;  %v1514_v20 = vsub.f32 1.5, %v1513_v49  ;;  %v1521_v10 = vmul.f32 %v2427_v9, %v3998_v4  ;;  %vm1838_vm9 = vmor %vm1836_vm7, %vm1837_vm6 }
 0x207   :  { %v1832_v27 = vmul.f32 %v2425_v32, %v1831_v24  ;;  %v1117_v50 = vmul.f32 %v4025_v18, %v4025_v18  ;;  %2238 = vst [vmem:[#allocation5 + $0x90] sm:$0xff] %v2174_v47  ;;  %vm1527_vm10 = vweird.f32 %v2427_v9  ;;  %v2013_v49 = vsub.f32 %v3172_v60, %v3959_v13 }
 0x208   :  { %2428 = vrsqrt.f32 %v4029_v38  ;;  %v1515_v2 = vmul.f32 %v2423_v41, %v1514_v20  ;;  %v1522_v14 = vmul.f32 %v2427_v9, %v1521_v10  ;;  %v1149_v11 = vsub.f32 %v1021_v7, %v1085_v46  ;;  %vm1528_vm11 = vmor %vm1526_vm8, %vm1527_vm10 }
 0x209   :  { %v1833_v34 = vmul.f32 0.5, %v1832_v27  ;;  %v1181_v0 = vsub.f32 %v1053_v35, %v1117_v50  ;;  %v1982_v27 = vsub.f32 %v3190_v57, %v3971_v19  ;;  %vm1846_vm13 = vweird.f32 %v4029_v38 }
 0x20a   :  { %v1519_v8 = vsel %vm1518_vm5, %v2423_v41, %v1515_v2  ;;  %v1523_v51 = vmul.f32 0.5, %v1522_v14  ;;  %v1213_v6 = vmax.f32 %v1149_v11, 0.0 }
 0x20b   :  { %v1834_v55 = vsub.f32 1.5, %v1833_v34  ;;  %v1245_v43 = vmax.f32 %v1181_v0, 0.0  ;;  %v917_v30 = vpop.xlane.xlu2 %916  ;;  %v2046_v5 = vmul.f32 %v3922_v54, %v1519_v8 }
 0x20c   :  { %v718_v33 = vpop.xlane.xlu0 %717  ;;  %v1524_v24 = vsub.f32 1.5, %v1523_v51  ;;  %v4044_v37 = vadd.f32 1e-06, %v1213_v6  ;;  %v1022_v57 = vmul.f32 %v917_v30, %v2768_v61 }
 0x20d   :  { %v1835_v29 = vmul.f32 %v2425_v32, %v1834_v55  ;;  %v4042_v39 = vadd.f32 1e-06, %v1245_v43  ;;  %v654_v41 = vpop.xlane.xlu1 %653  ;;  %v2110_v46 = vmul.f32 %v2046_v5, %v1981_v3  ;;  %v4059_v13 = vmul.f32 %v2768_v61, %v718_v33 }
 0x20e   :  { %v2429_v26 = vpop.eup %2428  ;;  %v1525_v59 = vmul.f32 %v2427_v9, %v1524_v24  ;;  %v4062_v10 = vmul.f32 %v2768_v61, %v654_v41  ;;  %vm1536_vm3 = vweird.f32 %v4044_v37 }
 0x20f   :  { %v1839_v21 = vsel %vm1838_vm9, %v2425_v32, %v1835_v29  ;;  %v1841_v58 = vmul.f32 %v2429_v26, %v4029_v38  ;;  %v2175_v47 = vadd.f32 %v3942_v28, %v2110_v46  ;;  %2430 = vrsqrt.f32 %v4042_v39 }
 0x210   :  { %v2078_v35 = vmul.f32 %v3922_v54, %v1839_v21  ;;  %v1529_v32 = vsel %vm1528_vm11, %v2427_v9, %v1525_v59  ;;  %2432 = vrsqrt.f32 %v4044_v37  ;;  %v1118_v2 = vmul.f32 %v4059_v13, %v4059_v13 }
 0x211   :  { %v1842_v20 = vmul.f32 %v2429_v26, %v1841_v58  ;;  %2239 = vst [vmem:[#allocation5 + $0x98] sm:$0xff] %v2175_v47  ;;  %v2047_v60 = vmul.f32 %v3922_v54, %v1529_v32  ;;  %v1086_v14 = vmul.f32 %v4062_v10, %v4062_v10  ;;  %vm1847_vm12 = vweird.f32 %v2429_v26 }
 0x212   :  { %v2142_v7 = vmul.f32 %v2078_v35, %v2013_v49  ;;  %vm1848_vm14 = vmor %vm1846_vm13, %vm1847_vm12  ;;  %v2014_v21 = vsub.f32 %v3262_v23, %v4001_v16  ;;  %vm1856_vm15 = vweird.f32 %v4042_v39 }
 0x213   :  { %v1843_v4 = vmul.f32 0.5, %v1842_v20  ;;  %v656_v50 = vpop.xlane.xlu2 %655  ;;  %v2111_v9 = vmul.f32 %v2047_v60, %v1982_v27  ;;  %v1150_v43 = vsub.f32 %v1022_v57, %v1086_v14 }
 0x214   :  { %v2207_v19 = vadd.f32 %v3942_v28, %v2142_v7  ;;  %v919_v34 = vpop.xlane.xlu0 %918  ;;  %v4071_v0 = vmul.f32 %v2768_v61, %v656_v50 }
 0x215   :  { %v1844_v11 = vsub.f32 1.5, %v1843_v4  ;;  %v981_v3 = vpop.xlane.xlu1 %980  ;;  %v1023_v55 = vmul.f32 %v919_v34, %v2768_v61  ;;  %v2431_v8 = vpop.eup %2430  ;;  %v2176_v51 = vadd.f32 %v3942_v28, %v2111_v9  ;;  %v1214_v41 = vmax.f32 %v1150_v43, 0.0 }
 0x216   :  { %2271 = vst [vmem:[#allocation5 + $0x198] sm:$0xff] %v2207_v19  ;;  %v1054_v6 = vmul.f32 %v981_v3, %v2768_v61  ;;  %v1087_v33 = vmul.f32 %v4071_v0, %v4071_v0  ;;  %v2433_v30 = vpop.eup %2432  ;;  %v1851_v29 = vmul.f32 %v2431_v8, %v4042_v39  ;;  %vm1857_vm0 = vweird.f32 %v2431_v8 }
 0x217   :  { %v1845_v5 = vmul.f32 %v2429_v26, %v1844_v11  ;;  %2240 = vst [vmem:[#allocation5 + $0xa0] sm:$0xff] %v2176_v51  ;;  %v1531_v24 = vmul.f32 %v2433_v30, %v4044_v37  ;;  %v4084_v27 = vadd.f32 1e-06, %v1214_v41  ;;  %vm1537_vm1 = vweird.f32 %v2433_v30  ;;  %vm1858_vm2 = vmor %vm1856_vm15, %vm1857_vm0 }
 0x218   :  { %v1182_v46 = vsub.f32 %v1054_v6, %v1118_v2  ;;  %v1852_v35 = vmul.f32 %v2431_v8, %v1851_v29  ;;  %v1151_v59 = vsub.f32 %v1023_v55, %v1087_v33  ;;  %vm1538_vm4 = vmor %vm1536_vm3, %vm1537_vm1  ;;  %v2015_v43 = vsub.f32 %v3305_v45, %v4025_v18 }
 0x219   :  { %v1849_v49 = vsel %vm1848_vm14, %v2429_v26, %v1845_v5  ;;  %v1532_v47 = vmul.f32 %v2433_v30, %v1531_v24  ;;  %2434 = vrsqrt.f32 %v4084_v27  ;;  %v1983_v5 = vsub.f32 %v3281_v44, %v4018_v52 }
 0x21a   :  { %v2079_v58 = vmul.f32 %v3922_v54, %v1849_v49  ;;  %v1246_v38 = vmax.f32 %v1182_v46, 0.0  ;;  %v1853_v7 = vmul.f32 0.5, %v1852_v35  ;;  %v1215_v32 = vmax.f32 %v1151_v59, 0.0 }
 0x21b   :  { %v983_v20 = vpop.xlane.xlu2 %982  ;;  %v1533_v19 = vmul.f32 0.5, %v1532_v47  ;;  %vm1546_vm6 = vweird.f32 %v4084_v27 }
 0x21c   :  { %v658_v60 = vpop.xlane.xlu0 %657  ;;  %v2143_v57 = vmul.f32 %v2079_v58, %v2014_v21  ;;  %v1854_v23 = vsub.f32 1.5, %v1853_v7  ;;  %v4088_v16 = vadd.f32 1e-06, %v1246_v38  ;;  %v4090_v26 = vadd.f32 1e-06, %v1215_v32 }
 0x21d   :  { %v720_v4 = vpop.xlane.xlu1 %719  ;;  %v1534_v34 = vsub.f32 1.5, %v1533_v19  ;;  %v1055_v2 = vmul.f32 %v983_v20, %v2768_v61 }
 0x21e   :  { %v2208_v50 = vadd.f32 %v3942_v28, %v2143_v57  ;;  %v4094_v9 = vmul.f32 %v2768_v61, %v720_v4  ;;  %v1855_v14 = vmul.f32 %v2431_v8, %v1854_v23  ;;  %2436 = vrsqrt.f32 %v4088_v16 }
 0x21f   :  { %v1535_v11 = vmul.f32 %v2433_v30, %v1534_v34  ;;  %2438 = vrsqrt.f32 %v4090_v26  ;;  %v2435_v51 = vpop.eup %2434  ;;  %v1984_v34 = vsub.f32 %v3364_v22, %v4062_v10  ;;  %vm1556_vm9 = vweird.f32 %v4090_v26 }
 0x220   :  { %2272 = vst [vmem:[#allocation5 + $0x1a0] sm:$0xff] %v2208_v50  ;;  %v1119_v3 = vmul.f32 %v4094_v9, %v4094_v9  ;;  %v1859_v55 = vsel %vm1858_vm2, %v2431_v8, %v1855_v14  ;;  %v1541_v29 = vmul.f32 %v2435_v51, %v4084_v27  ;;  %vm1547_vm5 = vweird.f32 %v2435_v51 }
 0x221   :  { %v2080_v6 = vmul.f32 %v3922_v54, %v1859_v55  ;;  %v1539_v33 = vsel %vm1538_vm4, %v2433_v30, %v1535_v11  ;;  %v4117_v30 = vmul.f32 %v2768_v61, %v658_v60  ;;  %v2016_v50 = vsub.f32 %v3392_v15, %v4059_v13  ;;  %vm1548_vm7 = vmor %vm1546_vm6, %vm1547_vm5 }
 0x222   :  { %v1183_v39 = vsub.f32 %v1055_v2, %v1119_v3  ;;  %v2048_v37 = vmul.f32 %v3922_v54, %v1539_v33  ;;  %v1542_v18 = vmul.f32 %v2435_v51, %v1541_v29  ;;  %vm1866_vm11 = vweird.f32 %v4088_v16 }
 0x223   :  { %v722_v24 = vpop.xlane.xlu2 %721  ;;  %v2144_v41 = vmul.f32 %v2080_v6, %v2015_v43  ;;  %v1088_v20 = vmul.f32 %v4117_v30, %v4117_v30 }
 0x224   :  { %v1247_v8 = vmax.f32 %v1183_v39, 0.0  ;;  %v4114_v46 = vmul.f32 %v2768_v61, %v722_v24  ;;  %v985_v21 = vpop.xlane.xlu0 %984  ;;  %v2437_v49 = vpop.eup %2436  ;;  %v2112_v45 = vmul.f32 %v2048_v37, %v1983_v5  ;;  %v1543_v7 = vmul.f32 0.5, %v1542_v18 }
 0x225   :  { %v921_v35 = vpop.xlane.xlu1 %920  ;;  %v2439_v59 = vpop.eup %2438  ;;  %v2209_v44 = vadd.f32 %v3942_v28, %v2144_v41  ;;  %v1861_v52 = vmul.f32 %v2437_v49, %v4088_v16  ;;  %v1056_v47 = vmul.f32 %v985_v21, %v2768_v61  ;;  %vm1867_vm8 = vweird.f32 %v2437_v49 }
 0x226   :  { %v4121_v58 = vadd.f32 1e-06, %v1247_v8  ;;  %v2177_v38 = vadd.f32 %v3942_v28, %v2112_v45  ;;  %v1551_v32 = vmul.f32 %v2439_v59, %v4090_v26  ;;  %v1120_v57 = vmul.f32 %v4114_v46, %v4114_v46  ;;  %vm1868_vm12 = vmor %vm1866_vm11, %vm1867_vm8 }
 0x227   :  { %2273 = vst [vmem:[#allocation5 + $0x1a8] sm:$0xff] %v2209_v44  ;;  %v1862_v60 = vmul.f32 %v2437_v49, %v1861_v52  ;;  %v1544_v19 = vsub.f32 1.5, %v1543_v7  ;;  %v1024_v4 = vmul.f32 %v921_v35, %v2768_v61  ;;  %vm1557_vm10 = vweird.f32 %v2439_v59 }
 0x228   :  { %2440 = vrsqrt.f32 %v4121_v58  ;;  %2241 = vst [vmem:[#allocation5 + $0xa8] sm:$0xff] %v2177_v38  ;;  %v1552_v23 = vmul.f32 %v2439_v59, %v1551_v32  ;;  %v1184_v14 = vsub.f32 %v1056_v47, %v1120_v57  ;;  %vm1558_vm13 = vmor %vm1556_vm9, %vm1557_vm10  ;;  %v1985_v47 = vsub.f32 %v3394_v42, %v4071_v0 }
 0x229   :  { %v1863_v2 = vmul.f32 0.5, %v1862_v60  ;;  %v1545_v11 = vmul.f32 %v2435_v51, %v1544_v19  ;;  %v1152_v55 = vsub.f32 %v1024_v4, %v1088_v20  ;;  %vm1876_vm15 = vweird.f32 %v4121_v58 }
 0x22a   :  { %v1553_v3 = vmul.f32 0.5, %v1552_v23  ;;  %v1248_v33 = vmax.f32 %v1184_v14, 0.0 }
 0x22b   :  { %v923_v43 = vpop.xlane.xlu2 %922  ;;  %v1864_v6 = vsub.f32 1.5, %v1863_v2  ;;  %v1549_v5 = vsel %vm1548_vm7, %v2435_v51, %v1545_v11  ;;  %v1216_v13 = vmax.f32 %v1152_v55, 0.0 }
 0x22c   :  { %v724_v39 = vpop.xlane.xlu0 %723  ;;  %v1554_v15 = vsub.f32 1.5, %v1553_v3  ;;  %v2049_v37 = vmul.f32 %v3922_v54, %v1549_v5  ;;  %v4140_v27 = vadd.f32 1e-06, %v1248_v33  ;;  %v1025_v16 = vmul.f32 %v923_v43, %v2768_v61 }
 0x22d   :  { %v660_v22 = vpop.xlane.xlu1 %659  ;;  %v1865_v29 = vmul.f32 %v2437_v49, %v1864_v6  ;;  %v4143_v8 = vadd.f32 1e-06, %v1216_v13  ;;  %v4160_v26 = vmul.f32 %v2768_v61, %v724_v39 }
 0x22e   :  { %v2441_v10 = vpop.eup %2440  ;;  %v1555_v24 = vmul.f32 %v2439_v59, %v1554_v15  ;;  %v4146_v51 = vmul.f32 %v2768_v61, %v660_v22  ;;  %v2113_v21 = vmul.f32 %v2049_v37, %v1984_v34  ;;  %2442 = vrsqrt.f32 %v4140_v27 }
 0x22f   :  { %v1871_v41 = vmul.f32 %v2441_v10, %v4121_v58  ;;  %v1869_v45 = vsel %vm1868_vm12, %v2437_v49, %v1865_v29  ;;  %2444 = vrsqrt.f32 %v4143_v8  ;;  %vm1877_vm14 = vweird.f32 %v2441_v10 }
 0x230   :  { %v2081_v18 = vmul.f32 %v3922_v54, %v1869_v45  ;;  %v1559_v35 = vsel %vm1558_vm13, %v2439_v59, %v1555_v24  ;;  %v2178_v52 = vadd.f32 %v3942_v28, %v2113_v21  ;;  %v1089_v32 = vmul.f32 %v4146_v51, %v4146_v51  ;;  %vm1878_vm0 = vmor %vm1876_vm15, %vm1877_vm14 }
 0x231   :  { %v1872_v44 = vmul.f32 %v2441_v10, %v1871_v41  ;;  %v2050_v49 = vmul.f32 %v3922_v54, %v1559_v35  ;;  %v1121_v60 = vmul.f32 %v4160_v26, %v4160_v26  ;;  %v2017_v15 = vsub.f32 %v3443_v63, %v4094_v9 }
 0x232   :  { %v2145_v38 = vmul.f32 %v2081_v18, %v2016_v50  ;;  %2242 = vst [vmem:[#allocation5 + $0xb0] sm:$0xff] %v2178_v52  ;;  %v1153_v23 = vsub.f32 %v1025_v16, %v1089_v32  ;;  %vm1886_vm1 = vweird.f32 %v4140_v27  ;;  %vm1566_vm5 = vweird.f32 %v4143_v8 }
 0x233   :  { %v1873_v7 = vmul.f32 0.5, %v1872_v44  ;;  %v662_v20 = vpop.xlane.xlu2 %661  ;;  %v2114_v59 = vmul.f32 %v2050_v49, %v1985_v47 }
 0x234   :  { %v4167_v57 = vmul.f32 %v2768_v61, %v662_v20  ;;  %v925_v42 = vpop.xlane.xlu0 %924  ;;  %v2210_v0 = vadd.f32 %v3942_v28, %v2145_v38  ;;  %v2443_v34 = vpop.eup %2442  ;;  %v1217_v6 = vmax.f32 %v1153_v23, 0.0  ;;  %v1986_v23 = vsub.f32 %v3481_v48, %v4117_v30 }
 0x235   :  { %v1874_v19 = vsub.f32 1.5, %v1873_v7  ;;  %v987_v4 = vpop.xlane.xlu1 %986  ;;  %v1026_v50 = vmul.f32 %v925_v42, %v2768_v61  ;;  %v2179_v2 = vadd.f32 %v3942_v28, %v2114_v59  ;;  %v2445_v3 = vpop.eup %2444  ;;  %v1881_v43 = vmul.f32 %v2443_v34, %v4140_v27 }
 0x236   :  { %v1057_v14 = vmul.f32 %v987_v4, %v2768_v61  ;;  %v1090_v11 = vmul.f32 %v4167_v57, %v4167_v57  ;;  %2274 = vst [vmem:[#allocation5 + $0x1b0] sm:$0xff] %v2210_v0  ;;  %v1561_v33 = vmul.f32 %v2445_v3, %v4143_v8  ;;  %v4181_v37 = vadd.f32 1e-06, %v1217_v6 }
 0x237   :  { %v1875_v55 = vmul.f32 %v2441_v10, %v1874_v19  ;;  %2243 = vst [vmem:[#allocation5 + $0xb8] sm:$0xff] %v2179_v2  ;;  %v1882_v22 = vmul.f32 %v2443_v34, %v1881_v43  ;;  %vm1887_vm2 = vweird.f32 %v2443_v34  ;;  %vm1567_vm3 = vweird.f32 %v2445_v3 }
 0x238   :  { %v1185_v39 = vsub.f32 %v1057_v14, %v1121_v60  ;;  %v1154_v5 = vsub.f32 %v1026_v50, %v1090_v11  ;;  %v1562_v58 = vmul.f32 %v2445_v3, %v1561_v33  ;;  %2446 = vrsqrt.f32 %v4181_v37  ;;  %vm1888_vm4 = vmor %vm1886_vm1, %vm1887_vm2 }
 0x239   :  { %v1879_v13 = vsel %vm1878_vm0, %v2441_v10, %v1875_v55  ;;  %v1883_v21 = vmul.f32 0.5, %v1882_v22  ;;  %vm1568_vm6 = vmor %vm1566_vm5, %vm1567_vm3  ;;  %v2018_v60 = vsub.f32 %v3517_v53, %v4114_v46  ;;  %vm1576_vm8 = vweird.f32 %v4181_v37 }
 0x23a   :  { %v2082_v29 = vmul.f32 %v3922_v54, %v1879_v13  ;;  %v1249_v24 = vmax.f32 %v1185_v39, 0.0  ;;  %v1218_v41 = vmax.f32 %v1154_v5, 0.0  ;;  %v1563_v18 = vmul.f32 0.5, %v1562_v58 }
 0x23b   :  { %v989_v45 = vpop.xlane.xlu2 %988  ;;  %v1884_v9 = vsub.f32 1.5, %v1883_v21  ;;  %v1987_v21 = vsub.f32 %v3577_v25, %v4146_v51 }
 0x23c   :  { %v2146_v16 = vmul.f32 %v2082_v29, %v2017_v15  ;;  %v4185_v35 = vadd.f32 1e-06, %v1249_v24  ;;  %v4187_v44 = vadd.f32 1e-06, %v1218_v41  ;;  %v664_v63 = vpop.xlane.xlu0 %663  ;;  %v1564_v47 = vsub.f32 1.5, %v1563_v18 }
 0x23d   :  { %v726_v10 = vpop.xlane.xlu1 %725  ;;  %v1885_v49 = vmul.f32 %v2443_v34, %v1884_v9  ;;  %v1058_v7 = vmul.f32 %v989_v45, %v2768_v61  ;;  %v4208_v11 = vmul.f32 %v2768_v61, %v664_v63 }
 0x23e   :  { %v2211_v52 = vadd.f32 %v3942_v28, %v2146_v16  ;;  %2448 = vrsqrt.f32 %v4185_v35  ;;  %v4194_v38 = vmul.f32 %v2768_v61, %v726_v10  ;;  %v1565_v32 = vmul.f32 %v2445_v3, %v1564_v47  ;;  %v2447_v27 = vpop.eup %2446 }
 0x23f   :  { %2450 = vrsqrt.f32 %v4187_v44  ;;  %v1889_v20 = vsel %vm1888_vm4, %v2443_v34, %v1885_v49  ;;  %v1571_v19 = vmul.f32 %v2447_v27, %v4181_v37  ;;  %v1091_v5 = vmul.f32 %v4208_v11, %v4208_v11 }
 0x240   :  { %2275 = vst [vmem:[#allocation5 + $0x1b8] sm:$0xff] %v2211_v52  ;;  %v1122_v59 = vmul.f32 %v4194_v38, %v4194_v38  ;;  %v2083_v42 = vmul.f32 %v3922_v54, %v1889_v20  ;;  %v1569_v0 = vsel %vm1568_vm6, %v2445_v3, %v1565_v32  ;;  %vm1577_vm7 = vweird.f32 %v2447_v27 }
 0x241   :  { %v2051_v4 = vmul.f32 %v3922_v54, %v1569_v0  ;;  %v1572_v14 = vmul.f32 %v2447_v27, %v1571_v19  ;;  %vm1578_vm9 = vmor %vm1576_vm8, %vm1577_vm7  ;;  %vm1586_vm11 = vweird.f32 %v4187_v44  ;;  %vm1896_vm13 = vweird.f32 %v4185_v35 }
 0x242   :  { %v1186_v8 = vsub.f32 %v1058_v7, %v1122_v59  ;;  %v2147_v2 = vmul.f32 %v2083_v42, %v2018_v60  ;;  %v2019_v60 = vsub.f32 %v3585_v56, %v4160_v26  ;;  %v1988_v56 = vsub.f32 %v3606_v12, %v4167_v57 }
 0x243   :  { %v728_v50 = vpop.xlane.xlu2 %727  ;;  %v2115_v3 = vmul.f32 %v2051_v4, %v1986_v23  ;;  %v1573_v33 = vmul.f32 0.5, %v1572_v14 }
 0x244   :  { %v2449_v34 = vpop.eup %2448  ;;  %v4211_v53 = vmul.f32 %v2768_v61, %v728_v50  ;;  %v1250_v43 = vmax.f32 %v1186_v8, 0.0  ;;  %v991_v6 = vpop.xlane.xlu0 %990  ;;  %v2212_v30 = vadd.f32 %v3942_v28, %v2147_v2 }
 0x245   :  { %v2451_v46 = vpop.eup %2450  ;;  %v1891_v55 = vmul.f32 %v2449_v34, %v4185_v35  ;;  %v927_v48 = vpop.xlane.xlu1 %926  ;;  %v2180_v15 = vadd.f32 %v3942_v28, %v2115_v3  ;;  %v1574_v58 = vsub.f32 1.5, %v1573_v33  ;;  %v1059_v41 = vmul.f32 %v991_v6, %v2768_v61 }
 0x246   :  { %v1581_v39 = vmul.f32 %v2451_v46, %v4187_v44  ;;  %v4219_v22 = vadd.f32 1e-06, %v1250_v43  ;;  %v1123_v29 = vmul.f32 %v4211_v53, %v4211_v53  ;;  %2276 = vst [vmem:[#allocation5 + $0x1c0] sm:$0xff] %v2212_v30  ;;  %v1027_v16 = vmul.f32 %v927_v48, %v2768_v61 }
 0x247   :  { %v1892_v13 = vmul.f32 %v2449_v34, %v1891_v55  ;;  %2244 = vst [vmem:[#allocation5 + $0xc0] sm:$0xff] %v2180_v15  ;;  %v1575_v18 = vmul.f32 %v2447_v27, %v1574_v58  ;;  %vm1897_vm10 = vweird.f32 %v2449_v34  ;;  %vm1587_vm12 = vweird.f32 %v2451_v46 }
 0x248   :  { %v1582_v24 = vmul.f32 %v2451_v46, %v1581_v39  ;;  %2452 = vrsqrt.f32 %v4219_v22  ;;  %v1187_v9 = vsub.f32 %v1059_v41, %v1123_v29  ;;  %v1155_v52 = vsub.f32 %v1027_v16, %v1091_v5  ;;  %vm1898_vm14 = vmor %vm1896_vm13, %vm1897_vm10 }
 0x249   :  { %v1893_v45 = vmul.f32 0.5, %v1892_v13  ;;  %v1579_v49 = vsel %vm1578_vm9, %v2447_v27, %v1575_v18  ;;  %vm1588_vm15 = vmor %vm1586_vm11, %vm1587_vm12  ;;  %vm1906_vm1 = vweird.f32 %v4219_v22 }
 0x24a   :  { %v1583_v63 = vmul.f32 0.5, %v1582_v24  ;;  %v1251_v25 = vmax.f32 %v1187_v9, 0.0  ;;  %v2052_v51 = vmul.f32 %v3922_v54, %v1579_v49  ;;  %v1219_v20 = vmax.f32 %v1155_v52, 0.0 }
 0x24b   :  { %v1894_v10 = vsub.f32 1.5, %v1893_v45  ;;  %v929_v47 = vpop.xlane.xlu2 %928 }
 0x24c   :  { %v1584_v7 = vsub.f32 1.5, %v1583_v63  ;;  %v730_v37 = vpop.xlane.xlu0 %729  ;;  %v4235_v0 = vadd.f32 1e-06, %v1251_v25  ;;  %v2116_v19 = vmul.f32 %v2052_v51, %v1987_v21  ;;  %v4240_v4 = vadd.f32 1e-06, %v1219_v20 }
 0x24d   :  { %v1895_v32 = vmul.f32 %v2449_v34, %v1894_v10  ;;  %v666_v59 = vpop.xlane.xlu1 %665  ;;  %v1028_v44 = vmul.f32 %v929_v47, %v2768_v61  ;;  %v4255_v55 = vmul.f32 %v2768_v61, %v730_v37  ;;  %v2020_v25 = vsub.f32 %v3631_v40, %v4194_v38 }
 0x24e   :  { %v1585_v42 = vmul.f32 %v2451_v46, %v1584_v7  ;;  %v2453_v27 = vpop.eup %2452  ;;  %v4243_v35 = vmul.f32 %v2768_v61, %v666_v59  ;;  %v2181_v2 = vadd.f32 %v3942_v28, %v2116_v19  ;;  %2454 = vrsqrt.f32 %v4235_v0 }
 0x24f   :  { %v1899_v23 = vsel %vm1898_vm14, %v2449_v34, %v1895_v32  ;;  %v1901_v50 = vmul.f32 %v2453_v27, %v4219_v22  ;;  %2456 = vrsqrt.f32 %v4240_v4  ;;  %v1124_v48 = vmul.f32 %v4255_v55, %v4255_v55 }
 0x250   :  { %v2084_v8 = vmul.f32 %v3922_v54, %v1899_v23  ;;  %v1589_v26 = vsel %vm1588_vm15, %v2451_v46, %v1585_v42  ;;  %2245 = vst [vmem:[#allocation5 + $0xc8] sm:$0xff] %v2181_v2  ;;  %v1092_v57 = vmul.f32 %v4243_v35, %v4243_v35  ;;  %vm1907_vm0 = vweird.f32 %v2453_v27 }
 0x251   :  { %v2053_v34 = vmul.f32 %v3922_v54, %v1589_v26  ;;  %v1902_v3 = vmul.f32 %v2453_v27, %v1901_v50  ;;  %vm1908_vm2 = vmor %vm1906_vm1, %vm1907_vm0  ;;  %vm1916_vm3 = vweird.f32 %v4235_v0  ;;  %vm1596_vm7 = vweird.f32 %v4240_v4 }
 0x252   :  { %v2148_v14 = vmul.f32 %v2084_v8, %v2019_v60  ;;  %v1156_v39 = vsub.f32 %v1028_v44, %v1092_v57  ;;  %v4296_v44 = vld [vmem:[%s4389_s2] ss:$0 sm:$0xff] }
 0x253   :  { %v2117_v12 = vmul.f32 %v2053_v34, %v1988_v56  ;;  %v668_v46 = vpop.xlane.xlu2 %667  ;;  %v1903_v6 = vmul.f32 0.5, %v1902_v3  ;;  %v4422_v34 = vld [vmem:[#allocation13_spill] sm:$0xff] }
 0x254   :  { %v2213_v43 = vadd.f32 %v3942_v28, %v2148_v14  ;;  %v4263_v30 = vmul.f32 %v2768_v61, %v668_v46  ;;  %v931_v15 = vpop.xlane.xlu0 %930  ;;  %v2455_v24 = vpop.eup %2454  ;;  %v1220_v41 = vmax.f32 %v1156_v39, 0.0 }
 0x255   :  { %v2182_v33 = vadd.f32 %v3942_v28, %v2117_v12  ;;  %v993_v5 = vpop.xlane.xlu1 %992  ;;  %v1904_v13 = vsub.f32 1.5, %v1903_v6  ;;  %v1029_v21 = vmul.f32 %v931_v15, %v2768_v61  ;;  %v2457_v45 = vpop.eup %2456  ;;  %v1911_v18 = vmul.f32 %v2455_v24, %v4235_v0 }
 0x256   :  { %2277 = vst [vmem:[#allocation5 + $0x1c8] sm:$0xff] %v2213_v43  ;;  %v1060_v29 = vmul.f32 %v993_v5, %v2768_v61  ;;  %v1093_v58 = vmul.f32 %v4263_v30, %v4263_v30  ;;  %v1591_v9 = vmul.f32 %v2457_v45, %v4240_v4  ;;  %v4273_v10 = vadd.f32 1e-06, %v1220_v41  ;;  %v4423_v4 = vld [vmem:[#allocation12_spill] sm:$0xff]  ;;  %v4424_v41 = vld [vmem:[#allocation9_spill] sm:$0xff] }
 0x257   :  { %2246 = vst [vmem:[#allocation5 + $0xd0] sm:$0xff] %v2182_v33  ;;  %v1905_v16 = vmul.f32 %v2453_v27, %v1904_v13  ;;  %v1912_v49 = vmul.f32 %v2455_v24, %v1911_v18  ;;  %vm1917_vm4 = vweird.f32 %v2455_v24  ;;  %vm1597_vm5 = vweird.f32 %v2457_v45 }
 0x258   :  { %v1188_v63 = vsub.f32 %v1060_v29, %v1124_v48  ;;  %v1157_v52 = vsub.f32 %v1029_v21, %v1093_v58  ;;  %v1592_v32 = vmul.f32 %v2457_v45, %v1591_v9  ;;  %2458 = vrsqrt.f32 %v4273_v10  ;;  %vm1918_vm6 = vmor %vm1916_vm3, %vm1917_vm4 }
 0x259   :  { %v1909_v47 = vsel %vm1908_vm2, %v2453_v27, %v1905_v16  ;;  %v1913_v22 = vmul.f32 0.5, %v1912_v49  ;;  %vm1598_vm8 = vmor %vm1596_vm7, %vm1597_vm5  ;;  %v1989_v57 = vsub.f32 %v4423_v4, %v4208_v11  ;;  %v4314_v11 = vld [vmem:[%s4389_s2 + $0x1] ss:$0 sm:$0xff]  ;;  %v2022_v21 = vsub.f32 %v4424_v41, %v4255_v55  ;;  %s2536_s2 = smov [#allocation5]  }
 0x25a   :  { %v1252_v7 = vmax.f32 %v1188_v63, 0.0  ;;  %v2085_v51 = vmul.f32 %v3922_v54, %v1909_v47  ;;  %v1221_v37 = vmax.f32 %v1157_v52, 0.0  ;;  %v1593_v42 = vmul.f32 0.5, %v1592_v32  ;;  %v4425_v63 = vld [vmem:[#allocation8_spill] sm:$0xff]  ;;  %s2288_s14 = sshll.u32 %s2536_s2, 4  ;;  %s2289_s14 = int_to_ptr.vmem [resolvable:$true] %s2288_s14 }
 0x25b   :  { %v734_v59 = vpop.xlane.xlu2 %733  ;;  %v1914_v23 = vsub.f32 1.5, %v1913_v22  ;;  %v1990_v9 = vsub.f32 %v4425_v63, %v4243_v35  ;;  %vm1606_vm10 = vweird.f32 %v4273_v10 }
 0x25c   :  { %v4279_v20 = vadd.f32 1e-06, %v1252_v7  ;;  %v2149_v60 = vmul.f32 %v2085_v51, %v2020_v25  ;;  %v670_v19 = vpop.xlane.xlu0 %669  ;;  %v4283_v40 = vadd.f32 1e-06, %v1221_v37  ;;  %v1594_v38 = vsub.f32 1.5, %v1593_v42 }
 0x25d   :  { %v732_v27 = vpop.xlane.xlu1 %731  ;;  %v1915_v8 = vmul.f32 %v2455_v24, %v1914_v23  ;;  %v4300_v0 = vmul.f32 %v2768_v61, %v670_v19  ;;  %v4329_v51 = vmul.f32 %v2768_v61, %v734_v59 }
 0x25e   :  { %2460 = vrsqrt.f32 %v4279_v20  ;;  %v2214_v54 = vadd.f32 %v3942_v28, %v2149_v60  ;;  %v2459_v56 = vpop.eup %2458  ;;  %v1595_v26 = vmul.f32 %v2457_v45, %v1594_v38  ;;  %v2021_v28 = vsub.f32 %v4422_v34, %v4211_v53 }
 0x25f   :  { %2462 = vrsqrt.f32 %v4283_v40  ;;  %v1919_v50 = vsel %vm1918_vm6, %v2455_v24, %v1915_v8  ;;  %v1601_v2 = vmul.f32 %v2459_v56, %v4273_v10  ;;  %v1094_v33 = vmul.f32 %v4300_v0, %v4300_v0 }
 0x260   :  { %2278 = vst [vmem:[#allocation5 + $0x1d0] sm:$0xff] %v2214_v54  ;;  %v2086_v14 = vmul.f32 %v4296_v44, %v1919_v50  ;;  %v1599_v3 = vsel %vm1598_vm8, %v2457_v45, %v1595_v26  ;;  %vm1607_vm9 = vweird.f32 %v2459_v56  ;;  %vm1926_vm11 = vweird.f32 %v4279_v20 }
 0x261   :  { %v2054_v46 = vmul.f32 %v4296_v44, %v1599_v3  ;;  %v1602_v43 = vmul.f32 %v2459_v56, %v1601_v2  ;;  %v4326_v55 = vmul.f32 %v2768_v61, %v732_v27  ;;  %vm1608_vm12 = vmor %vm1606_vm10, %vm1607_vm9  ;;  %vm1616_vm14 = vweird.f32 %v4283_v40 }
 0x262   :  { %v2150_v53 = vmul.f32 %v2086_v14, %v2021_v28  ;;  %v1126_v10 = vmul.f32 %v4329_v51, %v4329_v51 }
 0x263   :  { %v935_v6 = vpop.xlane.xlu2 %934  ;;  %v2118_v13 = vmul.f32 %v2054_v46, %v1989_v57  ;;  %v1603_v29 = vmul.f32 0.5, %v1602_v43  ;;  %v1125_v38 = vmul.f32 %v4326_v55, %v4326_v55  ;;  %v4426_v57 = vld [vmem:[#allocation10_spill] sm:$0xff] }
 0x264   :  { %v2461_v12 = vpop.eup %2460  ;;  %v4308_v39 = vpop.xlane.xlu0 %735  ;;  %v2215_v24 = vadd.f32 %v4314_v11, %v2150_v53  ;;  %v1991_v46 = vsub.f32 %v4426_v57, %v4263_v30 }
 0x265   :  { %v1921_v48 = vmul.f32 %v2461_v12, %v4279_v20  ;;  %v933_v5 = vpop.xlane.xlu1 %932  ;;  %v2463_v15 = vpop.eup %2462  ;;  %v2183_v18 = vadd.f32 %v4314_v11, %v2118_v13  ;;  %v1604_v52 = vsub.f32 1.5, %v1603_v29  ;;  %vm1927_vm13 = vweird.f32 %v2461_v12 }
 0x266   :  { %v1030_v58 = vmul.f32 %v933_v5, %v2768_v61  ;;  %v1611_v16 = vmul.f32 %v2463_v15, %v4283_v40  ;;  %2279 = vst [vmem:[#allocation5 + $0x1d8] sm:$0xff] %v2215_v24  ;;  %vm1617_vm15 = vweird.f32 %v2463_v15  ;;  %vm1928_vm0 = vmor %vm1926_vm11, %vm1927_vm13  ;;  %v1031_v20 = vmul.f32 %v935_v6, %v2768_v61 }
 0x267   :  { %v1922_v45 = vmul.f32 %v2461_v12, %v1921_v48  ;;  %2247 = vst [vmem:[#allocation5 + $0xd8] sm:$0xff] %v2183_v18  ;;  %v1605_v25 = vmul.f32 %v2459_v56, %v1604_v52  ;;  %vm1618_vm1 = vmor %vm1616_vm14, %vm1617_vm15 }
 0x268   :  { %v1612_v49 = vmul.f32 %v2463_v15, %v1611_v16  ;;  %v1158_v7 = vsub.f32 %v1030_v58, %v1094_v33 }
 0x269   :  { %v1923_v47 = vmul.f32 0.5, %v1922_v45  ;;  %v1609_v37 = vsel %vm1608_vm12, %v2459_v56, %v1605_v25 }
 0x26a   :  { %v1613_v32 = vmul.f32 0.5, %v1612_v49  ;;  %v1222_v22 = vmax.f32 %v1158_v7, 0.0  ;;  %v2055_v42 = vmul.f32 %v4296_v44, %v1609_v37 }
 0x26b   :  { %v1924_v35 = vsub.f32 1.5, %v1923_v47  ;;  %v995_v60 = vpop.xlane.xlu2 %994 }
 0x26c   :  { %v1614_v19 = vsub.f32 1.5, %v1613_v32  ;;  %v1286_v23 = vadd.f32 1e-06, %v1222_v22  ;;  %v997_v59 = vpop.xlane.xlu0 %996  ;;  %v1061_v26 = vmul.f32 %v995_v60, %v2768_v61  ;;  %v2119_v50 = vmul.f32 %v2055_v42, %v1990_v9 }
 0x26d   :  { %v1925_v27 = vmul.f32 %v2461_v12, %v1924_v35  ;;  %v672_v54 = vpop.xlane.xlu1 %671  ;;  %v1062_v8 = vmul.f32 %v997_v59, %v2768_v61 }
 0x26e   :  { %v4341_v56 = vmul.f32 %v2768_v61, %v672_v54  ;;  %v1615_v34 = vmul.f32 %v2463_v15, %v1614_v19  ;;  %2464 = vrsqrt.f32 %v1286_v23  ;;  %v2184_v4 = vadd.f32 %v4314_v11, %v2119_v50 }
 0x26f   :  { %v1929_v2 = vsel %vm1928_vm0, %v2461_v12, %v1925_v27  ;;  %v1190_v14 = vsub.f32 %v1062_v8, %v1126_v10  ;;  %v1189_v43 = vsub.f32 %v1061_v26, %v1125_v38  ;;  %vm1626_vm3 = vweird.f32 %v1286_v23 }
 0x270   :  { %v2087_v28 = vmul.f32 %v4296_v44, %v1929_v2  ;;  %v1095_v3 = vmul.f32 %v4341_v56, %v4341_v56  ;;  %v1619_v12 = vsel %vm1618_vm1, %v2463_v15, %v1615_v34  ;;  %2248 = vst [vmem:[#allocation5 + $0xe0] sm:$0xff] %v2184_v4  ;;  %v4359_v15 = vmul.f32 %v2768_v61, %v4308_v39 }
 0x271   :  { %v2056_v48 = vmul.f32 %v4296_v44, %v1619_v12  ;;  %v1254_v33 = vmax.f32 %v1190_v14, 0.0  ;;  %v1253_v40 = vmax.f32 %v1189_v43, 0.0  ;;  %v2024_v14 = vsub.f32 %v3868_v62, %v4329_v51 }
 0x272   :  { %v2151_v53 = vmul.f32 %v2087_v28, %v2022_v21  ;;  %v1159_v5 = vsub.f32 %v1031_v20, %v1095_v3  ;;  %v1127_v18 = vmul.f32 %v4359_v15, %v4359_v15  ;;  %v2023_v43 = vsub.f32 %v3859_v31, %v4326_v55 }
 0x273   :  { %v2120_v13 = vmul.f32 %v2056_v48, %v1991_v46  ;;  %v1318_v29 = vadd.f32 1e-06, %v1254_v33  ;;  %v1317_v41 = vadd.f32 1e-06, %v1253_v40  ;;  %v1993_v62 = vsub.f32 %v3873_v17, %v4341_v56 }
 0x274   :  { %v2216_v6 = vadd.f32 %v4314_v11, %v2151_v53  ;;  %v1223_v58 = vmax.f32 %v1159_v5, 0.0  ;;  %v2465_v24 = vpop.eup %2464  ;;  %v2025_v56 = vsub.f32 %v3910_v1, %v4359_v15 }
 0x275   :  { %v999_v45 = vpop.xlane.xlu1 %998  ;;  %v2185_v30 = vadd.f32 %v4314_v11, %v2120_v13  ;;  %v1621_v21 = vmul.f32 %v2465_v24, %v1286_v23  ;;  %2466 = vrsqrt.f32 %v1318_v29  ;;  %vm1627_vm2 = vweird.f32 %v2465_v24 }
 0x276   :  { %2280 = vst [vmem:[#allocation5 + $0x1e0] sm:$0xff] %v2216_v6  ;;  %v1287_v16 = vadd.f32 1e-06, %v1223_v58  ;;  %2468 = vrsqrt.f32 %v1317_v41  ;;  %v1063_v9 = vmul.f32 %v999_v45, %v2768_v61  ;;  %vm1628_vm4 = vmor %vm1626_vm3, %vm1627_vm2  ;;  %v1992_v61 = vsub.f32 %v3864_v36, %v4300_v0 }
 0x277   :  { %2249 = vst [vmem:[#allocation5 + $0xe8] sm:$0xff] %v2185_v30  ;;  %v1622_v63 = vmul.f32 %v2465_v24, %v1621_v21  ;;  %vm1946_vm7 = vweird.f32 %v1318_v29  ;;  %vm1936_vm10 = vweird.f32 %v1317_v41 }
 0x278   :  { %2470 = vrsqrt.f32 %v1287_v16  ;;  %v1191_v47 = vsub.f32 %v1063_v9, %v1127_v18  ;;  %vm1636_vm11 = vweird.f32 %v1287_v16 }
 0x279   :  { %v1623_v52 = vmul.f32 0.5, %v1622_v63 }
 0x27a   :  { %v1255_v25 = vmax.f32 %v1191_v47, 0.0 }
 0x27b   :  { %v2467_v49 = vpop.eup %2466  ;;  %v1624_v7 = vsub.f32 1.5, %v1623_v52 }
 0x27c   :  { %v2469_v39 = vpop.eup %2468  ;;  %v1941_v35 = vmul.f32 %v2467_v49, %v1318_v29  ;;  %v1319_v37 = vadd.f32 1e-06, %v1255_v25  ;;  %vm1947_vm5 = vweird.f32 %v2467_v49 }
 0x27d   :  { %v1625_v32 = vmul.f32 %v2465_v24, %v1624_v7  ;;  %v1931_v22 = vmul.f32 %v2469_v39, %v1317_v41  ;;  %vm1937_vm6 = vweird.f32 %v2469_v39  ;;  %vm1948_vm8 = vmor %vm1946_vm7, %vm1947_vm5 }
 0x27e   :  { %v2471_v10 = vpop.eup %2470  ;;  %v1942_v60 = vmul.f32 %v2467_v49, %v1941_v35  ;;  %2472 = vrsqrt.f32 %v1319_v37  ;;  %vm1938_vm12 = vmor %vm1936_vm10, %vm1937_vm6  ;;  %vm1956_vm15 = vweird.f32 %v1319_v37 }
 0x27f   :  { %v1629_v42 = vsel %vm1628_vm4, %v2465_v24, %v1625_v32  ;;  %v1631_v27 = vmul.f32 %v2471_v10, %v1287_v16  ;;  %v1932_v19 = vmul.f32 %v2469_v39, %v1931_v22  ;;  %vm1637_vm9 = vweird.f32 %v2471_v10 }
 0x280   :  { %v2057_v59 = vmul.f32 %v4296_v44, %v1629_v42  ;;  %v1943_v54 = vmul.f32 0.5, %v1942_v60  ;;  %vm1638_vm13 = vmor %vm1636_vm11, %vm1637_vm9 }
 0x281   :  { %v1632_v38 = vmul.f32 %v2471_v10, %v1631_v27  ;;  %v1933_v8 = vmul.f32 0.5, %v1932_v19 }
 0x282   :  { %v2121_v26 = vmul.f32 %v2057_v59, %v1992_v61  ;;  %v1944_v50 = vsub.f32 1.5, %v1943_v54 }
 0x283   :  { %v1633_v23 = vmul.f32 0.5, %v1632_v38  ;;  %v1934_v2 = vsub.f32 1.5, %v1933_v8 }
 0x284   :  { %v2186_v34 = vadd.f32 %v4314_v11, %v2121_v26  ;;  %v1945_v28 = vmul.f32 %v2467_v49, %v1944_v50  ;;  %v2473_v0 = vpop.eup %2472 }
 0x285   :  { %v1634_v20 = vsub.f32 1.5, %v1633_v23  ;;  %v1935_v36 = vmul.f32 %v2469_v39, %v1934_v2  ;;  %v1951_v12 = vmul.f32 %v2473_v0, %v1319_v37  ;;  %vm1957_vm14 = vweird.f32 %v2473_v0 }
 0x286   :  { %2250 = vst [vmem:[#allocation5 + $0xf0] sm:$0xff] %v2186_v34  ;;  %v1949_v3 = vsel %vm1948_vm8, %v2467_v49, %v1945_v28  ;;  %vm1958_vm0 = vmor %vm1956_vm15, %vm1957_vm14 }
 0x287   :  { %v2089_v4 = vmul.f32 %v4296_v44, %v1949_v3  ;;  %v1635_v57 = vmul.f32 %v2471_v10, %v1634_v20  ;;  %v1939_v46 = vsel %vm1938_vm12, %v2469_v39, %v1935_v36  ;;  %v1952_v5 = vmul.f32 %v2473_v0, %v1951_v12 }
 0x288   :  { %v2088_v53 = vmul.f32 %v4296_v44, %v1939_v46 }
 0x289   :  { %v2153_v48 = vmul.f32 %v2089_v4, %v2024_v14  ;;  %v1639_v33 = vsel %vm1638_vm13, %v2471_v10, %v1635_v57  ;;  %v1953_v13 = vmul.f32 0.5, %v1952_v5 }
 0x28a   :  { %v2058_v51 = vmul.f32 %v4296_v44, %v1639_v33  ;;  %v2152_v40 = vmul.f32 %v2088_v53, %v2023_v43 }
 0x28b   :  { %v2218_v6 = vadd.f32 %v4314_v11, %v2153_v48  ;;  %v1954_v31 = vsub.f32 1.5, %v1953_v13 }
 0x28c   :  { %v2122_v29 = vmul.f32 %v2058_v51, %v1993_v62  ;;  %v2217_v58 = vadd.f32 %v4314_v11, %v2152_v40 }
 0x28d   :  { %2282 = vst [vmem:[#allocation5 + $0x1f0] sm:$0xff] %v2218_v6  ;;  %v1955_v24 = vmul.f32 %v2473_v0, %v1954_v31 }
 0x28e   :  { %v2187_v55 = vadd.f32 %v4314_v11, %v2122_v29  ;;  %2281 = vst [vmem:[#allocation5 + $0x1e8] sm:$0xff] %v2217_v58 }
 0x28f   :  { %v1959_v17 = vsel %vm1958_vm0, %v2473_v0, %v1955_v24 }
 0x290   :  { %2251 = vst [vmem:[#allocation5 + $0xf8] sm:$0xff] %v2187_v55  ;;  %v2090_v41 = vmul.f32 %v4296_v44, %v1959_v17 }
 0x292   :  { %v2154_v45 = vmul.f32 %v2090_v41, %v2025_v56 }
 0x294   :  { %v2219_v30 = vadd.f32 %v4314_v11, %v2154_v45 }
 0x296   :  { %2283 = vst [vmem:[#allocation5 + $0x1f8] sm:$0xff] %v2219_v30 }
 0x297   :  { %2296 = dma.vmem_to_hbm [thread:$0]  %s2289_s14, 8192, %s2291_s17, [#allocation4], %s2537_s18, %s2537_s18, %s2538_s19  }
 0x298   :  { %2530 = dma.done.wait [#allocation4], 8192  }
 0x299   :  { %2531 = vsyncadd [#allocation4], 4294959104 }
 0x29a   :  { %2301 = vsyncpa [#allocation3], 1 }
 0x29b   :  { %2302 = vsyncpa [#allocation4], 1 }

</bundles_post_ra>
